<compile_context>
chip_gen: v7x
topology: tpu7x:2x2x1
jax: 0.10.0
libtpu: 0.0.40
codegen_flags: <defaults>
</compile_context>

<pallas_src>
import functools

import jax
import jax.numpy as jnp
from jax.experimental import pallas as pl
from jax.experimental.pallas import tpu as pltpu

FEATURE_DIM = 4
DELTA_V = 0.5
DELTA_D = 1.5
W_AGG = 1.0
W_DIS = 1.0
MAX_LABELS = 8          # instance labels must lie in [0, MAX_LABELS)
LANES = 128
MAX_TILE_ROWS = 512     # rows (of 128 lanes) per grid step -> ~64k px / step
DIST_EPS = 1e-12        # inside sqrt: keeps grads finite when dist == 0


def _cdiv(a, b):
    return -(-a // b)


def _psum(x):
    """(G, 8, 128) -> (8, 128): reduce over the leading (non-tiled) axis.

    Pure vreg adds on the VPU; the final 8->1 sublane / 128->1 lane reduction
    is done in the XLA epilogue, not in-kernel.
    """
    return jnp.sum(x, axis=0)


def _pass1_kernel(emb_ref, ik_ref, im_ref, acc_ref, *, max_labels, feature_dim):
    """Per-tile accumulation of per-label counts and embedding sums.

    emb_ref: (1, D, G, 8, 128) f32
    ik_ref : (1, G, 8, 128)    i32  instance*training_mask*kernel (pad = -1)
    im_ref : (1, G, 8, 128)    i32  instance*training_mask        (pad = -1)
    acc_ref: (1, (L*D + 2L)*8, 128) f32, full-vreg row-group r = rows [8r,8r+8):
       r = l*D + d     : sum of emb[d] over pixels with ik == l  (l > 0)
       r = L*D + l     : count of pixels with ik == l
       r = L*D + L + l : count of pixels with im == l
    """
    L, D = max_labels, feature_dim

    @pl.when(pl.program_id(2) == 0)
    def _init():
        acc_ref[...] = jnp.zeros_like(acc_ref)

    ik = ik_ref[0]                                  # (G, 8, 128) i32
    im = im_ref[0]                                  # (G, 8, 128) i32
    embs = [emb_ref[0, d] for d in range(D)]        # D x (G, 8, 128) f32

    for l in range(L):
        mk = ik == l
        mi = im == l
        r = L * D + l
        acc_ref[0, r * 8:(r + 1) * 8, :] += _psum(jnp.where(mk, 1.0, 0.0))
        r = L * D + L + l
        acc_ref[0, r * 8:(r + 1) * 8, :] += _psum(jnp.where(mi, 1.0, 0.0))
        if l > 0:   # PyTorch leaves emb_mean[:, 0] at zero (background column)
            for d in range(D):
                r = l * D + d
                acc_ref[0, r * 8:(r + 1) * 8, :] += _psum(
                    jnp.where(mk, embs[d], 0.0))


def _pass2_kernel(pres_ref, neg2m_ref, msq_ref, emb_ref, im_ref, acc_ref,
                  *, max_labels, feature_dim):
    """Per-tile accumulation of aggregation / background-discrimination sums.

    pres_ref : (B, L)   i32 SMEM  1 iff label present in instance_kernel
    neg2m_ref: (B, D*L) f32 SMEM  -2 * mean_{d,l}, flat index d*L + l
    msq_ref  : (B, L)   f32 SMEM  ||mean_l||^2
    emb_ref  : (1, D, G, 8, 128) f32
    im_ref   : (1, G, 8, 128)    i32
    acc_ref  : (1, 2L*8, 128) f32, full-vreg row-group r:
       r = l     : sum over pixels with im == l of log(relu(dist-dv)^2 + 1)
       r = L + l : sum over background (im == 0) of log(relu(2dd-dist)^2 + 1)
    """
    L, D = max_labels, feature_dim
    b = pl.program_id(0)

    @pl.when(pl.program_id(2) == 0)
    def _init():
        acc_ref[...] = jnp.zeros_like(acc_ref)

    im = im_ref[0]                                  # (G, 8, 128) i32
    embs = [emb_ref[0, d] for d in range(D)]        # D x (G, 8, 128) f32
    is_bg = im == 0

    # ||e||^2 hoisted across labels; per-label ||e - m||^2 uses the expansion
    # ||e||^2 - 2 e.m + ||m||^2 with SMEM scalars, clamped before the sqrt.
    e2 = embs[0] * embs[0]
    for d in range(1, D):
        e2 = e2 + embs[d] * embs[d]

    for l in range(1, L):
        # Skip labels absent from instance_kernel: they contribute nothing in
        # the reference and the sqrt/log work is the EUP hot path.
        @pl.when(pres_ref[b, l] > 0)
        def _label(l=l):
            d2 = e2 + msq_ref[b, l]
            for d in range(D):
                d2 = d2 + embs[d] * neg2m_ref[b, d * L + l]
            dist = jnp.sqrt(jnp.maximum(d2, 0.0) + DIST_EPS)
            is_l = im == l
            # im==l and im==0 are disjoint, so one shared log serves both terms.
            x = jnp.where(is_l, dist - DELTA_V, 2.0 * DELTA_D - dist)
            x = jnp.maximum(x, 0.0)
            v = jnp.log(x * x + 1.0)
            acc_ref[0, l * 8:(l + 1) * 8, :] += _psum(jnp.where(is_l, v, 0.0))
            acc_ref[0, (L + l) * 8:(L + l + 1) * 8, :] += _psum(
                jnp.where(is_bg, v, 0.0))


@functools.partial(jax.jit, static_argnames=("max_labels", "mode", "reduce"))
def emb_loss(emb, instance, kernel_map, training_mask,
             *, max_labels=MAX_LABELS, mode="v2", reduce=True):
    assert mode in ("v1", "v2")
    B, D, H, W = emb.shape
    L = max_labels
    N = H * W

    # ---- XLA-side preprocessing: masked label maps + dense (groups,8,128) ---
    inst = instance.reshape(B, N).astype(jnp.int32)
    tm = training_mask.reshape(B, N) > 0.5
    km = kernel_map.reshape(B, N) > 0.5
    inst_m = jnp.where(tm, inst, 0)            # instance * training_mask
    inst_k = jnp.where(km, inst_m, 0)          # ... * kernel
    emb_f = emb.reshape(B, D, N).astype(jnp.float32)

    rows = _cdiv(N, LANES)                                # rows of 128 pixels
    n_outer = 2 if rows >= 16 else 1                      # feed both TCs (v7x) even at B=1
    n_inner = max(1, _cdiv(rows, n_outer * MAX_TILE_ROWS))
    tile_r = _cdiv(_cdiv(rows, n_outer * n_inner), 8) * 8  # rows / tile, mult of 8
    rows_pad = n_outer * n_inner * tile_r
    tile_g = tile_r // 8
    groups = rows_pad // 8
    n_pad = rows_pad * LANES
    pad = n_pad - N
    if pad:
        # Padded pixels get label -1: they match neither background (0) nor
        # any real label in either pass.
        inst_m = jnp.pad(inst_m, ((0, 0), (0, pad)), constant_values=-1)
        inst_k = jnp.pad(inst_k, ((0, 0), (0, pad)), constant_values=-1)
        emb_f = jnp.pad(emb_f, ((0, 0), (0, 0), (0, pad)))
    emb_r = emb_f.reshape(B, D, groups, 8, LANES)
    im_r = inst_m.reshape(B, groups, 8, LANES)
    ik_r = inst_k.reshape(B, groups, 8, LANES)

    # TODO(synk): labels >= max_labels are not supported (original PyTorch uses
    # torch.unique and handles arbitrary label ids).

    # ---------------- pass 1: counts + embedding sums ----------------------
    R1 = L * D + 2 * L
    p1 = pl.pallas_call(
        functools.partial(_pass1_kernel, max_labels=L, feature_dim=D),
        out_shape=jax.ShapeDtypeStruct((B * n_outer, R1 * 8, LANES), jnp.float32),
        grid=(B, n_outer, n_inner),
        in_specs=[
            pl.BlockSpec((1, D, tile_g, 8, LANES),
                         lambda b, o, t: (b, 0, o * n_inner + t, 0, 0)),
            pl.BlockSpec((1, tile_g, 8, LANES),
                         lambda b, o, t: (b, o * n_inner + t, 0, 0)),
            pl.BlockSpec((1, tile_g, 8, LANES),
                         lambda b, o, t: (b, o * n_inner + t, 0, 0)),
        ],
        out_specs=pl.BlockSpec((1, R1 * 8, LANES),
                               lambda b, o, t: (b * n_outer + o, 0, 0)),
        compiler_params=pltpu.CompilerParams(
            dimension_semantics=("parallel", "parallel", "arbitrary")),
        cost_estimate=pl.CostEstimate(
            flops=int(B * n_pad * L * (D + 6)),
            transcendentals=0,
            bytes_accessed=int(B * n_pad * (D + 2) * 4
                               + B * n_outer * R1 * 8 * LANES * 4)),
    )(emb_r, ik_r, im_r)

    stats1 = jnp.sum(p1.reshape(B, n_outer, R1, 8, LANES), axis=(1, 3, 4))  # (B,R1)
    emb_sums = stats1[:, :L * D].reshape(B, L, D)              # [b, l, d]
    cnt_k = stats1[:, L * D:L * D + L]                         # (B, L)
    agg_cnt = stats1[:, L * D + L:L * D + 2 * L]               # (B, L)
    # Label present in inst_k implies agg_cnt > 0 too, so the max(.,1) guards
    # never alter present-label values.
    means = (jnp.transpose(emb_sums, (0, 2, 1))
             / jnp.maximum(cnt_k, 1.0)[:, None, :])            # (B, D, L)
    presence = (cnt_k > 0.0).astype(jnp.int32)                 # (B, L)
    neg2m = (-2.0 * means).reshape(B, D * L)                   # (B, D*L)
    msq = jnp.sum(means * means, axis=1)                       # (B, L)

    # ---------------- pass 2: aggregation + background sums ----------------
    R2 = 2 * L
    p2 = pl.pallas_call(
        functools.partial(_pass2_kernel, max_labels=L, feature_dim=D),
        out_shape=jax.ShapeDtypeStruct((B * n_outer, R2 * 8, LANES), jnp.float32),
        grid=(B, n_outer, n_inner),
        in_specs=[
            pl.BlockSpec(memory_space=pltpu.MemorySpace.SMEM),   # presence
            pl.BlockSpec(memory_space=pltpu.MemorySpace.SMEM),   # -2*means (flat)
            pl.BlockSpec(memory_space=pltpu.MemorySpace.SMEM),   # ||mean||^2
            pl.BlockSpec((1, D, tile_g, 8, LANES),
                         lambda b, o, t: (b, 0, o * n_inner + t, 0, 0)),
            pl.BlockSpec((1, tile_g, 8, LANES),
                         lambda b, o, t: (b, o * n_inner + t, 0, 0)),
        ],
        out_specs=pl.BlockSpec((1, R2 * 8, LANES),
                               lambda b, o, t: (b * n_outer + o, 0, 0)),
        compiler_params=pltpu.CompilerParams(
            dimension_semantics=("parallel", "parallel", "arbitrary")),
        cost_estimate=pl.CostEstimate(
            flops=int(B * n_pad * L * (2 * D + 10)),
            transcendentals=int(B * n_pad * L * 2),
            bytes_accessed=int(B * n_pad * (D + 1) * 4
                               + B * n_outer * R2 * 8 * LANES * 4)),
    )(presence, neg2m, msq, emb_r, im_r)

    stats2 = jnp.sum(p2.reshape(B, n_outer, R2, 8, LANES), axis=(1, 3, 4))  # (B,R2)
    agg_sum = stats2[:, :L]
    bg_sum = stats2[:, L:]

    # ---------------- plain-JAX glue over the tiny (B, L) stats -----------
    present = cnt_k > 0.0
    num_instance = jnp.sum(present.astype(jnp.float32), axis=1)
    # TODO(synk): assumes label 0 is present in instance_kernel (it always is
    # in practice); PyTorch's l_agg[1:] indexing for the 0-absent corner case
    # is not reproduced.
    nz_present = present.at[:, 0].set(False)
    nz_f = nz_present.astype(jnp.float32)
    n_nz = jnp.sum(nz_f, axis=1)

    per_label_agg = agg_sum / jnp.maximum(agg_cnt, 1.0)
    l_agg = jnp.sum(per_label_agg * nz_f, axis=1) / jnp.maximum(n_nz, 1.0)

    # pairwise mean-to-mean discrimination terms (tiny L x L work in XLA).
    diff = means[:, :, :, None] - means[:, :, None, :]          # (B, D, L, L)
    pd = jnp.sqrt(jnp.sum(diff * diff, axis=1) + DIST_EPS)      # (B, L, L)
    pval = jnp.log(jnp.maximum(2.0 * DELTA_D - pd, 0.0) ** 2 + 1.0)
    eye = jnp.eye(L, dtype=bool)[None]
    pair_mask = (nz_present[:, :, None] & nz_present[:, None, :] & (~eye))
    pair_sum = jnp.sum(pval * pair_mask.astype(jnp.float32), axis=(1, 2))
    pair_cnt = n_nz * (n_nz - 1.0)

    if mode == "v2":
        # TODO(synk): PyTorch randomly subsamples >100 background pixels via
        # np.random (non-deterministic); here all background pixels are used.
        bg_cnt = agg_cnt[:, 0]                                  # masked instance == 0
        has_bg = bg_cnt > 0.0
        bg_mean = bg_sum / jnp.maximum(bg_cnt, 1.0)[:, None]    # (B, L)
        bg_terms_sum = jnp.sum(bg_mean * nz_f, axis=1)
        extra_sum = jnp.where(has_bg, bg_terms_sum, 0.0)
        extra_cnt = jnp.where(has_bg, n_nz, 0.0)
    else:  # v1
        extra_sum = jnp.zeros_like(pair_sum)
        extra_cnt = jnp.zeros_like(pair_cnt)

    l_dis = jnp.where(
        num_instance > 2.0,
        (pair_sum + extra_sum) / jnp.maximum(pair_cnt + extra_cnt, 1.0),
        0.0)

    norms = jnp.sqrt(msq + DIST_EPS)                             # (B, L)
    l_reg = (jnp.sum(jnp.log(norms + 1.0) * present.astype(jnp.float32), axis=1)
             / jnp.maximum(num_instance, 1.0)) * 0.001

    loss_b = jnp.where(num_instance > 1.0,
                       W_AGG * l_agg + W_DIS * l_dis + l_reg,
                       0.0)
    if reduce:
        return jnp.mean(loss_b)
    return loss_b


if __name__ == "__main__":
    B, D, H, W = 2, FEATURE_DIM, 16, 16
    key = jax.random.PRNGKey(0)
    k1, k2, k3, k4 = jax.random.split(key, 4)

    emb = jax.random.normal(k1, (B, D, H, W), dtype=jnp.float32)
    instance = jax.random.randint(k2, (B, H, W), 0, 5).astype(jnp.int32)      # labels 0..4
    kernel_map = (jax.random.uniform(k3, (B, H, W)) > 0.3).astype(jnp.float32)
    training_mask = (jax.random.uniform(k4, (B, H, W)) > 0.1).astype(jnp.float32)

    loss = emb_loss(emb, instance, kernel_map, training_mask)
    loss = jax.block_until_ready(loss)
    assert loss.shape == () and jnp.isfinite(loss)
    print("KERNEL_OK")
</pallas_src>

<mosaic_0001>
module attributes {stable_mosaic.version = 11 : i64} {
  func.func @_pass1_kernel(%arg0: i32, %arg1: i32, %arg2: i32, %arg3: memref<1x4x1x8x128xf32, #tpu.memory_space<vmem>>, %arg4: memref<1x1x8x128xi32, #tpu.memory_space<vmem>>, %arg5: memref<1x1x8x128xi32, #tpu.memory_space<vmem>>, %arg6: memref<1x384x128xf32, #tpu.memory_space<vmem>>) attributes {dimension_semantics = [#tpu.dimension_semantics<parallel>, #tpu.dimension_semantics<parallel>, #tpu.dimension_semantics<arbitrary>], iteration_bounds = array<i64: 2, 1, 1>, scalar_prefetch = 0 : i64, scratch_operands = 0 : i64, tpu.core_type = #tpu.core_type<tc>, window_params = [{transform_indices = @transform_0, window_bounds = array<i64: 1, 4, 1, 8, 128>}, {transform_indices = @transform_1, window_bounds = array<i64: 1, 1, 8, 128>}, {transform_indices = @transform_2, window_bounds = array<i64: 1, 1, 8, 128>}, {transform_indices = @transform_3, window_bounds = array<i64: 1, 384, 128>}]} {
    %c0_i32 = arith.constant 0 : i32
    %0 = arith.cmpi eq, %arg2, %c0_i32 : i32
    %1 = arith.extui %0 : i1 to i32
    %c0_i32_0 = arith.constant 0 : i32
    %2 = arith.cmpi ne, %1, %c0_i32_0 : i32
    scf.if %2 {
      %cst_357 = arith.constant 0.000000e+00 : f32
      %459 = vector.broadcast %cst_357 : f32 to vector<1x384x128xf32>
      %c0_358 = arith.constant 0 : index
      %c0_359 = arith.constant 0 : index
      %c0_360 = arith.constant 0 : index
      %460 = vector.load %arg6[%c0_358, %c0_359, %c0_360] : memref<1x384x128xf32, #tpu.memory_space<vmem>>, vector<1x384x128xf32>
      tpu.vector_store %arg6[%c0_358, %c0_359, %c0_360], %459 {strides = array<i32>} : memref<1x384x128xf32, #tpu.memory_space<vmem>>, vector<1x384x128xf32>,
    } else {
    }
    %c0 = arith.constant 0 : index
    %c0_1 = arith.constant 0 : index
    %c0_2 = arith.constant 0 : index
    %c0_3 = arith.constant 0 : index
    %3 = vector.load %arg4[%c0, %c0_1, %c0_2, %c0_3] : memref<1x1x8x128xi32, #tpu.memory_space<vmem>>, vector<1x1x8x128xi32>
    %4 = vector.shape_cast %3 : vector<1x1x8x128xi32> to vector<1x8x128xi32>
    %c0_4 = arith.constant 0 : index
    %c0_5 = arith.constant 0 : index
    %c0_6 = arith.constant 0 : index
    %c0_7 = arith.constant 0 : index
    %5 = vector.load %arg5[%c0_4, %c0_5, %c0_6, %c0_7] : memref<1x1x8x128xi32, #tpu.memory_space<vmem>>, vector<1x1x8x128xi32>
    %6 = vector.shape_cast %5 : vector<1x1x8x128xi32> to vector<1x8x128xi32>
    %c0_8 = arith.constant 0 : index
    %c0_9 = arith.constant 0 : index
    %c0_10 = arith.constant 0 : index
    %c0_11 = arith.constant 0 : index
    %c0_12 = arith.constant 0 : index
    %7 = vector.load %arg3[%c0_8, %c0_9, %c0_10, %c0_11, %c0_12] : memref<1x4x1x8x128xf32, #tpu.memory_space<vmem>>, vector<1x1x1x8x128xf32>
    %8 = vector.shape_cast %7 : vector<1x1x1x8x128xf32> to vector<1x8x128xf32>
    %c0_13 = arith.constant 0 : index
    %c1 = arith.constant 1 : index
    %c0_14 = arith.constant 0 : index
    %c0_15 = arith.constant 0 : index
    %c0_16 = arith.constant 0 : index
    %9 = vector.load %arg3[%c0_13, %c1, %c0_14, %c0_15, %c0_16] : memref<1x4x1x8x128xf32, #tpu.memory_space<vmem>>, vector<1x1x1x8x128xf32>
    %10 = vector.shape_cast %9 : vector<1x1x1x8x128xf32> to vector<1x8x128xf32>
    %c0_17 = arith.constant 0 : index
    %c2 = arith.constant 2 : index
    %c0_18 = arith.constant 0 : index
    %c0_19 = arith.constant 0 : index
    %c0_20 = arith.constant 0 : index
    %11 = vector.load %arg3[%c0_17, %c2, %c0_18, %c0_19, %c0_20] : memref<1x4x1x8x128xf32, #tpu.memory_space<vmem>>, vector<1x1x1x8x128xf32>
    %12 = vector.shape_cast %11 : vector<1x1x1x8x128xf32> to vector<1x8x128xf32>
    %c0_21 = arith.constant 0 : index
    %c3 = arith.constant 3 : index
    %c0_22 = arith.constant 0 : index
    %c0_23 = arith.constant 0 : index
    %c0_24 = arith.constant 0 : index
    %13 = vector.load %arg3[%c0_21, %c3, %c0_22, %c0_23, %c0_24] : memref<1x4x1x8x128xf32, #tpu.memory_space<vmem>>, vector<1x1x1x8x128xf32>
    %14 = vector.shape_cast %13 : vector<1x1x1x8x128xf32> to vector<1x8x128xf32>
    %c0_i32_25 = arith.constant 0 : i32
    %15 = vector.broadcast %c0_i32_25 : i32 to vector<1x8x128xi32>
    %16 = arith.cmpi eq, %4, %15 : vector<1x8x128xi32>
    %c0_i32_26 = arith.constant 0 : i32
    %17 = vector.broadcast %c0_i32_26 : i32 to vector<1x8x128xi32>
    %18 = arith.cmpi eq, %6, %17 : vector<1x8x128xi32>
    %c0_27 = arith.constant 0 : index
    %c256 = arith.constant 256 : index
    %c0_28 = arith.constant 0 : index
    %19 = vector.load %arg6[%c0_27, %c256, %c0_28] : memref<1x384x128xf32, #tpu.memory_space<vmem>>, vector<1x8x128xf32>
    %20 = vector.shape_cast %19 : vector<1x8x128xf32> to vector<8x128xf32>
    %cst = arith.constant 1.000000e+00 : f32
    %cst_29 = arith.constant 0.000000e+00 : f32
    %21 = vector.broadcast %cst : f32 to vector<1x8x128xf32>
    %22 = vector.broadcast %cst_29 : f32 to vector<1x8x128xf32>
    %23 = arith.select %16, %21, %22 : vector<1x8x128xi1>, vector<1x8x128xf32>
    %cst_30 = arith.constant dense<0.000000e+00> : vector<8x128xf32>
    %24 = vector.multi_reduction <add>, %23, %cst_30 [0] : vector<1x8x128xf32> to vector<8x128xf32>
    %25 = arith.addf %20, %24 : vector<8x128xf32>
    %c0_31 = arith.constant 0 : index
    %c256_32 = arith.constant 256 : index
    %c0_33 = arith.constant 0 : index
    %26 = vector.load %arg6[%c0_31, %c256_32, %c0_33] : memref<1x384x128xf32, #tpu.memory_space<vmem>>, vector<1x8x128xf32>
    %27 = vector.shape_cast %26 : vector<1x8x128xf32> to vector<8x128xf32>
    %28 = vector.shape_cast %25 : vector<8x128xf32> to vector<1x8x128xf32>
    tpu.vector_store %arg6[%c0_31, %c256_32, %c0_33], %28 {strides = array<i32>} : memref<1x384x128xf32, #tpu.memory_space<vmem>>, vector<1x8x128xf32>,
    %c0_34 = arith.constant 0 : index
    %c320 = arith.constant 320 : index
    %c0_35 = arith.constant 0 : index
    %29 = vector.load %arg6[%c0_34, %c320, %c0_35] : memref<1x384x128xf32, #tpu.memory_space<vmem>>, vector<1x8x128xf32>
    %30 = vector.shape_cast %29 : vector<1x8x128xf32> to vector<8x128xf32>
    %cst_36 = arith.constant 1.000000e+00 : f32
    %cst_37 = arith.constant 0.000000e+00 : f32
    %31 = vector.broadcast %cst_36 : f32 to vector<1x8x128xf32>
    %32 = vector.broadcast %cst_37 : f32 to vector<1x8x128xf32>
    %33 = arith.select %18, %31, %32 : vector<1x8x128xi1>, vector<1x8x128xf32>
    %cst_38 = arith.constant dense<0.000000e+00> : vector<8x128xf32>
    %34 = vector.multi_reduction <add>, %33, %cst_38 [0] : vector<1x8x128xf32> to vector<8x128xf32>
    %35 = arith.addf %30, %34 : vector<8x128xf32>
    %c0_39 = arith.constant 0 : index
    %c320_40 = arith.constant 320 : index
    %c0_41 = arith.constant 0 : index
    %36 = vector.load %arg6[%c0_39, %c320_40, %c0_41] : memref<1x384x128xf32, #tpu.memory_space<vmem>>, vector<1x8x128xf32>
    %37 = vector.shape_cast %36 : vector<1x8x128xf32> to vector<8x128xf32>
    %38 = vector.shape_cast %35 : vector<8x128xf32> to vector<1x8x128xf32>
    tpu.vector_store %arg6[%c0_39, %c320_40, %c0_41], %38 {strides = array<i32>} : memref<1x384x128xf32, #tpu.memory_space<vmem>>, vector<1x8x128xf32>,
    %c1_i32 = arith.constant 1 : i32
    %39 = vector.broadcast %c1_i32 : i32 to vector<1x8x128xi32>
    %40 = arith.cmpi eq, %4, %39 : vector<1x8x128xi32>
    %c1_i32_42 = arith.constant 1 : i32
    %41 = vector.broadcast %c1_i32_42 : i32 to vector<1x8x128xi32>
    %42 = arith.cmpi eq, %6, %41 : vector<1x8x128xi32>
    %c0_43 = arith.constant 0 : index
    %c264 = arith.constant 264 : index
    %c0_44 = arith.constant 0 : index
    %43 = vector.load %arg6[%c0_43, %c264, %c0_44] : memref<1x384x128xf32, #tpu.memory_space<vmem>>, vector<1x8x128xf32>
    %44 = vector.shape_cast %43 : vector<1x8x128xf32> to vector<8x128xf32>
    %cst_45 = arith.constant 1.000000e+00 : f32
    %cst_46 = arith.constant 0.000000e+00 : f32
    %45 = vector.broadcast %cst_45 : f32 to vector<1x8x128xf32>
    %46 = vector.broadcast %cst_46 : f32 to vector<1x8x128xf32>
    %47 = arith.select %40, %45, %46 : vector<1x8x128xi1>, vector<1x8x128xf32>
    %cst_47 = arith.constant dense<0.000000e+00> : vector<8x128xf32>
    %48 = vector.multi_reduction <add>, %47, %cst_47 [0] : vector<1x8x128xf32> to vector<8x128xf32>
    %49 = arith.addf %44, %48 : vector<8x128xf32>
    %c0_48 = arith.constant 0 : index
    %c264_49 = arith.constant 264 : index
    %c0_50 = arith.constant 0 : index
    %50 = vector.load %arg6[%c0_48, %c264_49, %c0_50] : memref<1x384x128xf32, #tpu.memory_space<vmem>>, vector<1x8x128xf32>
    %51 = vector.shape_cast %50 : vector<1x8x128xf32> to vector<8x128xf32>
    %52 = vector.shape_cast %49 : vector<8x128xf32> to vector<1x8x128xf32>
    tpu.vector_store %arg6[%c0_48, %c264_49, %c0_50], %52 {strides = array<i32>} : memref<1x384x128xf32, #tpu.memory_space<vmem>>, vector<1x8x128xf32>,
    %c0_51 = arith.constant 0 : index
    %c328 = arith.constant 328 : index
    %c0_52 = arith.constant 0 : index
    %53 = vector.load %arg6[%c0_51, %c328, %c0_52] : memref<1x384x128xf32, #tpu.memory_space<vmem>>, vector<1x8x128xf32>
    %54 = vector.shape_cast %53 : vector<1x8x128xf32> to vector<8x128xf32>
    %cst_53 = arith.constant 1.000000e+00 : f32
    %cst_54 = arith.constant 0.000000e+00 : f32
    %55 = vector.broadcast %cst_53 : f32 to vector<1x8x128xf32>
    %56 = vector.broadcast %cst_54 : f32 to vector<1x8x128xf32>
    %57 = arith.select %42, %55, %56 : vector<1x8x128xi1>, vector<1x8x128xf32>
    %cst_55 = arith.constant dense<0.000000e+00> : vector<8x128xf32>
    %58 = vector.multi_reduction <add>, %57, %cst_55 [0] : vector<1x8x128xf32> to vector<8x128xf32>
    %59 = arith.addf %54, %58 : vector<8x128xf32>
    %c0_56 = arith.constant 0 : index
    %c328_57 = arith.constant 328 : index
    %c0_58 = arith.constant 0 : index
    %60 = vector.load %arg6[%c0_56, %c328_57, %c0_58] : memref<1x384x128xf32, #tpu.memory_space<vmem>>, vector<1x8x128xf32>
    %61 = vector.shape_cast %60 : vector<1x8x128xf32> to vector<8x128xf32>
    %62 = vector.shape_cast %59 : vector<8x128xf32> to vector<1x8x128xf32>
    tpu.vector_store %arg6[%c0_56, %c328_57, %c0_58], %62 {strides = array<i32>} : memref<1x384x128xf32, #tpu.memory_space<vmem>>, vector<1x8x128xf32>,
    %c0_59 = arith.constant 0 : index
    %c32 = arith.constant 32 : index
    %c0_60 = arith.constant 0 : index
    %63 = vector.load %arg6[%c0_59, %c32, %c0_60] : memref<1x384x128xf32, #tpu.memory_space<vmem>>, vector<1x8x128xf32>
    %64 = vector.shape_cast %63 : vector<1x8x128xf32> to vector<8x128xf32>
    %cst_61 = arith.constant 0.000000e+00 : f32
    %65 = vector.broadcast %cst_61 : f32 to vector<1x8x128xf32>
    %66 = arith.select %40, %8, %65 : vector<1x8x128xi1>, vector<1x8x128xf32>
    %cst_62 = arith.constant dense<0.000000e+00> : vector<8x128xf32>
    %67 = vector.multi_reduction <add>, %66, %cst_62 [0] : vector<1x8x128xf32> to vector<8x128xf32>
    %68 = arith.addf %64, %67 : vector<8x128xf32>
    %c0_63 = arith.constant 0 : index
    %c32_64 = arith.constant 32 : index
    %c0_65 = arith.constant 0 : index
    %69 = vector.load %arg6[%c0_63, %c32_64, %c0_65] : memref<1x384x128xf32, #tpu.memory_space<vmem>>, vector<1x8x128xf32>
    %70 = vector.shape_cast %69 : vector<1x8x128xf32> to vector<8x128xf32>
    %71 = vector.shape_cast %68 : vector<8x128xf32> to vector<1x8x128xf32>
    tpu.vector_store %arg6[%c0_63, %c32_64, %c0_65], %71 {strides = array<i32>} : memref<1x384x128xf32, #tpu.memory_space<vmem>>, vector<1x8x128xf32>,
    %c0_66 = arith.constant 0 : index
    %c40 = arith.constant 40 : index
    %c0_67 = arith.constant 0 : index
    %72 = vector.load %arg6[%c0_66, %c40, %c0_67] : memref<1x384x128xf32, #tpu.memory_space<vmem>>, vector<1x8x128xf32>
    %73 = vector.shape_cast %72 : vector<1x8x128xf32> to vector<8x128xf32>
    %cst_68 = arith.constant 0.000000e+00 : f32
    %74 = vector.broadcast %cst_68 : f32 to vector<1x8x128xf32>
    %75 = arith.select %40, %10, %74 : vector<1x8x128xi1>, vector<1x8x128xf32>
    %cst_69 = arith.constant dense<0.000000e+00> : vector<8x128xf32>
    %76 = vector.multi_reduction <add>, %75, %cst_69 [0] : vector<1x8x128xf32> to vector<8x128xf32>
    %77 = arith.addf %73, %76 : vector<8x128xf32>
    %c0_70 = arith.constant 0 : index
    %c40_71 = arith.constant 40 : index
    %c0_72 = arith.constant 0 : index
    %78 = vector.load %arg6[%c0_70, %c40_71, %c0_72] : memref<1x384x128xf32, #tpu.memory_space<vmem>>, vector<1x8x128xf32>
    %79 = vector.shape_cast %78 : vector<1x8x128xf32> to vector<8x128xf32>
    %80 = vector.shape_cast %77 : vector<8x128xf32> to vector<1x8x128xf32>
    tpu.vector_store %arg6[%c0_70, %c40_71, %c0_72], %80 {strides = array<i32>} : memref<1x384x128xf32, #tpu.memory_space<vmem>>, vector<1x8x128xf32>,
    %c0_73 = arith.constant 0 : index
    %c48 = arith.constant 48 : index
    %c0_74 = arith.constant 0 : index
    %81 = vector.load %arg6[%c0_73, %c48, %c0_74] : memref<1x384x128xf32, #tpu.memory_space<vmem>>, vector<1x8x128xf32>
    %82 = vector.shape_cast %81 : vector<1x8x128xf32> to vector<8x128xf32>
    %cst_75 = arith.constant 0.000000e+00 : f32
    %83 = vector.broadcast %cst_75 : f32 to vector<1x8x128xf32>
    %84 = arith.select %40, %12, %83 : vector<1x8x128xi1>, vector<1x8x128xf32>
    %cst_76 = arith.constant dense<0.000000e+00> : vector<8x128xf32>
    %85 = vector.multi_reduction <add>, %84, %cst_76 [0] : vector<1x8x128xf32> to vector<8x128xf32>
    %86 = arith.addf %82, %85 : vector<8x128xf32>
    %c0_77 = arith.constant 0 : index
    %c48_78 = arith.constant 48 : index
    %c0_79 = arith.constant 0 : index
    %87 = vector.load %arg6[%c0_77, %c48_78, %c0_79] : memref<1x384x128xf32, #tpu.memory_space<vmem>>, vector<1x8x128xf32>
    %88 = vector.shape_cast %87 : vector<1x8x128xf32> to vector<8x128xf32>
    %89 = vector.shape_cast %86 : vector<8x128xf32> to vector<1x8x128xf32>
    tpu.vector_store %arg6[%c0_77, %c48_78, %c0_79], %89 {strides = array<i32>} : memref<1x384x128xf32, #tpu.memory_space<vmem>>, vector<1x8x128xf32>,
    %c0_80 = arith.constant 0 : index
    %c56 = arith.constant 56 : index
    %c0_81 = arith.constant 0 : index
    %90 = vector.load %arg6[%c0_80, %c56, %c0_81] : memref<1x384x128xf32, #tpu.memory_space<vmem>>, vector<1x8x128xf32>
    %91 = vector.shape_cast %90 : vector<1x8x128xf32> to vector<8x128xf32>
    %cst_82 = arith.constant 0.000000e+00 : f32
    %92 = vector.broadcast %cst_82 : f32 to vector<1x8x128xf32>
    %93 = arith.select %40, %14, %92 : vector<1x8x128xi1>, vector<1x8x128xf32>
    %cst_83 = arith.constant dense<0.000000e+00> : vector<8x128xf32>
    %94 = vector.multi_reduction <add>, %93, %cst_83 [0] : vector<1x8x128xf32> to vector<8x128xf32>
    %95 = arith.addf %91, %94 : vector<8x128xf32>
    %c0_84 = arith.constant 0 : index
    %c56_85 = arith.constant 56 : index
    %c0_86 = arith.constant 0 : index
    %96 = vector.load %arg6[%c0_84, %c56_85, %c0_86] : memref<1x384x128xf32, #tpu.memory_space<vmem>>, vector<1x8x128xf32>
    %97 = vector.shape_cast %96 : vector<1x8x128xf32> to vector<8x128xf32>
    %98 = vector.shape_cast %95 : vector<8x128xf32> to vector<1x8x128xf32>
    tpu.vector_store %arg6[%c0_84, %c56_85, %c0_86], %98 {strides = array<i32>} : memref<1x384x128xf32, #tpu.memory_space<vmem>>, vector<1x8x128xf32>,
    %c2_i32 = arith.constant 2 : i32
    %99 = vector.broadcast %c2_i32 : i32 to vector<1x8x128xi32>
    %100 = arith.cmpi eq, %4, %99 : vector<1x8x128xi32>
    %c2_i32_87 = arith.constant 2 : i32
    %101 = vector.broadcast %c2_i32_87 : i32 to vector<1x8x128xi32>
    %102 = arith.cmpi eq, %6, %101 : vector<1x8x128xi32>
    %c0_88 = arith.constant 0 : index
    %c272 = arith.constant 272 : index
    %c0_89 = arith.constant 0 : index
    %103 = vector.load %arg6[%c0_88, %c272, %c0_89] : memref<1x384x128xf32, #tpu.memory_space<vmem>>, vector<1x8x128xf32>
    %104 = vector.shape_cast %103 : vector<1x8x128xf32> to vector<8x128xf32>
    %cst_90 = arith.constant 1.000000e+00 : f32
    %cst_91 = arith.constant 0.000000e+00 : f32
    %105 = vector.broadcast %cst_90 : f32 to vector<1x8x128xf32>
    %106 = vector.broadcast %cst_91 : f32 to vector<1x8x128xf32>
    %107 = arith.select %100, %105, %106 : vector<1x8x128xi1>, vector<1x8x128xf32>
    %cst_92 = arith.constant dense<0.000000e+00> : vector<8x128xf32>
    %108 = vector.multi_reduction <add>, %107, %cst_92 [0] : vector<1x8x128xf32> to vector<8x128xf32>
    %109 = arith.addf %104, %108 : vector<8x128xf32>
    %c0_93 = arith.constant 0 : index
    %c272_94 = arith.constant 272 : index
    %c0_95 = arith.constant 0 : index
    %110 = vector.load %arg6[%c0_93, %c272_94, %c0_95] : memref<1x384x128xf32, #tpu.memory_space<vmem>>, vector<1x8x128xf32>
    %111 = vector.shape_cast %110 : vector<1x8x128xf32> to vector<8x128xf32>
    %112 = vector.shape_cast %109 : vector<8x128xf32> to vector<1x8x128xf32>
    tpu.vector_store %arg6[%c0_93, %c272_94, %c0_95], %112 {strides = array<i32>} : memref<1x384x128xf32, #tpu.memory_space<vmem>>, vector<1x8x128xf32>,
    %c0_96 = arith.constant 0 : index
    %c336 = arith.constant 336 : index
    %c0_97 = arith.constant 0 : index
    %113 = vector.load %arg6[%c0_96, %c336, %c0_97] : memref<1x384x128xf32, #tpu.memory_space<vmem>>, vector<1x8x128xf32>
    %114 = vector.shape_cast %113 : vector<1x8x128xf32> to vector<8x128xf32>
    %cst_98 = arith.constant 1.000000e+00 : f32
    %cst_99 = arith.constant 0.000000e+00 : f32
    %115 = vector.broadcast %cst_98 : f32 to vector<1x8x128xf32>
    %116 = vector.broadcast %cst_99 : f32 to vector<1x8x128xf32>
    %117 = arith.select %102, %115, %116 : vector<1x8x128xi1>, vector<1x8x128xf32>
    %cst_100 = arith.constant dense<0.000000e+00> : vector<8x128xf32>
    %118 = vector.multi_reduction <add>, %117, %cst_100 [0] : vector<1x8x128xf32> to vector<8x128xf32>
    %119 = arith.addf %114, %118 : vector<8x128xf32>
    %c0_101 = arith.constant 0 : index
    %c336_102 = arith.constant 336 : index
    %c0_103 = arith.constant 0 : index
    %120 = vector.load %arg6[%c0_101, %c336_102, %c0_103] : memref<1x384x128xf32, #tpu.memory_space<vmem>>, vector<1x8x128xf32>
    %121 = vector.shape_cast %120 : vector<1x8x128xf32> to vector<8x128xf32>
    %122 = vector.shape_cast %119 : vector<8x128xf32> to vector<1x8x128xf32>
    tpu.vector_store %arg6[%c0_101, %c336_102, %c0_103], %122 {strides = array<i32>} : memref<1x384x128xf32, #tpu.memory_space<vmem>>, vector<1x8x128xf32>,
    %c0_104 = arith.constant 0 : index
    %c64 = arith.constant 64 : index
    %c0_105 = arith.constant 0 : index
    %123 = vector.load %arg6[%c0_104, %c64, %c0_105] : memref<1x384x128xf32, #tpu.memory_space<vmem>>, vector<1x8x128xf32>
    %124 = vector.shape_cast %123 : vector<1x8x128xf32> to vector<8x128xf32>
    %cst_106 = arith.constant 0.000000e+00 : f32
    %125 = vector.broadcast %cst_106 : f32 to vector<1x8x128xf32>
    %126 = arith.select %100, %8, %125 : vector<1x8x128xi1>, vector<1x8x128xf32>
    %cst_107 = arith.constant dense<0.000000e+00> : vector<8x128xf32>
    %127 = vector.multi_reduction <add>, %126, %cst_107 [0] : vector<1x8x128xf32> to vector<8x128xf32>
    %128 = arith.addf %124, %127 : vector<8x128xf32>
    %c0_108 = arith.constant 0 : index
    %c64_109 = arith.constant 64 : index
    %c0_110 = arith.constant 0 : index
    %129 = vector.load %arg6[%c0_108, %c64_109, %c0_110] : memref<1x384x128xf32, #tpu.memory_space<vmem>>, vector<1x8x128xf32>
    %130 = vector.shape_cast %129 : vector<1x8x128xf32> to vector<8x128xf32>
    %131 = vector.shape_cast %128 : vector<8x128xf32> to vector<1x8x128xf32>
    tpu.vector_store %arg6[%c0_108, %c64_109, %c0_110], %131 {strides = array<i32>} : memref<1x384x128xf32, #tpu.memory_space<vmem>>, vector<1x8x128xf32>,
    %c0_111 = arith.constant 0 : index
    %c72 = arith.constant 72 : index
    %c0_112 = arith.constant 0 : index
    %132 = vector.load %arg6[%c0_111, %c72, %c0_112] : memref<1x384x128xf32, #tpu.memory_space<vmem>>, vector<1x8x128xf32>
    %133 = vector.shape_cast %132 : vector<1x8x128xf32> to vector<8x128xf32>
    %cst_113 = arith.constant 0.000000e+00 : f32
    %134 = vector.broadcast %cst_113 : f32 to vector<1x8x128xf32>
    %135 = arith.select %100, %10, %134 : vector<1x8x128xi1>, vector<1x8x128xf32>
    %cst_114 = arith.constant dense<0.000000e+00> : vector<8x128xf32>
    %136 = vector.multi_reduction <add>, %135, %cst_114 [0] : vector<1x8x128xf32> to vector<8x128xf32>
    %137 = arith.addf %133, %136 : vector<8x128xf32>
    %c0_115 = arith.constant 0 : index
    %c72_116 = arith.constant 72 : index
    %c0_117 = arith.constant 0 : index
    %138 = vector.load %arg6[%c0_115, %c72_116, %c0_117] : memref<1x384x128xf32, #tpu.memory_space<vmem>>, vector<1x8x128xf32>
    %139 = vector.shape_cast %138 : vector<1x8x128xf32> to vector<8x128xf32>
    %140 = vector.shape_cast %137 : vector<8x128xf32> to vector<1x8x128xf32>
    tpu.vector_store %arg6[%c0_115, %c72_116, %c0_117], %140 {strides = array<i32>} : memref<1x384x128xf32, #tpu.memory_space<vmem>>, vector<1x8x128xf32>,
    %c0_118 = arith.constant 0 : index
    %c80 = arith.constant 80 : index
    %c0_119 = arith.constant 0 : index
    %141 = vector.load %arg6[%c0_118, %c80, %c0_119] : memref<1x384x128xf32, #tpu.memory_space<vmem>>, vector<1x8x128xf32>
    %142 = vector.shape_cast %141 : vector<1x8x128xf32> to vector<8x128xf32>
    %cst_120 = arith.constant 0.000000e+00 : f32
    %143 = vector.broadcast %cst_120 : f32 to vector<1x8x128xf32>
    %144 = arith.select %100, %12, %143 : vector<1x8x128xi1>, vector<1x8x128xf32>
    %cst_121 = arith.constant dense<0.000000e+00> : vector<8x128xf32>
    %145 = vector.multi_reduction <add>, %144, %cst_121 [0] : vector<1x8x128xf32> to vector<8x128xf32>
    %146 = arith.addf %142, %145 : vector<8x128xf32>
    %c0_122 = arith.constant 0 : index
    %c80_123 = arith.constant 80 : index
    %c0_124 = arith.constant 0 : index
    %147 = vector.load %arg6[%c0_122, %c80_123, %c0_124] : memref<1x384x128xf32, #tpu.memory_space<vmem>>, vector<1x8x128xf32>
    %148 = vector.shape_cast %147 : vector<1x8x128xf32> to vector<8x128xf32>
    %149 = vector.shape_cast %146 : vector<8x128xf32> to vector<1x8x128xf32>
    tpu.vector_store %arg6[%c0_122, %c80_123, %c0_124], %149 {strides = array<i32>} : memref<1x384x128xf32, #tpu.memory_space<vmem>>, vector<1x8x128xf32>,
    %c0_125 = arith.constant 0 : index
    %c88 = arith.constant 88 : index
    %c0_126 = arith.constant 0 : index
    %150 = vector.load %arg6[%c0_125, %c88, %c0_126] : memref<1x384x128xf32, #tpu.memory_space<vmem>>, vector<1x8x128xf32>
    %151 = vector.shape_cast %150 : vector<1x8x128xf32> to vector<8x128xf32>
    %cst_127 = arith.constant 0.000000e+00 : f32
    %152 = vector.broadcast %cst_127 : f32 to vector<1x8x128xf32>
    %153 = arith.select %100, %14, %152 : vector<1x8x128xi1>, vector<1x8x128xf32>
    %cst_128 = arith.constant dense<0.000000e+00> : vector<8x128xf32>
    %154 = vector.multi_reduction <add>, %153, %cst_128 [0] : vector<1x8x128xf32> to vector<8x128xf32>
    %155 = arith.addf %151, %154 : vector<8x128xf32>
    %c0_129 = arith.constant 0 : index
    %c88_130 = arith.constant 88 : index
    %c0_131 = arith.constant 0 : index
    %156 = vector.load %arg6[%c0_129, %c88_130, %c0_131] : memref<1x384x128xf32, #tpu.memory_space<vmem>>, vector<1x8x128xf32>
    %157 = vector.shape_cast %156 : vector<1x8x128xf32> to vector<8x128xf32>
    %158 = vector.shape_cast %155 : vector<8x128xf32> to vector<1x8x128xf32>
    tpu.vector_store %arg6[%c0_129, %c88_130, %c0_131], %158 {strides = array<i32>} : memref<1x384x128xf32, #tpu.memory_space<vmem>>, vector<1x8x128xf32>,
    %c3_i32 = arith.constant 3 : i32
    %159 = vector.broadcast %c3_i32 : i32 to vector<1x8x128xi32>
    %160 = arith.cmpi eq, %4, %159 : vector<1x8x128xi32>
    %c3_i32_132 = arith.constant 3 : i32
    %161 = vector.broadcast %c3_i32_132 : i32 to vector<1x8x128xi32>
    %162 = arith.cmpi eq, %6, %161 : vector<1x8x128xi32>
    %c0_133 = arith.constant 0 : index
    %c280 = arith.constant 280 : index
    %c0_134 = arith.constant 0 : index
    %163 = vector.load %arg6[%c0_133, %c280, %c0_134] : memref<1x384x128xf32, #tpu.memory_space<vmem>>, vector<1x8x128xf32>
    %164 = vector.shape_cast %163 : vector<1x8x128xf32> to vector<8x128xf32>
    %cst_135 = arith.constant 1.000000e+00 : f32
    %cst_136 = arith.constant 0.000000e+00 : f32
    %165 = vector.broadcast %cst_135 : f32 to vector<1x8x128xf32>
    %166 = vector.broadcast %cst_136 : f32 to vector<1x8x128xf32>
    %167 = arith.select %160, %165, %166 : vector<1x8x128xi1>, vector<1x8x128xf32>
    %cst_137 = arith.constant dense<0.000000e+00> : vector<8x128xf32>
    %168 = vector.multi_reduction <add>, %167, %cst_137 [0] : vector<1x8x128xf32> to vector<8x128xf32>
    %169 = arith.addf %164, %168 : vector<8x128xf32>
    %c0_138 = arith.constant 0 : index
    %c280_139 = arith.constant 280 : index
    %c0_140 = arith.constant 0 : index
    %170 = vector.load %arg6[%c0_138, %c280_139, %c0_140] : memref<1x384x128xf32, #tpu.memory_space<vmem>>, vector<1x8x128xf32>
    %171 = vector.shape_cast %170 : vector<1x8x128xf32> to vector<8x128xf32>
    %172 = vector.shape_cast %169 : vector<8x128xf32> to vector<1x8x128xf32>
    tpu.vector_store %arg6[%c0_138, %c280_139, %c0_140], %172 {strides = array<i32>} : memref<1x384x128xf32, #tpu.memory_space<vmem>>, vector<1x8x128xf32>,
    %c0_141 = arith.constant 0 : index
    %c344 = arith.constant 344 : index
    %c0_142 = arith.constant 0 : index
    %173 = vector.load %arg6[%c0_141, %c344, %c0_142] : memref<1x384x128xf32, #tpu.memory_space<vmem>>, vector<1x8x128xf32>
    %174 = vector.shape_cast %173 : vector<1x8x128xf32> to vector<8x128xf32>
    %cst_143 = arith.constant 1.000000e+00 : f32
    %cst_144 = arith.constant 0.000000e+00 : f32
    %175 = vector.broadcast %cst_143 : f32 to vector<1x8x128xf32>
    %176 = vector.broadcast %cst_144 : f32 to vector<1x8x128xf32>
    %177 = arith.select %162, %175, %176 : vector<1x8x128xi1>, vector<1x8x128xf32>
    %cst_145 = arith.constant dense<0.000000e+00> : vector<8x128xf32>
    %178 = vector.multi_reduction <add>, %177, %cst_145 [0] : vector<1x8x128xf32> to vector<8x128xf32>
    %179 = arith.addf %174, %178 : vector<8x128xf32>
    %c0_146 = arith.constant 0 : index
    %c344_147 = arith.constant 344 : index
    %c0_148 = arith.constant 0 : index
    %180 = vector.load %arg6[%c0_146, %c344_147, %c0_148] : memref<1x384x128xf32, #tpu.memory_space<vmem>>, vector<1x8x128xf32>
    %181 = vector.shape_cast %180 : vector<1x8x128xf32> to vector<8x128xf32>
    %182 = vector.shape_cast %179 : vector<8x128xf32> to vector<1x8x128xf32>
    tpu.vector_store %arg6[%c0_146, %c344_147, %c0_148], %182 {strides = array<i32>} : memref<1x384x128xf32, #tpu.memory_space<vmem>>, vector<1x8x128xf32>,
    %c0_149 = arith.constant 0 : index
    %c96 = arith.constant 96 : index
    %c0_150 = arith.constant 0 : index
    %183 = vector.load %arg6[%c0_149, %c96, %c0_150] : memref<1x384x128xf32, #tpu.memory_space<vmem>>, vector<1x8x128xf32>
    %184 = vector.shape_cast %183 : vector<1x8x128xf32> to vector<8x128xf32>
    %cst_151 = arith.constant 0.000000e+00 : f32
    %185 = vector.broadcast %cst_151 : f32 to vector<1x8x128xf32>
    %186 = arith.select %160, %8, %185 : vector<1x8x128xi1>, vector<1x8x128xf32>
    %cst_152 = arith.constant dense<0.000000e+00> : vector<8x128xf32>
    %187 = vector.multi_reduction <add>, %186, %cst_152 [0] : vector<1x8x128xf32> to vector<8x128xf32>
    %188 = arith.addf %184, %187 : vector<8x128xf32>
    %c0_153 = arith.constant 0 : index
    %c96_154 = arith.constant 96 : index
    %c0_155 = arith.constant 0 : index
    %189 = vector.load %arg6[%c0_153, %c96_154, %c0_155] : memref<1x384x128xf32, #tpu.memory_space<vmem>>, vector<1x8x128xf32>
    %190 = vector.shape_cast %189 : vector<1x8x128xf32> to vector<8x128xf32>
    %191 = vector.shape_cast %188 : vector<8x128xf32> to vector<1x8x128xf32>
    tpu.vector_store %arg6[%c0_153, %c96_154, %c0_155], %191 {strides = array<i32>} : memref<1x384x128xf32, #tpu.memory_space<vmem>>, vector<1x8x128xf32>,
    %c0_156 = arith.constant 0 : index
    %c104 = arith.constant 104 : index
    %c0_157 = arith.constant 0 : index
    %192 = vector.load %arg6[%c0_156, %c104, %c0_157] : memref<1x384x128xf32, #tpu.memory_space<vmem>>, vector<1x8x128xf32>
    %193 = vector.shape_cast %192 : vector<1x8x128xf32> to vector<8x128xf32>
    %cst_158 = arith.constant 0.000000e+00 : f32
    %194 = vector.broadcast %cst_158 : f32 to vector<1x8x128xf32>
    %195 = arith.select %160, %10, %194 : vector<1x8x128xi1>, vector<1x8x128xf32>
    %cst_159 = arith.constant dense<0.000000e+00> : vector<8x128xf32>
    %196 = vector.multi_reduction <add>, %195, %cst_159 [0] : vector<1x8x128xf32> to vector<8x128xf32>
    %197 = arith.addf %193, %196 : vector<8x128xf32>
    %c0_160 = arith.constant 0 : index
    %c104_161 = arith.constant 104 : index
    %c0_162 = arith.constant 0 : index
    %198 = vector.load %arg6[%c0_160, %c104_161, %c0_162] : memref<1x384x128xf32, #tpu.memory_space<vmem>>, vector<1x8x128xf32>
    %199 = vector.shape_cast %198 : vector<1x8x128xf32> to vector<8x128xf32>
    %200 = vector.shape_cast %197 : vector<8x128xf32> to vector<1x8x128xf32>
    tpu.vector_store %arg6[%c0_160, %c104_161, %c0_162], %200 {strides = array<i32>} : memref<1x384x128xf32, #tpu.memory_space<vmem>>, vector<1x8x128xf32>,
    %c0_163 = arith.constant 0 : index
    %c112 = arith.constant 112 : index
    %c0_164 = arith.constant 0 : index
    %201 = vector.load %arg6[%c0_163, %c112, %c0_164] : memref<1x384x128xf32, #tpu.memory_space<vmem>>, vector<1x8x128xf32>
    %202 = vector.shape_cast %201 : vector<1x8x128xf32> to vector<8x128xf32>
    %cst_165 = arith.constant 0.000000e+00 : f32
    %203 = vector.broadcast %cst_165 : f32 to vector<1x8x128xf32>
    %204 = arith.select %160, %12, %203 : vector<1x8x128xi1>, vector<1x8x128xf32>
    %cst_166 = arith.constant dense<0.000000e+00> : vector<8x128xf32>
    %205 = vector.multi_reduction <add>, %204, %cst_166 [0] : vector<1x8x128xf32> to vector<8x128xf32>
    %206 = arith.addf %202, %205 : vector<8x128xf32>
    %c0_167 = arith.constant 0 : index
    %c112_168 = arith.constant 112 : index
    %c0_169 = arith.constant 0 : index
    %207 = vector.load %arg6[%c0_167, %c112_168, %c0_169] : memref<1x384x128xf32, #tpu.memory_space<vmem>>, vector<1x8x128xf32>
    %208 = vector.shape_cast %207 : vector<1x8x128xf32> to vector<8x128xf32>
    %209 = vector.shape_cast %206 : vector<8x128xf32> to vector<1x8x128xf32>
    tpu.vector_store %arg6[%c0_167, %c112_168, %c0_169], %209 {strides = array<i32>} : memref<1x384x128xf32, #tpu.memory_space<vmem>>, vector<1x8x128xf32>,
    %c0_170 = arith.constant 0 : index
    %c120 = arith.constant 120 : index
    %c0_171 = arith.constant 0 : index
    %210 = vector.load %arg6[%c0_170, %c120, %c0_171] : memref<1x384x128xf32, #tpu.memory_space<vmem>>, vector<1x8x128xf32>
    %211 = vector.shape_cast %210 : vector<1x8x128xf32> to vector<8x128xf32>
    %cst_172 = arith.constant 0.000000e+00 : f32
    %212 = vector.broadcast %cst_172 : f32 to vector<1x8x128xf32>
    %213 = arith.select %160, %14, %212 : vector<1x8x128xi1>, vector<1x8x128xf32>
    %cst_173 = arith.constant dense<0.000000e+00> : vector<8x128xf32>
    %214 = vector.multi_reduction <add>, %213, %cst_173 [0] : vector<1x8x128xf32> to vector<8x128xf32>
    %215 = arith.addf %211, %214 : vector<8x128xf32>
    %c0_174 = arith.constant 0 : index
    %c120_175 = arith.constant 120 : index
    %c0_176 = arith.constant 0 : index
    %216 = vector.load %arg6[%c0_174, %c120_175, %c0_176] : memref<1x384x128xf32, #tpu.memory_space<vmem>>, vector<1x8x128xf32>
    %217 = vector.shape_cast %216 : vector<1x8x128xf32> to vector<8x128xf32>
    %218 = vector.shape_cast %215 : vector<8x128xf32> to vector<1x8x128xf32>
    tpu.vector_store %arg6[%c0_174, %c120_175, %c0_176], %218 {strides = array<i32>} : memref<1x384x128xf32, #tpu.memory_space<vmem>>, vector<1x8x128xf32>,
    %c4_i32 = arith.constant 4 : i32
    %219 = vector.broadcast %c4_i32 : i32 to vector<1x8x128xi32>
    %220 = arith.cmpi eq, %4, %219 : vector<1x8x128xi32>
    %c4_i32_177 = arith.constant 4 : i32
    %221 = vector.broadcast %c4_i32_177 : i32 to vector<1x8x128xi32>
    %222 = arith.cmpi eq, %6, %221 : vector<1x8x128xi32>
    %c0_178 = arith.constant 0 : index
    %c288 = arith.constant 288 : index
    %c0_179 = arith.constant 0 : index
    %223 = vector.load %arg6[%c0_178, %c288, %c0_179] : memref<1x384x128xf32, #tpu.memory_space<vmem>>, vector<1x8x128xf32>
    %224 = vector.shape_cast %223 : vector<1x8x128xf32> to vector<8x128xf32>
    %cst_180 = arith.constant 1.000000e+00 : f32
    %cst_181 = arith.constant 0.000000e+00 : f32
    %225 = vector.broadcast %cst_180 : f32 to vector<1x8x128xf32>
    %226 = vector.broadcast %cst_181 : f32 to vector<1x8x128xf32>
    %227 = arith.select %220, %225, %226 : vector<1x8x128xi1>, vector<1x8x128xf32>
    %cst_182 = arith.constant dense<0.000000e+00> : vector<8x128xf32>
    %228 = vector.multi_reduction <add>, %227, %cst_182 [0] : vector<1x8x128xf32> to vector<8x128xf32>
    %229 = arith.addf %224, %228 : vector<8x128xf32>
    %c0_183 = arith.constant 0 : index
    %c288_184 = arith.constant 288 : index
    %c0_185 = arith.constant 0 : index
    %230 = vector.load %arg6[%c0_183, %c288_184, %c0_185] : memref<1x384x128xf32, #tpu.memory_space<vmem>>, vector<1x8x128xf32>
    %231 = vector.shape_cast %230 : vector<1x8x128xf32> to vector<8x128xf32>
    %232 = vector.shape_cast %229 : vector<8x128xf32> to vector<1x8x128xf32>
    tpu.vector_store %arg6[%c0_183, %c288_184, %c0_185], %232 {strides = array<i32>} : memref<1x384x128xf32, #tpu.memory_space<vmem>>, vector<1x8x128xf32>,
    %c0_186 = arith.constant 0 : index
    %c352 = arith.constant 352 : index
    %c0_187 = arith.constant 0 : index
    %233 = vector.load %arg6[%c0_186, %c352, %c0_187] : memref<1x384x128xf32, #tpu.memory_space<vmem>>, vector<1x8x128xf32>
    %234 = vector.shape_cast %233 : vector<1x8x128xf32> to vector<8x128xf32>
    %cst_188 = arith.constant 1.000000e+00 : f32
    %cst_189 = arith.constant 0.000000e+00 : f32
    %235 = vector.broadcast %cst_188 : f32 to vector<1x8x128xf32>
    %236 = vector.broadcast %cst_189 : f32 to vector<1x8x128xf32>
    %237 = arith.select %222, %235, %236 : vector<1x8x128xi1>, vector<1x8x128xf32>
    %cst_190 = arith.constant dense<0.000000e+00> : vector<8x128xf32>
    %238 = vector.multi_reduction <add>, %237, %cst_190 [0] : vector<1x8x128xf32> to vector<8x128xf32>
    %239 = arith.addf %234, %238 : vector<8x128xf32>
    %c0_191 = arith.constant 0 : index
    %c352_192 = arith.constant 352 : index
    %c0_193 = arith.constant 0 : index
    %240 = vector.load %arg6[%c0_191, %c352_192, %c0_193] : memref<1x384x128xf32, #tpu.memory_space<vmem>>, vector<1x8x128xf32>
    %241 = vector.shape_cast %240 : vector<1x8x128xf32> to vector<8x128xf32>
    %242 = vector.shape_cast %239 : vector<8x128xf32> to vector<1x8x128xf32>
    tpu.vector_store %arg6[%c0_191, %c352_192, %c0_193], %242 {strides = array<i32>} : memref<1x384x128xf32, #tpu.memory_space<vmem>>, vector<1x8x128xf32>,
    %c0_194 = arith.constant 0 : index
    %c128 = arith.constant 128 : index
    %c0_195 = arith.constant 0 : index
    %243 = vector.load %arg6[%c0_194, %c128, %c0_195] : memref<1x384x128xf32, #tpu.memory_space<vmem>>, vector<1x8x128xf32>
    %244 = vector.shape_cast %243 : vector<1x8x128xf32> to vector<8x128xf32>
    %cst_196 = arith.constant 0.000000e+00 : f32
    %245 = vector.broadcast %cst_196 : f32 to vector<1x8x128xf32>
    %246 = arith.select %220, %8, %245 : vector<1x8x128xi1>, vector<1x8x128xf32>
    %cst_197 = arith.constant dense<0.000000e+00> : vector<8x128xf32>
    %247 = vector.multi_reduction <add>, %246, %cst_197 [0] : vector<1x8x128xf32> to vector<8x128xf32>
    %248 = arith.addf %244, %247 : vector<8x128xf32>
    %c0_198 = arith.constant 0 : index
    %c128_199 = arith.constant 128 : index
    %c0_200 = arith.constant 0 : index
    %249 = vector.load %arg6[%c0_198, %c128_199, %c0_200] : memref<1x384x128xf32, #tpu.memory_space<vmem>>, vector<1x8x128xf32>
    %250 = vector.shape_cast %249 : vector<1x8x128xf32> to vector<8x128xf32>
    %251 = vector.shape_cast %248 : vector<8x128xf32> to vector<1x8x128xf32>
    tpu.vector_store %arg6[%c0_198, %c128_199, %c0_200], %251 {strides = array<i32>} : memref<1x384x128xf32, #tpu.memory_space<vmem>>, vector<1x8x128xf32>,
    %c0_201 = arith.constant 0 : index
    %c136 = arith.constant 136 : index
    %c0_202 = arith.constant 0 : index
    %252 = vector.load %arg6[%c0_201, %c136, %c0_202] : memref<1x384x128xf32, #tpu.memory_space<vmem>>, vector<1x8x128xf32>
    %253 = vector.shape_cast %252 : vector<1x8x128xf32> to vector<8x128xf32>
    %cst_203 = arith.constant 0.000000e+00 : f32
    %254 = vector.broadcast %cst_203 : f32 to vector<1x8x128xf32>
    %255 = arith.select %220, %10, %254 : vector<1x8x128xi1>, vector<1x8x128xf32>
    %cst_204 = arith.constant dense<0.000000e+00> : vector<8x128xf32>
    %256 = vector.multi_reduction <add>, %255, %cst_204 [0] : vector<1x8x128xf32> to vector<8x128xf32>
    %257 = arith.addf %253, %256 : vector<8x128xf32>
    %c0_205 = arith.constant 0 : index
    %c136_206 = arith.constant 136 : index
    %c0_207 = arith.constant 0 : index
    %258 = vector.load %arg6[%c0_205, %c136_206, %c0_207] : memref<1x384x128xf32, #tpu.memory_space<vmem>>, vector<1x8x128xf32>
    %259 = vector.shape_cast %258 : vector<1x8x128xf32> to vector<8x128xf32>
    %260 = vector.shape_cast %257 : vector<8x128xf32> to vector<1x8x128xf32>
    tpu.vector_store %arg6[%c0_205, %c136_206, %c0_207], %260 {strides = array<i32>} : memref<1x384x128xf32, #tpu.memory_space<vmem>>, vector<1x8x128xf32>,
    %c0_208 = arith.constant 0 : index
    %c144 = arith.constant 144 : index
    %c0_209 = arith.constant 0 : index
    %261 = vector.load %arg6[%c0_208, %c144, %c0_209] : memref<1x384x128xf32, #tpu.memory_space<vmem>>, vector<1x8x128xf32>
    %262 = vector.shape_cast %261 : vector<1x8x128xf32> to vector<8x128xf32>
    %cst_210 = arith.constant 0.000000e+00 : f32
    %263 = vector.broadcast %cst_210 : f32 to vector<1x8x128xf32>
    %264 = arith.select %220, %12, %263 : vector<1x8x128xi1>, vector<1x8x128xf32>
    %cst_211 = arith.constant dense<0.000000e+00> : vector<8x128xf32>
    %265 = vector.multi_reduction <add>, %264, %cst_211 [0] : vector<1x8x128xf32> to vector<8x128xf32>
    %266 = arith.addf %262, %265 : vector<8x128xf32>
    %c0_212 = arith.constant 0 : index
    %c144_213 = arith.constant 144 : index
    %c0_214 = arith.constant 0 : index
    %267 = vector.load %arg6[%c0_212, %c144_213, %c0_214] : memref<1x384x128xf32, #tpu.memory_space<vmem>>, vector<1x8x128xf32>
    %268 = vector.shape_cast %267 : vector<1x8x128xf32> to vector<8x128xf32>
    %269 = vector.shape_cast %266 : vector<8x128xf32> to vector<1x8x128xf32>
    tpu.vector_store %arg6[%c0_212, %c144_213, %c0_214], %269 {strides = array<i32>} : memref<1x384x128xf32, #tpu.memory_space<vmem>>, vector<1x8x128xf32>,
    %c0_215 = arith.constant 0 : index
    %c152 = arith.constant 152 : index
    %c0_216 = arith.constant 0 : index
    %270 = vector.load %arg6[%c0_215, %c152, %c0_216] : memref<1x384x128xf32, #tpu.memory_space<vmem>>, vector<1x8x128xf32>
    %271 = vector.shape_cast %270 : vector<1x8x128xf32> to vector<8x128xf32>
    %cst_217 = arith.constant 0.000000e+00 : f32
    %272 = vector.broadcast %cst_217 : f32 to vector<1x8x128xf32>
    %273 = arith.select %220, %14, %272 : vector<1x8x128xi1>, vector<1x8x128xf32>
    %cst_218 = arith.constant dense<0.000000e+00> : vector<8x128xf32>
    %274 = vector.multi_reduction <add>, %273, %cst_218 [0] : vector<1x8x128xf32> to vector<8x128xf32>
    %275 = arith.addf %271, %274 : vector<8x128xf32>
    %c0_219 = arith.constant 0 : index
    %c152_220 = arith.constant 152 : index
    %c0_221 = arith.constant 0 : index
    %276 = vector.load %arg6[%c0_219, %c152_220, %c0_221] : memref<1x384x128xf32, #tpu.memory_space<vmem>>, vector<1x8x128xf32>
    %277 = vector.shape_cast %276 : vector<1x8x128xf32> to vector<8x128xf32>
    %278 = vector.shape_cast %275 : vector<8x128xf32> to vector<1x8x128xf32>
    tpu.vector_store %arg6[%c0_219, %c152_220, %c0_221], %278 {strides = array<i32>} : memref<1x384x128xf32, #tpu.memory_space<vmem>>, vector<1x8x128xf32>,
    %c5_i32 = arith.constant 5 : i32
    %279 = vector.broadcast %c5_i32 : i32 to vector<1x8x128xi32>
    %280 = arith.cmpi eq, %4, %279 : vector<1x8x128xi32>
    %c5_i32_222 = arith.constant 5 : i32
    %281 = vector.broadcast %c5_i32_222 : i32 to vector<1x8x128xi32>
    %282 = arith.cmpi eq, %6, %281 : vector<1x8x128xi32>
    %c0_223 = arith.constant 0 : index
    %c296 = arith.constant 296 : index
    %c0_224 = arith.constant 0 : index
    %283 = vector.load %arg6[%c0_223, %c296, %c0_224] : memref<1x384x128xf32, #tpu.memory_space<vmem>>, vector<1x8x128xf32>
    %284 = vector.shape_cast %283 : vector<1x8x128xf32> to vector<8x128xf32>
    %cst_225 = arith.constant 1.000000e+00 : f32
    %cst_226 = arith.constant 0.000000e+00 : f32
    %285 = vector.broadcast %cst_225 : f32 to vector<1x8x128xf32>
    %286 = vector.broadcast %cst_226 : f32 to vector<1x8x128xf32>
    %287 = arith.select %280, %285, %286 : vector<1x8x128xi1>, vector<1x8x128xf32>
    %cst_227 = arith.constant dense<0.000000e+00> : vector<8x128xf32>
    %288 = vector.multi_reduction <add>, %287, %cst_227 [0] : vector<1x8x128xf32> to vector<8x128xf32>
    %289 = arith.addf %284, %288 : vector<8x128xf32>
    %c0_228 = arith.constant 0 : index
    %c296_229 = arith.constant 296 : index
    %c0_230 = arith.constant 0 : index
    %290 = vector.load %arg6[%c0_228, %c296_229, %c0_230] : memref<1x384x128xf32, #tpu.memory_space<vmem>>, vector<1x8x128xf32>
    %291 = vector.shape_cast %290 : vector<1x8x128xf32> to vector<8x128xf32>
    %292 = vector.shape_cast %289 : vector<8x128xf32> to vector<1x8x128xf32>
    tpu.vector_store %arg6[%c0_228, %c296_229, %c0_230], %292 {strides = array<i32>} : memref<1x384x128xf32, #tpu.memory_space<vmem>>, vector<1x8x128xf32>,
    %c0_231 = arith.constant 0 : index
    %c360 = arith.constant 360 : index
    %c0_232 = arith.constant 0 : index
    %293 = vector.load %arg6[%c0_231, %c360, %c0_232] : memref<1x384x128xf32, #tpu.memory_space<vmem>>, vector<1x8x128xf32>
    %294 = vector.shape_cast %293 : vector<1x8x128xf32> to vector<8x128xf32>
    %cst_233 = arith.constant 1.000000e+00 : f32
    %cst_234 = arith.constant 0.000000e+00 : f32
    %295 = vector.broadcast %cst_233 : f32 to vector<1x8x128xf32>
    %296 = vector.broadcast %cst_234 : f32 to vector<1x8x128xf32>
    %297 = arith.select %282, %295, %296 : vector<1x8x128xi1>, vector<1x8x128xf32>
    %cst_235 = arith.constant dense<0.000000e+00> : vector<8x128xf32>
    %298 = vector.multi_reduction <add>, %297, %cst_235 [0] : vector<1x8x128xf32> to vector<8x128xf32>
    %299 = arith.addf %294, %298 : vector<8x128xf32>
    %c0_236 = arith.constant 0 : index
    %c360_237 = arith.constant 360 : index
    %c0_238 = arith.constant 0 : index
    %300 = vector.load %arg6[%c0_236, %c360_237, %c0_238] : memref<1x384x128xf32, #tpu.memory_space<vmem>>, vector<1x8x128xf32>
    %301 = vector.shape_cast %300 : vector<1x8x128xf32> to vector<8x128xf32>
    %302 = vector.shape_cast %299 : vector<8x128xf32> to vector<1x8x128xf32>
    tpu.vector_store %arg6[%c0_236, %c360_237, %c0_238], %302 {strides = array<i32>} : memref<1x384x128xf32, #tpu.memory_space<vmem>>, vector<1x8x128xf32>,
    %c0_239 = arith.constant 0 : index
    %c160 = arith.constant 160 : index
    %c0_240 = arith.constant 0 : index
    %303 = vector.load %arg6[%c0_239, %c160, %c0_240] : memref<1x384x128xf32, #tpu.memory_space<vmem>>, vector<1x8x128xf32>
    %304 = vector.shape_cast %303 : vector<1x8x128xf32> to vector<8x128xf32>
    %cst_241 = arith.constant 0.000000e+00 : f32
    %305 = vector.broadcast %cst_241 : f32 to vector<1x8x128xf32>
    %306 = arith.select %280, %8, %305 : vector<1x8x128xi1>, vector<1x8x128xf32>
    %cst_242 = arith.constant dense<0.000000e+00> : vector<8x128xf32>
    %307 = vector.multi_reduction <add>, %306, %cst_242 [0] : vector<1x8x128xf32> to vector<8x128xf32>
    %308 = arith.addf %304, %307 : vector<8x128xf32>
    %c0_243 = arith.constant 0 : index
    %c160_244 = arith.constant 160 : index
    %c0_245 = arith.constant 0 : index
    %309 = vector.load %arg6[%c0_243, %c160_244, %c0_245] : memref<1x384x128xf32, #tpu.memory_space<vmem>>, vector<1x8x128xf32>
    %310 = vector.shape_cast %309 : vector<1x8x128xf32> to vector<8x128xf32>
    %311 = vector.shape_cast %308 : vector<8x128xf32> to vector<1x8x128xf32>
    tpu.vector_store %arg6[%c0_243, %c160_244, %c0_245], %311 {strides = array<i32>} : memref<1x384x128xf32, #tpu.memory_space<vmem>>, vector<1x8x128xf32>,
    %c0_246 = arith.constant 0 : index
    %c168 = arith.constant 168 : index
    %c0_247 = arith.constant 0 : index
    %312 = vector.load %arg6[%c0_246, %c168, %c0_247] : memref<1x384x128xf32, #tpu.memory_space<vmem>>, vector<1x8x128xf32>
    %313 = vector.shape_cast %312 : vector<1x8x128xf32> to vector<8x128xf32>
    %cst_248 = arith.constant 0.000000e+00 : f32
    %314 = vector.broadcast %cst_248 : f32 to vector<1x8x128xf32>
    %315 = arith.select %280, %10, %314 : vector<1x8x128xi1>, vector<1x8x128xf32>
    %cst_249 = arith.constant dense<0.000000e+00> : vector<8x128xf32>
    %316 = vector.multi_reduction <add>, %315, %cst_249 [0] : vector<1x8x128xf32> to vector<8x128xf32>
    %317 = arith.addf %313, %316 : vector<8x128xf32>
    %c0_250 = arith.constant 0 : index
    %c168_251 = arith.constant 168 : index
    %c0_252 = arith.constant 0 : index
    %318 = vector.load %arg6[%c0_250, %c168_251, %c0_252] : memref<1x384x128xf32, #tpu.memory_space<vmem>>, vector<1x8x128xf32>
    %319 = vector.shape_cast %318 : vector<1x8x128xf32> to vector<8x128xf32>
    %320 = vector.shape_cast %317 : vector<8x128xf32> to vector<1x8x128xf32>
    tpu.vector_store %arg6[%c0_250, %c168_251, %c0_252], %320 {strides = array<i32>} : memref<1x384x128xf32, #tpu.memory_space<vmem>>, vector<1x8x128xf32>,
    %c0_253 = arith.constant 0 : index
    %c176 = arith.constant 176 : index
    %c0_254 = arith.constant 0 : index
    %321 = vector.load %arg6[%c0_253, %c176, %c0_254] : memref<1x384x128xf32, #tpu.memory_space<vmem>>, vector<1x8x128xf32>
    %322 = vector.shape_cast %321 : vector<1x8x128xf32> to vector<8x128xf32>
    %cst_255 = arith.constant 0.000000e+00 : f32
    %323 = vector.broadcast %cst_255 : f32 to vector<1x8x128xf32>
    %324 = arith.select %280, %12, %323 : vector<1x8x128xi1>, vector<1x8x128xf32>
    %cst_256 = arith.constant dense<0.000000e+00> : vector<8x128xf32>
    %325 = vector.multi_reduction <add>, %324, %cst_256 [0] : vector<1x8x128xf32> to vector<8x128xf32>
    %326 = arith.addf %322, %325 : vector<8x128xf32>
    %c0_257 = arith.constant 0 : index
    %c176_258 = arith.constant 176 : index
    %c0_259 = arith.constant 0 : index
    %327 = vector.load %arg6[%c0_257, %c176_258, %c0_259] : memref<1x384x128xf32, #tpu.memory_space<vmem>>, vector<1x8x128xf32>
    %328 = vector.shape_cast %327 : vector<1x8x128xf32> to vector<8x128xf32>
    %329 = vector.shape_cast %326 : vector<8x128xf32> to vector<1x8x128xf32>
    tpu.vector_store %arg6[%c0_257, %c176_258, %c0_259], %329 {strides = array<i32>} : memref<1x384x128xf32, #tpu.memory_space<vmem>>, vector<1x8x128xf32>,
    %c0_260 = arith.constant 0 : index
    %c184 = arith.constant 184 : index
    %c0_261 = arith.constant 0 : index
    %330 = vector.load %arg6[%c0_260, %c184, %c0_261] : memref<1x384x128xf32, #tpu.memory_space<vmem>>, vector<1x8x128xf32>
    %331 = vector.shape_cast %330 : vector<1x8x128xf32> to vector<8x128xf32>
    %cst_262 = arith.constant 0.000000e+00 : f32
    %332 = vector.broadcast %cst_262 : f32 to vector<1x8x128xf32>
    %333 = arith.select %280, %14, %332 : vector<1x8x128xi1>, vector<1x8x128xf32>
    %cst_263 = arith.constant dense<0.000000e+00> : vector<8x128xf32>
    %334 = vector.multi_reduction <add>, %333, %cst_263 [0] : vector<1x8x128xf32> to vector<8x128xf32>
    %335 = arith.addf %331, %334 : vector<8x128xf32>
    %c0_264 = arith.constant 0 : index
    %c184_265 = arith.constant 184 : index
    %c0_266 = arith.constant 0 : index
    %336 = vector.load %arg6[%c0_264, %c184_265, %c0_266] : memref<1x384x128xf32, #tpu.memory_space<vmem>>, vector<1x8x128xf32>
    %337 = vector.shape_cast %336 : vector<1x8x128xf32> to vector<8x128xf32>
    %338 = vector.shape_cast %335 : vector<8x128xf32> to vector<1x8x128xf32>
    tpu.vector_store %arg6[%c0_264, %c184_265, %c0_266], %338 {strides = array<i32>} : memref<1x384x128xf32, #tpu.memory_space<vmem>>, vector<1x8x128xf32>,
    %c6_i32 = arith.constant 6 : i32
    %339 = vector.broadcast %c6_i32 : i32 to vector<1x8x128xi32>
    %340 = arith.cmpi eq, %4, %339 : vector<1x8x128xi32>
    %c6_i32_267 = arith.constant 6 : i32
    %341 = vector.broadcast %c6_i32_267 : i32 to vector<1x8x128xi32>
    %342 = arith.cmpi eq, %6, %341 : vector<1x8x128xi32>
    %c0_268 = arith.constant 0 : index
    %c304 = arith.constant 304 : index
    %c0_269 = arith.constant 0 : index
    %343 = vector.load %arg6[%c0_268, %c304, %c0_269] : memref<1x384x128xf32, #tpu.memory_space<vmem>>, vector<1x8x128xf32>
    %344 = vector.shape_cast %343 : vector<1x8x128xf32> to vector<8x128xf32>
    %cst_270 = arith.constant 1.000000e+00 : f32
    %cst_271 = arith.constant 0.000000e+00 : f32
    %345 = vector.broadcast %cst_270 : f32 to vector<1x8x128xf32>
    %346 = vector.broadcast %cst_271 : f32 to vector<1x8x128xf32>
    %347 = arith.select %340, %345, %346 : vector<1x8x128xi1>, vector<1x8x128xf32>
    %cst_272 = arith.constant dense<0.000000e+00> : vector<8x128xf32>
    %348 = vector.multi_reduction <add>, %347, %cst_272 [0] : vector<1x8x128xf32> to vector<8x128xf32>
    %349 = arith.addf %344, %348 : vector<8x128xf32>
    %c0_273 = arith.constant 0 : index
    %c304_274 = arith.constant 304 : index
    %c0_275 = arith.constant 0 : index
    %350 = vector.load %arg6[%c0_273, %c304_274, %c0_275] : memref<1x384x128xf32, #tpu.memory_space<vmem>>, vector<1x8x128xf32>
    %351 = vector.shape_cast %350 : vector<1x8x128xf32> to vector<8x128xf32>
    %352 = vector.shape_cast %349 : vector<8x128xf32> to vector<1x8x128xf32>
    tpu.vector_store %arg6[%c0_273, %c304_274, %c0_275], %352 {strides = array<i32>} : memref<1x384x128xf32, #tpu.memory_space<vmem>>, vector<1x8x128xf32>,
    %c0_276 = arith.constant 0 : index
    %c368 = arith.constant 368 : index
    %c0_277 = arith.constant 0 : index
    %353 = vector.load %arg6[%c0_276, %c368, %c0_277] : memref<1x384x128xf32, #tpu.memory_space<vmem>>, vector<1x8x128xf32>
    %354 = vector.shape_cast %353 : vector<1x8x128xf32> to vector<8x128xf32>
    %cst_278 = arith.constant 1.000000e+00 : f32
    %cst_279 = arith.constant 0.000000e+00 : f32
    %355 = vector.broadcast %cst_278 : f32 to vector<1x8x128xf32>
    %356 = vector.broadcast %cst_279 : f32 to vector<1x8x128xf32>
    %357 = arith.select %342, %355, %356 : vector<1x8x128xi1>, vector<1x8x128xf32>
    %cst_280 = arith.constant dense<0.000000e+00> : vector<8x128xf32>
    %358 = vector.multi_reduction <add>, %357, %cst_280 [0] : vector<1x8x128xf32> to vector<8x128xf32>
    %359 = arith.addf %354, %358 : vector<8x128xf32>
    %c0_281 = arith.constant 0 : index
    %c368_282 = arith.constant 368 : index
    %c0_283 = arith.constant 0 : index
    %360 = vector.load %arg6[%c0_281, %c368_282, %c0_283] : memref<1x384x128xf32, #tpu.memory_space<vmem>>, vector<1x8x128xf32>
    %361 = vector.shape_cast %360 : vector<1x8x128xf32> to vector<8x128xf32>
    %362 = vector.shape_cast %359 : vector<8x128xf32> to vector<1x8x128xf32>
    tpu.vector_store %arg6[%c0_281, %c368_282, %c0_283], %362 {strides = array<i32>} : memref<1x384x128xf32, #tpu.memory_space<vmem>>, vector<1x8x128xf32>,
    %c0_284 = arith.constant 0 : index
    %c192 = arith.constant 192 : index
    %c0_285 = arith.constant 0 : index
    %363 = vector.load %arg6[%c0_284, %c192, %c0_285] : memref<1x384x128xf32, #tpu.memory_space<vmem>>, vector<1x8x128xf32>
    %364 = vector.shape_cast %363 : vector<1x8x128xf32> to vector<8x128xf32>
    %cst_286 = arith.constant 0.000000e+00 : f32
    %365 = vector.broadcast %cst_286 : f32 to vector<1x8x128xf32>
    %366 = arith.select %340, %8, %365 : vector<1x8x128xi1>, vector<1x8x128xf32>
    %cst_287 = arith.constant dense<0.000000e+00> : vector<8x128xf32>
    %367 = vector.multi_reduction <add>, %366, %cst_287 [0] : vector<1x8x128xf32> to vector<8x128xf32>
    %368 = arith.addf %364, %367 : vector<8x128xf32>
    %c0_288 = arith.constant 0 : index
    %c192_289 = arith.constant 192 : index
    %c0_290 = arith.constant 0 : index
    %369 = vector.load %arg6[%c0_288, %c192_289, %c0_290] : memref<1x384x128xf32, #tpu.memory_space<vmem>>, vector<1x8x128xf32>
    %370 = vector.shape_cast %369 : vector<1x8x128xf32> to vector<8x128xf32>
    %371 = vector.shape_cast %368 : vector<8x128xf32> to vector<1x8x128xf32>
    tpu.vector_store %arg6[%c0_288, %c192_289, %c0_290], %371 {strides = array<i32>} : memref<1x384x128xf32, #tpu.memory_space<vmem>>, vector<1x8x128xf32>,
    %c0_291 = arith.constant 0 : index
    %c200 = arith.constant 200 : index
    %c0_292 = arith.constant 0 : index
    %372 = vector.load %arg6[%c0_291, %c200, %c0_292] : memref<1x384x128xf32, #tpu.memory_space<vmem>>, vector<1x8x128xf32>
    %373 = vector.shape_cast %372 : vector<1x8x128xf32> to vector<8x128xf32>
    %cst_293 = arith.constant 0.000000e+00 : f32
    %374 = vector.broadcast %cst_293 : f32 to vector<1x8x128xf32>
    %375 = arith.select %340, %10, %374 : vector<1x8x128xi1>, vector<1x8x128xf32>
    %cst_294 = arith.constant dense<0.000000e+00> : vector<8x128xf32>
    %376 = vector.multi_reduction <add>, %375, %cst_294 [0] : vector<1x8x128xf32> to vector<8x128xf32>
    %377 = arith.addf %373, %376 : vector<8x128xf32>
    %c0_295 = arith.constant 0 : index
    %c200_296 = arith.constant 200 : index
    %c0_297 = arith.constant 0 : index
    %378 = vector.load %arg6[%c0_295, %c200_296, %c0_297] : memref<1x384x128xf32, #tpu.memory_space<vmem>>, vector<1x8x128xf32>
    %379 = vector.shape_cast %378 : vector<1x8x128xf32> to vector<8x128xf32>
    %380 = vector.shape_cast %377 : vector<8x128xf32> to vector<1x8x128xf32>
    tpu.vector_store %arg6[%c0_295, %c200_296, %c0_297], %380 {strides = array<i32>} : memref<1x384x128xf32, #tpu.memory_space<vmem>>, vector<1x8x128xf32>,
    %c0_298 = arith.constant 0 : index
    %c208 = arith.constant 208 : index
    %c0_299 = arith.constant 0 : index
    %381 = vector.load %arg6[%c0_298, %c208, %c0_299] : memref<1x384x128xf32, #tpu.memory_space<vmem>>, vector<1x8x128xf32>
    %382 = vector.shape_cast %381 : vector<1x8x128xf32> to vector<8x128xf32>
    %cst_300 = arith.constant 0.000000e+00 : f32
    %383 = vector.broadcast %cst_300 : f32 to vector<1x8x128xf32>
    %384 = arith.select %340, %12, %383 : vector<1x8x128xi1>, vector<1x8x128xf32>
    %cst_301 = arith.constant dense<0.000000e+00> : vector<8x128xf32>
    %385 = vector.multi_reduction <add>, %384, %cst_301 [0] : vector<1x8x128xf32> to vector<8x128xf32>
    %386 = arith.addf %382, %385 : vector<8x128xf32>
    %c0_302 = arith.constant 0 : index
    %c208_303 = arith.constant 208 : index
    %c0_304 = arith.constant 0 : index
    %387 = vector.load %arg6[%c0_302, %c208_303, %c0_304] : memref<1x384x128xf32, #tpu.memory_space<vmem>>, vector<1x8x128xf32>
    %388 = vector.shape_cast %387 : vector<1x8x128xf32> to vector<8x128xf32>
    %389 = vector.shape_cast %386 : vector<8x128xf32> to vector<1x8x128xf32>
    tpu.vector_store %arg6[%c0_302, %c208_303, %c0_304], %389 {strides = array<i32>} : memref<1x384x128xf32, #tpu.memory_space<vmem>>, vector<1x8x128xf32>,
    %c0_305 = arith.constant 0 : index
    %c216 = arith.constant 216 : index
    %c0_306 = arith.constant 0 : index
    %390 = vector.load %arg6[%c0_305, %c216, %c0_306] : memref<1x384x128xf32, #tpu.memory_space<vmem>>, vector<1x8x128xf32>
    %391 = vector.shape_cast %390 : vector<1x8x128xf32> to vector<8x128xf32>
    %cst_307 = arith.constant 0.000000e+00 : f32
    %392 = vector.broadcast %cst_307 : f32 to vector<1x8x128xf32>
    %393 = arith.select %340, %14, %392 : vector<1x8x128xi1>, vector<1x8x128xf32>
    %cst_308 = arith.constant dense<0.000000e+00> : vector<8x128xf32>
    %394 = vector.multi_reduction <add>, %393, %cst_308 [0] : vector<1x8x128xf32> to vector<8x128xf32>
    %395 = arith.addf %391, %394 : vector<8x128xf32>
    %c0_309 = arith.constant 0 : index
    %c216_310 = arith.constant 216 : index
    %c0_311 = arith.constant 0 : index
    %396 = vector.load %arg6[%c0_309, %c216_310, %c0_311] : memref<1x384x128xf32, #tpu.memory_space<vmem>>, vector<1x8x128xf32>
    %397 = vector.shape_cast %396 : vector<1x8x128xf32> to vector<8x128xf32>
    %398 = vector.shape_cast %395 : vector<8x128xf32> to vector<1x8x128xf32>
    tpu.vector_store %arg6[%c0_309, %c216_310, %c0_311], %398 {strides = array<i32>} : memref<1x384x128xf32, #tpu.memory_space<vmem>>, vector<1x8x128xf32>,
    %c7_i32 = arith.constant 7 : i32
    %399 = vector.broadcast %c7_i32 : i32 to vector<1x8x128xi32>
    %400 = arith.cmpi eq, %4, %399 : vector<1x8x128xi32>
    %c7_i32_312 = arith.constant 7 : i32
    %401 = vector.broadcast %c7_i32_312 : i32 to vector<1x8x128xi32>
    %402 = arith.cmpi eq, %6, %401 : vector<1x8x128xi32>
    %c0_313 = arith.constant 0 : index
    %c312 = arith.constant 312 : index
    %c0_314 = arith.constant 0 : index
    %403 = vector.load %arg6[%c0_313, %c312, %c0_314] : memref<1x384x128xf32, #tpu.memory_space<vmem>>, vector<1x8x128xf32>
    %404 = vector.shape_cast %403 : vector<1x8x128xf32> to vector<8x128xf32>
    %cst_315 = arith.constant 1.000000e+00 : f32
    %cst_316 = arith.constant 0.000000e+00 : f32
    %405 = vector.broadcast %cst_315 : f32 to vector<1x8x128xf32>
    %406 = vector.broadcast %cst_316 : f32 to vector<1x8x128xf32>
    %407 = arith.select %400, %405, %406 : vector<1x8x128xi1>, vector<1x8x128xf32>
    %cst_317 = arith.constant dense<0.000000e+00> : vector<8x128xf32>
    %408 = vector.multi_reduction <add>, %407, %cst_317 [0] : vector<1x8x128xf32> to vector<8x128xf32>
    %409 = arith.addf %404, %408 : vector<8x128xf32>
    %c0_318 = arith.constant 0 : index
    %c312_319 = arith.constant 312 : index
    %c0_320 = arith.constant 0 : index
    %410 = vector.load %arg6[%c0_318, %c312_319, %c0_320] : memref<1x384x128xf32, #tpu.memory_space<vmem>>, vector<1x8x128xf32>
    %411 = vector.shape_cast %410 : vector<1x8x128xf32> to vector<8x128xf32>
    %412 = vector.shape_cast %409 : vector<8x128xf32> to vector<1x8x128xf32>
    tpu.vector_store %arg6[%c0_318, %c312_319, %c0_320], %412 {strides = array<i32>} : memref<1x384x128xf32, #tpu.memory_space<vmem>>, vector<1x8x128xf32>,
    %c0_321 = arith.constant 0 : index
    %c376 = arith.constant 376 : index
    %c0_322 = arith.constant 0 : index
    %413 = vector.load %arg6[%c0_321, %c376, %c0_322] : memref<1x384x128xf32, #tpu.memory_space<vmem>>, vector<1x8x128xf32>
    %414 = vector.shape_cast %413 : vector<1x8x128xf32> to vector<8x128xf32>
    %cst_323 = arith.constant 1.000000e+00 : f32
    %cst_324 = arith.constant 0.000000e+00 : f32
    %415 = vector.broadcast %cst_323 : f32 to vector<1x8x128xf32>
    %416 = vector.broadcast %cst_324 : f32 to vector<1x8x128xf32>
    %417 = arith.select %402, %415, %416 : vector<1x8x128xi1>, vector<1x8x128xf32>
    %cst_325 = arith.constant dense<0.000000e+00> : vector<8x128xf32>
    %418 = vector.multi_reduction <add>, %417, %cst_325 [0] : vector<1x8x128xf32> to vector<8x128xf32>
    %419 = arith.addf %414, %418 : vector<8x128xf32>
    %c0_326 = arith.constant 0 : index
    %c376_327 = arith.constant 376 : index
    %c0_328 = arith.constant 0 : index
    %420 = vector.load %arg6[%c0_326, %c376_327, %c0_328] : memref<1x384x128xf32, #tpu.memory_space<vmem>>, vector<1x8x128xf32>
    %421 = vector.shape_cast %420 : vector<1x8x128xf32> to vector<8x128xf32>
    %422 = vector.shape_cast %419 : vector<8x128xf32> to vector<1x8x128xf32>
    tpu.vector_store %arg6[%c0_326, %c376_327, %c0_328], %422 {strides = array<i32>} : memref<1x384x128xf32, #tpu.memory_space<vmem>>, vector<1x8x128xf32>,
    %c0_329 = arith.constant 0 : index
    %c224 = arith.constant 224 : index
    %c0_330 = arith.constant 0 : index
    %423 = vector.load %arg6[%c0_329, %c224, %c0_330] : memref<1x384x128xf32, #tpu.memory_space<vmem>>, vector<1x8x128xf32>
    %424 = vector.shape_cast %423 : vector<1x8x128xf32> to vector<8x128xf32>
    %cst_331 = arith.constant 0.000000e+00 : f32
    %425 = vector.broadcast %cst_331 : f32 to vector<1x8x128xf32>
    %426 = arith.select %400, %8, %425 : vector<1x8x128xi1>, vector<1x8x128xf32>
    %cst_332 = arith.constant dense<0.000000e+00> : vector<8x128xf32>
    %427 = vector.multi_reduction <add>, %426, %cst_332 [0] : vector<1x8x128xf32> to vector<8x128xf32>
    %428 = arith.addf %424, %427 : vector<8x128xf32>
    %c0_333 = arith.constant 0 : index
    %c224_334 = arith.constant 224 : index
    %c0_335 = arith.constant 0 : index
    %429 = vector.load %arg6[%c0_333, %c224_334, %c0_335] : memref<1x384x128xf32, #tpu.memory_space<vmem>>, vector<1x8x128xf32>
    %430 = vector.shape_cast %429 : vector<1x8x128xf32> to vector<8x128xf32>
    %431 = vector.shape_cast %428 : vector<8x128xf32> to vector<1x8x128xf32>
    tpu.vector_store %arg6[%c0_333, %c224_334, %c0_335], %431 {strides = array<i32>} : memref<1x384x128xf32, #tpu.memory_space<vmem>>, vector<1x8x128xf32>,
    %c0_336 = arith.constant 0 : index
    %c232 = arith.constant 232 : index
    %c0_337 = arith.constant 0 : index
    %432 = vector.load %arg6[%c0_336, %c232, %c0_337] : memref<1x384x128xf32, #tpu.memory_space<vmem>>, vector<1x8x128xf32>
    %433 = vector.shape_cast %432 : vector<1x8x128xf32> to vector<8x128xf32>
    %cst_338 = arith.constant 0.000000e+00 : f32
    %434 = vector.broadcast %cst_338 : f32 to vector<1x8x128xf32>
    %435 = arith.select %400, %10, %434 : vector<1x8x128xi1>, vector<1x8x128xf32>
    %cst_339 = arith.constant dense<0.000000e+00> : vector<8x128xf32>
    %436 = vector.multi_reduction <add>, %435, %cst_339 [0] : vector<1x8x128xf32> to vector<8x128xf32>
    %437 = arith.addf %433, %436 : vector<8x128xf32>
    %c0_340 = arith.constant 0 : index
    %c232_341 = arith.constant 232 : index
    %c0_342 = arith.constant 0 : index
    %438 = vector.load %arg6[%c0_340, %c232_341, %c0_342] : memref<1x384x128xf32, #tpu.memory_space<vmem>>, vector<1x8x128xf32>
    %439 = vector.shape_cast %438 : vector<1x8x128xf32> to vector<8x128xf32>
    %440 = vector.shape_cast %437 : vector<8x128xf32> to vector<1x8x128xf32>
    tpu.vector_store %arg6[%c0_340, %c232_341, %c0_342], %440 {strides = array<i32>} : memref<1x384x128xf32, #tpu.memory_space<vmem>>, vector<1x8x128xf32>,
    %c0_343 = arith.constant 0 : index
    %c240 = arith.constant 240 : index
    %c0_344 = arith.constant 0 : index
    %441 = vector.load %arg6[%c0_343, %c240, %c0_344] : memref<1x384x128xf32, #tpu.memory_space<vmem>>, vector<1x8x128xf32>
    %442 = vector.shape_cast %441 : vector<1x8x128xf32> to vector<8x128xf32>
    %cst_345 = arith.constant 0.000000e+00 : f32
    %443 = vector.broadcast %cst_345 : f32 to vector<1x8x128xf32>
    %444 = arith.select %400, %12, %443 : vector<1x8x128xi1>, vector<1x8x128xf32>
    %cst_346 = arith.constant dense<0.000000e+00> : vector<8x128xf32>
    %445 = vector.multi_reduction <add>, %444, %cst_346 [0] : vector<1x8x128xf32> to vector<8x128xf32>
    %446 = arith.addf %442, %445 : vector<8x128xf32>
    %c0_347 = arith.constant 0 : index
    %c240_348 = arith.constant 240 : index
    %c0_349 = arith.constant 0 : index
    %447 = vector.load %arg6[%c0_347, %c240_348, %c0_349] : memref<1x384x128xf32, #tpu.memory_space<vmem>>, vector<1x8x128xf32>
    %448 = vector.shape_cast %447 : vector<1x8x128xf32> to vector<8x128xf32>
    %449 = vector.shape_cast %446 : vector<8x128xf32> to vector<1x8x128xf32>
    tpu.vector_store %arg6[%c0_347, %c240_348, %c0_349], %449 {strides = array<i32>} : memref<1x384x128xf32, #tpu.memory_space<vmem>>, vector<1x8x128xf32>,
    %c0_350 = arith.constant 0 : index
    %c248 = arith.constant 248 : index
    %c0_351 = arith.constant 0 : index
    %450 = vector.load %arg6[%c0_350, %c248, %c0_351] : memref<1x384x128xf32, #tpu.memory_space<vmem>>, vector<1x8x128xf32>
    %451 = vector.shape_cast %450 : vector<1x8x128xf32> to vector<8x128xf32>
    %cst_352 = arith.constant 0.000000e+00 : f32
    %452 = vector.broadcast %cst_352 : f32 to vector<1x8x128xf32>
    %453 = arith.select %400, %14, %452 : vector<1x8x128xi1>, vector<1x8x128xf32>
    %cst_353 = arith.constant dense<0.000000e+00> : vector<8x128xf32>
    %454 = vector.multi_reduction <add>, %453, %cst_353 [0] : vector<1x8x128xf32> to vector<8x128xf32>
    %455 = arith.addf %451, %454 : vector<8x128xf32>
    %c0_354 = arith.constant 0 : index
    %c248_355 = arith.constant 248 : index
    %c0_356 = arith.constant 0 : index
    %456 = vector.load %arg6[%c0_354, %c248_355, %c0_356] : memref<1x384x128xf32, #tpu.memory_space<vmem>>, vector<1x8x128xf32>
    %457 = vector.shape_cast %456 : vector<1x8x128xf32> to vector<8x128xf32>
    %458 = vector.shape_cast %455 : vector<8x128xf32> to vector<1x8x128xf32>
    tpu.vector_store %arg6[%c0_354, %c248_355, %c0_356], %458 {strides = array<i32>} : memref<1x384x128xf32, #tpu.memory_space<vmem>>, vector<1x8x128xf32>,
    return
  }
  func.func @transform_0(%arg0: i32, %arg1: i32, %arg2: i32) -> (i32, i32, i32, i32, i32) {
    %c1_i32 = arith.constant 1 : i32
    %0 = arith.muli %arg1, %c1_i32 : i32
    %1 = arith.addi %0, %arg2 : i32
    %c0_i32 = arith.constant 0 : i32
    %c0_i32_0 = arith.constant 0 : i32
    %c0_i32_1 = arith.constant 0 : i32
    %c0_i32_2 = arith.constant 0 : i32
    return %arg0, %c0_i32, %1, %c0_i32_0, %c0_i32_1 : i32, i32, i32, i32, i32
  }
  func.func @transform_1(%arg0: i32, %arg1: i32, %arg2: i32) -> (i32, i32, i32, i32) {
    %c1_i32 = arith.constant 1 : i32
    %0 = arith.muli %arg1, %c1_i32 : i32
    %1 = arith.addi %0, %arg2 : i32
    %c0_i32 = arith.constant 0 : i32
    %c0_i32_0 = arith.constant 0 : i32
    %c0_i32_1 = arith.constant 0 : i32
    return %arg0, %1, %c0_i32, %c0_i32_0 : i32, i32, i32, i32
  }
  func.func @transform_2(%arg0: i32, %arg1: i32, %arg2: i32) -> (i32, i32, i32, i32) {
    %c1_i32 = arith.constant 1 : i32
    %0 = arith.muli %arg1, %c1_i32 : i32
    %1 = arith.addi %0, %arg2 : i32
    %c0_i32 = arith.constant 0 : i32
    %c0_i32_0 = arith.constant 0 : i32
    %c0_i32_1 = arith.constant 0 : i32
    return %arg0, %1, %c0_i32, %c0_i32_0 : i32, i32, i32, i32
  }
  func.func @transform_3(%arg0: i32, %arg1: i32, %arg2: i32) -> (i32, i32, i32) {
    %c1_i32 = arith.constant 1 : i32
    %0 = arith.muli %arg0, %c1_i32 : i32
    %1 = arith.addi %0, %arg1 : i32
    %c0_i32 = arith.constant 0 : i32
    %c0_i32_0 = arith.constant 0 : i32
    %c0_i32_1 = arith.constant 0 : i32
    return %1, %c0_i32, %c0_i32_0 : i32, i32, i32
  }
}

module attributes {stable_mosaic.version = 11 : i64} {
  func.func @_pass2_kernel(%arg0: i32, %arg1: i32, %arg2: i32, %arg3: memref<2x8xi32, #tpu.memory_space<smem>>, %arg4: memref<2x32xf32, #tpu.memory_space<smem>>, %arg5: memref<2x8xf32, #tpu.memory_space<smem>>, %arg6: memref<1x4x1x8x128xf32, #tpu.memory_space<vmem>>, %arg7: memref<1x1x8x128xi32, #tpu.memory_space<vmem>>, %arg8: memref<1x128x128xf32, #tpu.memory_space<vmem>>) attributes {dimension_semantics = [#tpu.dimension_semantics<parallel>, #tpu.dimension_semantics<parallel>, #tpu.dimension_semantics<arbitrary>], iteration_bounds = array<i64: 2, 1, 1>, scalar_prefetch = 0 : i64, scratch_operands = 0 : i64, tpu.core_type = #tpu.core_type<tc>, window_params = [{transform_indices = @transform_0, window_bounds = array<i64: 2, 8>}, {transform_indices = @transform_1, window_bounds = array<i64: 2, 32>}, {transform_indices = @transform_2, window_bounds = array<i64: 2, 8>}, {transform_indices = @transform_3, window_bounds = array<i64: 1, 4, 1, 8, 128>}, {transform_indices = @transform_4, window_bounds = array<i64: 1, 1, 8, 128>}, {transform_indices = @transform_5, window_bounds = array<i64: 1, 128, 128>}]} {
    %c0_i32 = arith.constant 0 : i32
    %0 = arith.cmpi eq, %arg2, %c0_i32 : i32
    %1 = arith.extui %0 : i1 to i32
    %c0_i32_0 = arith.constant 0 : i32
    %2 = arith.cmpi ne, %1, %c0_i32_0 : i32
    scf.if %2 {
      %cst = arith.constant 0.000000e+00 : f32
      %57 = vector.broadcast %cst : f32 to vector<1x128x128xf32>
      %c0_39 = arith.constant 0 : index
      %c0_40 = arith.constant 0 : index
      %c0_41 = arith.constant 0 : index
      %58 = vector.load %arg8[%c0_39, %c0_40, %c0_41] : memref<1x128x128xf32, #tpu.memory_space<vmem>>, vector<1x128x128xf32>
      tpu.vector_store %arg8[%c0_39, %c0_40, %c0_41], %57 {strides = array<i32>} : memref<1x128x128xf32, #tpu.memory_space<vmem>>, vector<1x128x128xf32>,
    } else {
    }
    %c0 = arith.constant 0 : index
    %c0_1 = arith.constant 0 : index
    %c0_2 = arith.constant 0 : index
    %c0_3 = arith.constant 0 : index
    %3 = vector.load %arg7[%c0, %c0_1, %c0_2, %c0_3] : memref<1x1x8x128xi32, #tpu.memory_space<vmem>>, vector<1x1x8x128xi32>
    %4 = vector.shape_cast %3 : vector<1x1x8x128xi32> to vector<1x8x128xi32>
    %c0_4 = arith.constant 0 : index
    %c0_5 = arith.constant 0 : index
    %c0_6 = arith.constant 0 : index
    %c0_7 = arith.constant 0 : index
    %c0_8 = arith.constant 0 : index
    %5 = vector.load %arg6[%c0_4, %c0_5, %c0_6, %c0_7, %c0_8] : memref<1x4x1x8x128xf32, #tpu.memory_space<vmem>>, vector<1x1x1x8x128xf32>
    %6 = vector.shape_cast %5 : vector<1x1x1x8x128xf32> to vector<1x8x128xf32>
    %c0_9 = arith.constant 0 : index
    %c1 = arith.constant 1 : index
    %c0_10 = arith.constant 0 : index
    %c0_11 = arith.constant 0 : index
    %c0_12 = arith.constant 0 : index
    %7 = vector.load %arg6[%c0_9, %c1, %c0_10, %c0_11, %c0_12] : memref<1x4x1x8x128xf32, #tpu.memory_space<vmem>>, vector<1x1x1x8x128xf32>
    %8 = vector.shape_cast %7 : vector<1x1x1x8x128xf32> to vector<1x8x128xf32>
    %c0_13 = arith.constant 0 : index
    %c2 = arith.constant 2 : index
    %c0_14 = arith.constant 0 : index
    %c0_15 = arith.constant 0 : index
    %c0_16 = arith.constant 0 : index
    %9 = vector.load %arg6[%c0_13, %c2, %c0_14, %c0_15, %c0_16] : memref<1x4x1x8x128xf32, #tpu.memory_space<vmem>>, vector<1x1x1x8x128xf32>
    %10 = vector.shape_cast %9 : vector<1x1x1x8x128xf32> to vector<1x8x128xf32>
    %c0_17 = arith.constant 0 : index
    %c3 = arith.constant 3 : index
    %c0_18 = arith.constant 0 : index
    %c0_19 = arith.constant 0 : index
    %c0_20 = arith.constant 0 : index
    %11 = vector.load %arg6[%c0_17, %c3, %c0_18, %c0_19, %c0_20] : memref<1x4x1x8x128xf32, #tpu.memory_space<vmem>>, vector<1x1x1x8x128xf32>
    %12 = vector.shape_cast %11 : vector<1x1x1x8x128xf32> to vector<1x8x128xf32>
    %c0_i32_21 = arith.constant 0 : i32
    %13 = vector.broadcast %c0_i32_21 : i32 to vector<1x8x128xi32>
    %14 = arith.cmpi eq, %4, %13 : vector<1x8x128xi32>
    %15 = arith.mulf %6, %6 : vector<1x8x128xf32>
    %16 = arith.mulf %8, %8 : vector<1x8x128xf32>
    %17 = arith.addf %15, %16 : vector<1x8x128xf32>
    %18 = arith.mulf %10, %10 : vector<1x8x128xf32>
    %19 = arith.addf %17, %18 : vector<1x8x128xf32>
    %20 = arith.mulf %12, %12 : vector<1x8x128xf32>
    %21 = arith.addf %19, %20 : vector<1x8x128xf32>
    %22 = arith.index_cast %arg0 : i32 to index
    %c1_22 = arith.constant 1 : index
    %23 = memref.load %arg3[%22, %c1_22] : memref<2x8xi32, #tpu.memory_space<smem>>
    %c0_i32_23 = arith.constant 0 : i32
    %24 = arith.cmpi sgt, %23, %c0_i32_23 : i32
    %25 = arith.extui %24 : i1 to i32
    %c0_i32_24 = arith.constant 0 : i32
    %26 = arith.cmpi ne, %25, %c0_i32_24 : i32
    scf.if %26 {
      %57 = arith.index_cast %arg0 : i32 to index
      %c1_39 = arith.constant 1 : index
      %58 = memref.load %arg5[%57, %c1_39] : memref<2x8xf32, #tpu.memory_space<smem>>
      %59 = vector.broadcast %58 : f32 to vector<1x8x128xf32>
      %60 = arith.addf %21, %59 : vector<1x8x128xf32>
      %61 = arith.index_cast %arg0 : i32 to index
      %c1_40 = arith.constant 1 : index
      %62 = memref.load %arg4[%61, %c1_40] : memref<2x32xf32, #tpu.memory_space<smem>>
      %63 = vector.broadcast %62 : f32 to vector<1x8x128xf32>
      %64 = arith.mulf %6, %63 : vector<1x8x128xf32>
      %65 = arith.addf %60, %64 : vector<1x8x128xf32>
      %66 = arith.index_cast %arg0 : i32 to index
      %c9 = arith.constant 9 : index
      %67 = memref.load %arg4[%66, %c9] : memref<2x32xf32, #tpu.memory_space<smem>>
      %68 = vector.broadcast %67 : f32 to vector<1x8x128xf32>
      %69 = arith.mulf %8, %68 : vector<1x8x128xf32>
      %70 = arith.addf %65, %69 : vector<1x8x128xf32>
      %71 = arith.index_cast %arg0 : i32 to index
      %c17 = arith.constant 17 : index
      %72 = memref.load %arg4[%71, %c17] : memref<2x32xf32, #tpu.memory_space<smem>>
      %73 = vector.broadcast %72 : f32 to vector<1x8x128xf32>
      %74 = arith.mulf %10, %73 : vector<1x8x128xf32>
      %75 = arith.addf %70, %74 : vector<1x8x128xf32>
      %76 = arith.index_cast %arg0 : i32 to index
      %c25 = arith.constant 25 : index
      %77 = memref.load %arg4[%76, %c25] : memref<2x32xf32, #tpu.memory_space<smem>>
      %78 = vector.broadcast %77 : f32 to vector<1x8x128xf32>
      %79 = arith.mulf %12, %78 : vector<1x8x128xf32>
      %80 = arith.addf %75, %79 : vector<1x8x128xf32>
      %cst = arith.constant 0.000000e+00 : f32
      %81 = vector.broadcast %cst : f32 to vector<1x8x128xf32>
      %82 = arith.maximumf %80, %81 : vector<1x8x128xf32>
      %cst_41 = arith.constant 9.99999996E-13 : f32
      %83 = vector.broadcast %cst_41 : f32 to vector<1x8x128xf32>
      %84 = arith.addf %82, %83 : vector<1x8x128xf32>
      %85 = math.sqrt %84 : vector<1x8x128xf32>
      %c1_i32 = arith.constant 1 : i32
      %86 = vector.broadcast %c1_i32 : i32 to vector<1x8x128xi32>
      %87 = arith.cmpi eq, %4, %86 : vector<1x8x128xi32>
      %cst_42 = arith.constant 5.000000e-01 : f32
      %88 = vector.broadcast %cst_42 : f32 to vector<1x8x128xf32>
      %89 = arith.subf %85, %88 : vector<1x8x128xf32>
      %cst_43 = arith.constant 3.000000e+00 : f32
      %90 = vector.broadcast %cst_43 : f32 to vector<1x8x128xf32>
      %91 = arith.subf %90, %85 : vector<1x8x128xf32>
      %92 = arith.select %87, %89, %91 : vector<1x8x128xi1>, vector<1x8x128xf32>
      %cst_44 = arith.constant 0.000000e+00 : f32
      %93 = vector.broadcast %cst_44 : f32 to vector<1x8x128xf32>
      %94 = arith.maximumf %92, %93 : vector<1x8x128xf32>
      %95 = arith.mulf %94, %94 : vector<1x8x128xf32>
      %cst_45 = arith.constant 1.000000e+00 : f32
      %96 = vector.broadcast %cst_45 : f32 to vector<1x8x128xf32>
      %97 = arith.addf %95, %96 : vector<1x8x128xf32>
      %98 = math.log %97 : vector<1x8x128xf32>
      %c0_46 = arith.constant 0 : index
      %c8 = arith.constant 8 : index
      %c0_47 = arith.constant 0 : index
      %99 = vector.load %arg8[%c0_46, %c8, %c0_47] : memref<1x128x128xf32, #tpu.memory_space<vmem>>, vector<1x8x128xf32>
      %100 = vector.shape_cast %99 : vector<1x8x128xf32> to vector<8x128xf32>
      %cst_48 = arith.constant 0.000000e+00 : f32
      %101 = vector.broadcast %cst_48 : f32 to vector<1x8x128xf32>
      %102 = arith.select %87, %98, %101 : vector<1x8x128xi1>, vector<1x8x128xf32>
      %cst_49 = arith.constant dense<0.000000e+00> : vector<8x128xf32>
      %103 = vector.multi_reduction <add>, %102, %cst_49 [0] : vector<1x8x128xf32> to vector<8x128xf32>
      %104 = arith.addf %100, %103 : vector<8x128xf32>
      %c0_50 = arith.constant 0 : index
      %c8_51 = arith.constant 8 : index
      %c0_52 = arith.constant 0 : index
      %105 = vector.load %arg8[%c0_50, %c8_51, %c0_52] : memref<1x128x128xf32, #tpu.memory_space<vmem>>, vector<1x8x128xf32>
      %106 = vector.shape_cast %105 : vector<1x8x128xf32> to vector<8x128xf32>
      %107 = vector.shape_cast %104 : vector<8x128xf32> to vector<1x8x128xf32>
      tpu.vector_store %arg8[%c0_50, %c8_51, %c0_52], %107 {strides = array<i32>} : memref<1x128x128xf32, #tpu.memory_space<vmem>>, vector<1x8x128xf32>,
      %c0_53 = arith.constant 0 : index
      %c72 = arith.constant 72 : index
      %c0_54 = arith.constant 0 : index
      %108 = vector.load %arg8[%c0_53, %c72, %c0_54] : memref<1x128x128xf32, #tpu.memory_space<vmem>>, vector<1x8x128xf32>
      %109 = vector.shape_cast %108 : vector<1x8x128xf32> to vector<8x128xf32>
      %cst_55 = arith.constant 0.000000e+00 : f32
      %110 = vector.broadcast %cst_55 : f32 to vector<1x8x128xf32>
      %111 = arith.select %14, %98, %110 : vector<1x8x128xi1>, vector<1x8x128xf32>
      %cst_56 = arith.constant dense<0.000000e+00> : vector<8x128xf32>
      %112 = vector.multi_reduction <add>, %111, %cst_56 [0] : vector<1x8x128xf32> to vector<8x128xf32>
      %113 = arith.addf %109, %112 : vector<8x128xf32>
      %c0_57 = arith.constant 0 : index
      %c72_58 = arith.constant 72 : index
      %c0_59 = arith.constant 0 : index
      %114 = vector.load %arg8[%c0_57, %c72_58, %c0_59] : memref<1x128x128xf32, #tpu.memory_space<vmem>>, vector<1x8x128xf32>
      %115 = vector.shape_cast %114 : vector<1x8x128xf32> to vector<8x128xf32>
      %116 = vector.shape_cast %113 : vector<8x128xf32> to vector<1x8x128xf32>
      tpu.vector_store %arg8[%c0_57, %c72_58, %c0_59], %116 {strides = array<i32>} : memref<1x128x128xf32, #tpu.memory_space<vmem>>, vector<1x8x128xf32>,
    } else {
    }
    %27 = arith.index_cast %arg0 : i32 to index
    %c2_25 = arith.constant 2 : index
    %28 = memref.load %arg3[%27, %c2_25] : memref<2x8xi32, #tpu.memory_space<smem>>
    %c0_i32_26 = arith.constant 0 : i32
    %29 = arith.cmpi sgt, %28, %c0_i32_26 : i32
    %30 = arith.extui %29 : i1 to i32
    %c0_i32_27 = arith.constant 0 : i32
    %31 = arith.cmpi ne, %30, %c0_i32_27 : i32
    scf.if %31 {
      %57 = arith.index_cast %arg0 : i32 to index
      %c2_39 = arith.constant 2 : index
      %58 = memref.load %arg5[%57, %c2_39] : memref<2x8xf32, #tpu.memory_space<smem>>
      %59 = vector.broadcast %58 : f32 to vector<1x8x128xf32>
      %60 = arith.addf %21, %59 : vector<1x8x128xf32>
      %61 = arith.index_cast %arg0 : i32 to index
      %c2_40 = arith.constant 2 : index
      %62 = memref.load %arg4[%61, %c2_40] : memref<2x32xf32, #tpu.memory_space<smem>>
      %63 = vector.broadcast %62 : f32 to vector<1x8x128xf32>
      %64 = arith.mulf %6, %63 : vector<1x8x128xf32>
      %65 = arith.addf %60, %64 : vector<1x8x128xf32>
      %66 = arith.index_cast %arg0 : i32 to index
      %c10 = arith.constant 10 : index
      %67 = memref.load %arg4[%66, %c10] : memref<2x32xf32, #tpu.memory_space<smem>>
      %68 = vector.broadcast %67 : f32 to vector<1x8x128xf32>
      %69 = arith.mulf %8, %68 : vector<1x8x128xf32>
      %70 = arith.addf %65, %69 : vector<1x8x128xf32>
      %71 = arith.index_cast %arg0 : i32 to index
      %c18 = arith.constant 18 : index
      %72 = memref.load %arg4[%71, %c18] : memref<2x32xf32, #tpu.memory_space<smem>>
      %73 = vector.broadcast %72 : f32 to vector<1x8x128xf32>
      %74 = arith.mulf %10, %73 : vector<1x8x128xf32>
      %75 = arith.addf %70, %74 : vector<1x8x128xf32>
      %76 = arith.index_cast %arg0 : i32 to index
      %c26 = arith.constant 26 : index
      %77 = memref.load %arg4[%76, %c26] : memref<2x32xf32, #tpu.memory_space<smem>>
      %78 = vector.broadcast %77 : f32 to vector<1x8x128xf32>
      %79 = arith.mulf %12, %78 : vector<1x8x128xf32>
      %80 = arith.addf %75, %79 : vector<1x8x128xf32>
      %cst = arith.constant 0.000000e+00 : f32
      %81 = vector.broadcast %cst : f32 to vector<1x8x128xf32>
      %82 = arith.maximumf %80, %81 : vector<1x8x128xf32>
      %cst_41 = arith.constant 9.99999996E-13 : f32
      %83 = vector.broadcast %cst_41 : f32 to vector<1x8x128xf32>
      %84 = arith.addf %82, %83 : vector<1x8x128xf32>
      %85 = math.sqrt %84 : vector<1x8x128xf32>
      %c2_i32 = arith.constant 2 : i32
      %86 = vector.broadcast %c2_i32 : i32 to vector<1x8x128xi32>
      %87 = arith.cmpi eq, %4, %86 : vector<1x8x128xi32>
      %cst_42 = arith.constant 5.000000e-01 : f32
      %88 = vector.broadcast %cst_42 : f32 to vector<1x8x128xf32>
      %89 = arith.subf %85, %88 : vector<1x8x128xf32>
      %cst_43 = arith.constant 3.000000e+00 : f32
      %90 = vector.broadcast %cst_43 : f32 to vector<1x8x128xf32>
      %91 = arith.subf %90, %85 : vector<1x8x128xf32>
      %92 = arith.select %87, %89, %91 : vector<1x8x128xi1>, vector<1x8x128xf32>
      %cst_44 = arith.constant 0.000000e+00 : f32
      %93 = vector.broadcast %cst_44 : f32 to vector<1x8x128xf32>
      %94 = arith.maximumf %92, %93 : vector<1x8x128xf32>
      %95 = arith.mulf %94, %94 : vector<1x8x128xf32>
      %cst_45 = arith.constant 1.000000e+00 : f32
      %96 = vector.broadcast %cst_45 : f32 to vector<1x8x128xf32>
      %97 = arith.addf %95, %96 : vector<1x8x128xf32>
      %98 = math.log %97 : vector<1x8x128xf32>
      %c0_46 = arith.constant 0 : index
      %c16 = arith.constant 16 : index
      %c0_47 = arith.constant 0 : index
      %99 = vector.load %arg8[%c0_46, %c16, %c0_47] : memref<1x128x128xf32, #tpu.memory_space<vmem>>, vector<1x8x128xf32>
      %100 = vector.shape_cast %99 : vector<1x8x128xf32> to vector<8x128xf32>
      %cst_48 = arith.constant 0.000000e+00 : f32
      %101 = vector.broadcast %cst_48 : f32 to vector<1x8x128xf32>
      %102 = arith.select %87, %98, %101 : vector<1x8x128xi1>, vector<1x8x128xf32>
      %cst_49 = arith.constant dense<0.000000e+00> : vector<8x128xf32>
      %103 = vector.multi_reduction <add>, %102, %cst_49 [0] : vector<1x8x128xf32> to vector<8x128xf32>
      %104 = arith.addf %100, %103 : vector<8x128xf32>
      %c0_50 = arith.constant 0 : index
      %c16_51 = arith.constant 16 : index
      %c0_52 = arith.constant 0 : index
      %105 = vector.load %arg8[%c0_50, %c16_51, %c0_52] : memref<1x128x128xf32, #tpu.memory_space<vmem>>, vector<1x8x128xf32>
      %106 = vector.shape_cast %105 : vector<1x8x128xf32> to vector<8x128xf32>
      %107 = vector.shape_cast %104 : vector<8x128xf32> to vector<1x8x128xf32>
      tpu.vector_store %arg8[%c0_50, %c16_51, %c0_52], %107 {strides = array<i32>} : memref<1x128x128xf32, #tpu.memory_space<vmem>>, vector<1x8x128xf32>,
      %c0_53 = arith.constant 0 : index
      %c80 = arith.constant 80 : index
      %c0_54 = arith.constant 0 : index
      %108 = vector.load %arg8[%c0_53, %c80, %c0_54] : memref<1x128x128xf32, #tpu.memory_space<vmem>>, vector<1x8x128xf32>
      %109 = vector.shape_cast %108 : vector<1x8x128xf32> to vector<8x128xf32>
      %cst_55 = arith.constant 0.000000e+00 : f32
      %110 = vector.broadcast %cst_55 : f32 to vector<1x8x128xf32>
      %111 = arith.select %14, %98, %110 : vector<1x8x128xi1>, vector<1x8x128xf32>
      %cst_56 = arith.constant dense<0.000000e+00> : vector<8x128xf32>
      %112 = vector.multi_reduction <add>, %111, %cst_56 [0] : vector<1x8x128xf32> to vector<8x128xf32>
      %113 = arith.addf %109, %112 : vector<8x128xf32>
      %c0_57 = arith.constant 0 : index
      %c80_58 = arith.constant 80 : index
      %c0_59 = arith.constant 0 : index
      %114 = vector.load %arg8[%c0_57, %c80_58, %c0_59] : memref<1x128x128xf32, #tpu.memory_space<vmem>>, vector<1x8x128xf32>
      %115 = vector.shape_cast %114 : vector<1x8x128xf32> to vector<8x128xf32>
      %116 = vector.shape_cast %113 : vector<8x128xf32> to vector<1x8x128xf32>
      tpu.vector_store %arg8[%c0_57, %c80_58, %c0_59], %116 {strides = array<i32>} : memref<1x128x128xf32, #tpu.memory_space<vmem>>, vector<1x8x128xf32>,
    } else {
    }
    %32 = arith.index_cast %arg0 : i32 to index
    %c3_28 = arith.constant 3 : index
    %33 = memref.load %arg3[%32, %c3_28] : memref<2x8xi32, #tpu.memory_space<smem>>
    %c0_i32_29 = arith.constant 0 : i32
    %34 = arith.cmpi sgt, %33, %c0_i32_29 : i32
    %35 = arith.extui %34 : i1 to i32
    %c0_i32_30 = arith.constant 0 : i32
    %36 = arith.cmpi ne, %35, %c0_i32_30 : i32
    scf.if %36 {
      %57 = arith.index_cast %arg0 : i32 to index
      %c3_39 = arith.constant 3 : index
      %58 = memref.load %arg5[%57, %c3_39] : memref<2x8xf32, #tpu.memory_space<smem>>
      %59 = vector.broadcast %58 : f32 to vector<1x8x128xf32>
      %60 = arith.addf %21, %59 : vector<1x8x128xf32>
      %61 = arith.index_cast %arg0 : i32 to index
      %c3_40 = arith.constant 3 : index
      %62 = memref.load %arg4[%61, %c3_40] : memref<2x32xf32, #tpu.memory_space<smem>>
      %63 = vector.broadcast %62 : f32 to vector<1x8x128xf32>
      %64 = arith.mulf %6, %63 : vector<1x8x128xf32>
      %65 = arith.addf %60, %64 : vector<1x8x128xf32>
      %66 = arith.index_cast %arg0 : i32 to index
      %c11 = arith.constant 11 : index
      %67 = memref.load %arg4[%66, %c11] : memref<2x32xf32, #tpu.memory_space<smem>>
      %68 = vector.broadcast %67 : f32 to vector<1x8x128xf32>
      %69 = arith.mulf %8, %68 : vector<1x8x128xf32>
      %70 = arith.addf %65, %69 : vector<1x8x128xf32>
      %71 = arith.index_cast %arg0 : i32 to index
      %c19 = arith.constant 19 : index
      %72 = memref.load %arg4[%71, %c19] : memref<2x32xf32, #tpu.memory_space<smem>>
      %73 = vector.broadcast %72 : f32 to vector<1x8x128xf32>
      %74 = arith.mulf %10, %73 : vector<1x8x128xf32>
      %75 = arith.addf %70, %74 : vector<1x8x128xf32>
      %76 = arith.index_cast %arg0 : i32 to index
      %c27 = arith.constant 27 : index
      %77 = memref.load %arg4[%76, %c27] : memref<2x32xf32, #tpu.memory_space<smem>>
      %78 = vector.broadcast %77 : f32 to vector<1x8x128xf32>
      %79 = arith.mulf %12, %78 : vector<1x8x128xf32>
      %80 = arith.addf %75, %79 : vector<1x8x128xf32>
      %cst = arith.constant 0.000000e+00 : f32
      %81 = vector.broadcast %cst : f32 to vector<1x8x128xf32>
      %82 = arith.maximumf %80, %81 : vector<1x8x128xf32>
      %cst_41 = arith.constant 9.99999996E-13 : f32
      %83 = vector.broadcast %cst_41 : f32 to vector<1x8x128xf32>
      %84 = arith.addf %82, %83 : vector<1x8x128xf32>
      %85 = math.sqrt %84 : vector<1x8x128xf32>
      %c3_i32 = arith.constant 3 : i32
      %86 = vector.broadcast %c3_i32 : i32 to vector<1x8x128xi32>
      %87 = arith.cmpi eq, %4, %86 : vector<1x8x128xi32>
      %cst_42 = arith.constant 5.000000e-01 : f32
      %88 = vector.broadcast %cst_42 : f32 to vector<1x8x128xf32>
      %89 = arith.subf %85, %88 : vector<1x8x128xf32>
      %cst_43 = arith.constant 3.000000e+00 : f32
      %90 = vector.broadcast %cst_43 : f32 to vector<1x8x128xf32>
      %91 = arith.subf %90, %85 : vector<1x8x128xf32>
      %92 = arith.select %87, %89, %91 : vector<1x8x128xi1>, vector<1x8x128xf32>
      %cst_44 = arith.constant 0.000000e+00 : f32
      %93 = vector.broadcast %cst_44 : f32 to vector<1x8x128xf32>
      %94 = arith.maximumf %92, %93 : vector<1x8x128xf32>
      %95 = arith.mulf %94, %94 : vector<1x8x128xf32>
      %cst_45 = arith.constant 1.000000e+00 : f32
      %96 = vector.broadcast %cst_45 : f32 to vector<1x8x128xf32>
      %97 = arith.addf %95, %96 : vector<1x8x128xf32>
      %98 = math.log %97 : vector<1x8x128xf32>
      %c0_46 = arith.constant 0 : index
      %c24 = arith.constant 24 : index
      %c0_47 = arith.constant 0 : index
      %99 = vector.load %arg8[%c0_46, %c24, %c0_47] : memref<1x128x128xf32, #tpu.memory_space<vmem>>, vector<1x8x128xf32>
      %100 = vector.shape_cast %99 : vector<1x8x128xf32> to vector<8x128xf32>
      %cst_48 = arith.constant 0.000000e+00 : f32
      %101 = vector.broadcast %cst_48 : f32 to vector<1x8x128xf32>
      %102 = arith.select %87, %98, %101 : vector<1x8x128xi1>, vector<1x8x128xf32>
      %cst_49 = arith.constant dense<0.000000e+00> : vector<8x128xf32>
      %103 = vector.multi_reduction <add>, %102, %cst_49 [0] : vector<1x8x128xf32> to vector<8x128xf32>
      %104 = arith.addf %100, %103 : vector<8x128xf32>
      %c0_50 = arith.constant 0 : index
      %c24_51 = arith.constant 24 : index
      %c0_52 = arith.constant 0 : index
      %105 = vector.load %arg8[%c0_50, %c24_51, %c0_52] : memref<1x128x128xf32, #tpu.memory_space<vmem>>, vector<1x8x128xf32>
      %106 = vector.shape_cast %105 : vector<1x8x128xf32> to vector<8x128xf32>
      %107 = vector.shape_cast %104 : vector<8x128xf32> to vector<1x8x128xf32>
      tpu.vector_store %arg8[%c0_50, %c24_51, %c0_52], %107 {strides = array<i32>} : memref<1x128x128xf32, #tpu.memory_space<vmem>>, vector<1x8x128xf32>,
      %c0_53 = arith.constant 0 : index
      %c88 = arith.constant 88 : index
      %c0_54 = arith.constant 0 : index
      %108 = vector.load %arg8[%c0_53, %c88, %c0_54] : memref<1x128x128xf32, #tpu.memory_space<vmem>>, vector<1x8x128xf32>
      %109 = vector.shape_cast %108 : vector<1x8x128xf32> to vector<8x128xf32>
      %cst_55 = arith.constant 0.000000e+00 : f32
      %110 = vector.broadcast %cst_55 : f32 to vector<1x8x128xf32>
      %111 = arith.select %14, %98, %110 : vector<1x8x128xi1>, vector<1x8x128xf32>
      %cst_56 = arith.constant dense<0.000000e+00> : vector<8x128xf32>
      %112 = vector.multi_reduction <add>, %111, %cst_56 [0] : vector<1x8x128xf32> to vector<8x128xf32>
      %113 = arith.addf %109, %112 : vector<8x128xf32>
      %c0_57 = arith.constant 0 : index
      %c88_58 = arith.constant 88 : index
      %c0_59 = arith.constant 0 : index
      %114 = vector.load %arg8[%c0_57, %c88_58, %c0_59] : memref<1x128x128xf32, #tpu.memory_space<vmem>>, vector<1x8x128xf32>
      %115 = vector.shape_cast %114 : vector<1x8x128xf32> to vector<8x128xf32>
      %116 = vector.shape_cast %113 : vector<8x128xf32> to vector<1x8x128xf32>
      tpu.vector_store %arg8[%c0_57, %c88_58, %c0_59], %116 {strides = array<i32>} : memref<1x128x128xf32, #tpu.memory_space<vmem>>, vector<1x8x128xf32>,
    } else {
    }
    %37 = arith.index_cast %arg0 : i32 to index
    %c4 = arith.constant 4 : index
    %38 = memref.load %arg3[%37, %c4] : memref<2x8xi32, #tpu.memory_space<smem>>
    %c0_i32_31 = arith.constant 0 : i32
    %39 = arith.cmpi sgt, %38, %c0_i32_31 : i32
    %40 = arith.extui %39 : i1 to i32
    %c0_i32_32 = arith.constant 0 : i32
    %41 = arith.cmpi ne, %40, %c0_i32_32 : i32
    scf.if %41 {
      %57 = arith.index_cast %arg0 : i32 to index
      %c4_39 = arith.constant 4 : index
      %58 = memref.load %arg5[%57, %c4_39] : memref<2x8xf32, #tpu.memory_space<smem>>
      %59 = vector.broadcast %58 : f32 to vector<1x8x128xf32>
      %60 = arith.addf %21, %59 : vector<1x8x128xf32>
      %61 = arith.index_cast %arg0 : i32 to index
      %c4_40 = arith.constant 4 : index
      %62 = memref.load %arg4[%61, %c4_40] : memref<2x32xf32, #tpu.memory_space<smem>>
      %63 = vector.broadcast %62 : f32 to vector<1x8x128xf32>
      %64 = arith.mulf %6, %63 : vector<1x8x128xf32>
      %65 = arith.addf %60, %64 : vector<1x8x128xf32>
      %66 = arith.index_cast %arg0 : i32 to index
      %c12 = arith.constant 12 : index
      %67 = memref.load %arg4[%66, %c12] : memref<2x32xf32, #tpu.memory_space<smem>>
      %68 = vector.broadcast %67 : f32 to vector<1x8x128xf32>
      %69 = arith.mulf %8, %68 : vector<1x8x128xf32>
      %70 = arith.addf %65, %69 : vector<1x8x128xf32>
      %71 = arith.index_cast %arg0 : i32 to index
      %c20 = arith.constant 20 : index
      %72 = memref.load %arg4[%71, %c20] : memref<2x32xf32, #tpu.memory_space<smem>>
      %73 = vector.broadcast %72 : f32 to vector<1x8x128xf32>
      %74 = arith.mulf %10, %73 : vector<1x8x128xf32>
      %75 = arith.addf %70, %74 : vector<1x8x128xf32>
      %76 = arith.index_cast %arg0 : i32 to index
      %c28 = arith.constant 28 : index
      %77 = memref.load %arg4[%76, %c28] : memref<2x32xf32, #tpu.memory_space<smem>>
      %78 = vector.broadcast %77 : f32 to vector<1x8x128xf32>
      %79 = arith.mulf %12, %78 : vector<1x8x128xf32>
      %80 = arith.addf %75, %79 : vector<1x8x128xf32>
      %cst = arith.constant 0.000000e+00 : f32
      %81 = vector.broadcast %cst : f32 to vector<1x8x128xf32>
      %82 = arith.maximumf %80, %81 : vector<1x8x128xf32>
      %cst_41 = arith.constant 9.99999996E-13 : f32
      %83 = vector.broadcast %cst_41 : f32 to vector<1x8x128xf32>
      %84 = arith.addf %82, %83 : vector<1x8x128xf32>
      %85 = math.sqrt %84 : vector<1x8x128xf32>
      %c4_i32 = arith.constant 4 : i32
      %86 = vector.broadcast %c4_i32 : i32 to vector<1x8x128xi32>
      %87 = arith.cmpi eq, %4, %86 : vector<1x8x128xi32>
      %cst_42 = arith.constant 5.000000e-01 : f32
      %88 = vector.broadcast %cst_42 : f32 to vector<1x8x128xf32>
      %89 = arith.subf %85, %88 : vector<1x8x128xf32>
      %cst_43 = arith.constant 3.000000e+00 : f32
      %90 = vector.broadcast %cst_43 : f32 to vector<1x8x128xf32>
      %91 = arith.subf %90, %85 : vector<1x8x128xf32>
      %92 = arith.select %87, %89, %91 : vector<1x8x128xi1>, vector<1x8x128xf32>
      %cst_44 = arith.constant 0.000000e+00 : f32
      %93 = vector.broadcast %cst_44 : f32 to vector<1x8x128xf32>
      %94 = arith.maximumf %92, %93 : vector<1x8x128xf32>
      %95 = arith.mulf %94, %94 : vector<1x8x128xf32>
      %cst_45 = arith.constant 1.000000e+00 : f32
      %96 = vector.broadcast %cst_45 : f32 to vector<1x8x128xf32>
      %97 = arith.addf %95, %96 : vector<1x8x128xf32>
      %98 = math.log %97 : vector<1x8x128xf32>
      %c0_46 = arith.constant 0 : index
      %c32 = arith.constant 32 : index
      %c0_47 = arith.constant 0 : index
      %99 = vector.load %arg8[%c0_46, %c32, %c0_47] : memref<1x128x128xf32, #tpu.memory_space<vmem>>, vector<1x8x128xf32>
      %100 = vector.shape_cast %99 : vector<1x8x128xf32> to vector<8x128xf32>
      %cst_48 = arith.constant 0.000000e+00 : f32
      %101 = vector.broadcast %cst_48 : f32 to vector<1x8x128xf32>
      %102 = arith.select %87, %98, %101 : vector<1x8x128xi1>, vector<1x8x128xf32>
      %cst_49 = arith.constant dense<0.000000e+00> : vector<8x128xf32>
      %103 = vector.multi_reduction <add>, %102, %cst_49 [0] : vector<1x8x128xf32> to vector<8x128xf32>
      %104 = arith.addf %100, %103 : vector<8x128xf32>
      %c0_50 = arith.constant 0 : index
      %c32_51 = arith.constant 32 : index
      %c0_52 = arith.constant 0 : index
      %105 = vector.load %arg8[%c0_50, %c32_51, %c0_52] : memref<1x128x128xf32, #tpu.memory_space<vmem>>, vector<1x8x128xf32>
      %106 = vector.shape_cast %105 : vector<1x8x128xf32> to vector<8x128xf32>
      %107 = vector.shape_cast %104 : vector<8x128xf32> to vector<1x8x128xf32>
      tpu.vector_store %arg8[%c0_50, %c32_51, %c0_52], %107 {strides = array<i32>} : memref<1x128x128xf32, #tpu.memory_space<vmem>>, vector<1x8x128xf32>,
      %c0_53 = arith.constant 0 : index
      %c96 = arith.constant 96 : index
      %c0_54 = arith.constant 0 : index
      %108 = vector.load %arg8[%c0_53, %c96, %c0_54] : memref<1x128x128xf32, #tpu.memory_space<vmem>>, vector<1x8x128xf32>
      %109 = vector.shape_cast %108 : vector<1x8x128xf32> to vector<8x128xf32>
      %cst_55 = arith.constant 0.000000e+00 : f32
      %110 = vector.broadcast %cst_55 : f32 to vector<1x8x128xf32>
      %111 = arith.select %14, %98, %110 : vector<1x8x128xi1>, vector<1x8x128xf32>
      %cst_56 = arith.constant dense<0.000000e+00> : vector<8x128xf32>
      %112 = vector.multi_reduction <add>, %111, %cst_56 [0] : vector<1x8x128xf32> to vector<8x128xf32>
      %113 = arith.addf %109, %112 : vector<8x128xf32>
      %c0_57 = arith.constant 0 : index
      %c96_58 = arith.constant 96 : index
      %c0_59 = arith.constant 0 : index
      %114 = vector.load %arg8[%c0_57, %c96_58, %c0_59] : memref<1x128x128xf32, #tpu.memory_space<vmem>>, vector<1x8x128xf32>
      %115 = vector.shape_cast %114 : vector<1x8x128xf32> to vector<8x128xf32>
      %116 = vector.shape_cast %113 : vector<8x128xf32> to vector<1x8x128xf32>
      tpu.vector_store %arg8[%c0_57, %c96_58, %c0_59], %116 {strides = array<i32>} : memref<1x128x128xf32, #tpu.memory_space<vmem>>, vector<1x8x128xf32>,
    } else {
    }
    %42 = arith.index_cast %arg0 : i32 to index
    %c5 = arith.constant 5 : index
    %43 = memref.load %arg3[%42, %c5] : memref<2x8xi32, #tpu.memory_space<smem>>
    %c0_i32_33 = arith.constant 0 : i32
    %44 = arith.cmpi sgt, %43, %c0_i32_33 : i32
    %45 = arith.extui %44 : i1 to i32
    %c0_i32_34 = arith.constant 0 : i32
    %46 = arith.cmpi ne, %45, %c0_i32_34 : i32
    scf.if %46 {
      %57 = arith.index_cast %arg0 : i32 to index
      %c5_39 = arith.constant 5 : index
      %58 = memref.load %arg5[%57, %c5_39] : memref<2x8xf32, #tpu.memory_space<smem>>
      %59 = vector.broadcast %58 : f32 to vector<1x8x128xf32>
      %60 = arith.addf %21, %59 : vector<1x8x128xf32>
      %61 = arith.index_cast %arg0 : i32 to index
      %c5_40 = arith.constant 5 : index
      %62 = memref.load %arg4[%61, %c5_40] : memref<2x32xf32, #tpu.memory_space<smem>>
      %63 = vector.broadcast %62 : f32 to vector<1x8x128xf32>
      %64 = arith.mulf %6, %63 : vector<1x8x128xf32>
      %65 = arith.addf %60, %64 : vector<1x8x128xf32>
      %66 = arith.index_cast %arg0 : i32 to index
      %c13 = arith.constant 13 : index
      %67 = memref.load %arg4[%66, %c13] : memref<2x32xf32, #tpu.memory_space<smem>>
      %68 = vector.broadcast %67 : f32 to vector<1x8x128xf32>
      %69 = arith.mulf %8, %68 : vector<1x8x128xf32>
      %70 = arith.addf %65, %69 : vector<1x8x128xf32>
      %71 = arith.index_cast %arg0 : i32 to index
      %c21 = arith.constant 21 : index
      %72 = memref.load %arg4[%71, %c21] : memref<2x32xf32, #tpu.memory_space<smem>>
      %73 = vector.broadcast %72 : f32 to vector<1x8x128xf32>
      %74 = arith.mulf %10, %73 : vector<1x8x128xf32>
      %75 = arith.addf %70, %74 : vector<1x8x128xf32>
      %76 = arith.index_cast %arg0 : i32 to index
      %c29 = arith.constant 29 : index
      %77 = memref.load %arg4[%76, %c29] : memref<2x32xf32, #tpu.memory_space<smem>>
      %78 = vector.broadcast %77 : f32 to vector<1x8x128xf32>
      %79 = arith.mulf %12, %78 : vector<1x8x128xf32>
      %80 = arith.addf %75, %79 : vector<1x8x128xf32>
      %cst = arith.constant 0.000000e+00 : f32
      %81 = vector.broadcast %cst : f32 to vector<1x8x128xf32>
      %82 = arith.maximumf %80, %81 : vector<1x8x128xf32>
      %cst_41 = arith.constant 9.99999996E-13 : f32
      %83 = vector.broadcast %cst_41 : f32 to vector<1x8x128xf32>
      %84 = arith.addf %82, %83 : vector<1x8x128xf32>
      %85 = math.sqrt %84 : vector<1x8x128xf32>
      %c5_i32 = arith.constant 5 : i32
      %86 = vector.broadcast %c5_i32 : i32 to vector<1x8x128xi32>
      %87 = arith.cmpi eq, %4, %86 : vector<1x8x128xi32>
      %cst_42 = arith.constant 5.000000e-01 : f32
      %88 = vector.broadcast %cst_42 : f32 to vector<1x8x128xf32>
      %89 = arith.subf %85, %88 : vector<1x8x128xf32>
      %cst_43 = arith.constant 3.000000e+00 : f32
      %90 = vector.broadcast %cst_43 : f32 to vector<1x8x128xf32>
      %91 = arith.subf %90, %85 : vector<1x8x128xf32>
      %92 = arith.select %87, %89, %91 : vector<1x8x128xi1>, vector<1x8x128xf32>
      %cst_44 = arith.constant 0.000000e+00 : f32
      %93 = vector.broadcast %cst_44 : f32 to vector<1x8x128xf32>
      %94 = arith.maximumf %92, %93 : vector<1x8x128xf32>
      %95 = arith.mulf %94, %94 : vector<1x8x128xf32>
      %cst_45 = arith.constant 1.000000e+00 : f32
      %96 = vector.broadcast %cst_45 : f32 to vector<1x8x128xf32>
      %97 = arith.addf %95, %96 : vector<1x8x128xf32>
      %98 = math.log %97 : vector<1x8x128xf32>
      %c0_46 = arith.constant 0 : index
      %c40 = arith.constant 40 : index
      %c0_47 = arith.constant 0 : index
      %99 = vector.load %arg8[%c0_46, %c40, %c0_47] : memref<1x128x128xf32, #tpu.memory_space<vmem>>, vector<1x8x128xf32>
      %100 = vector.shape_cast %99 : vector<1x8x128xf32> to vector<8x128xf32>
      %cst_48 = arith.constant 0.000000e+00 : f32
      %101 = vector.broadcast %cst_48 : f32 to vector<1x8x128xf32>
      %102 = arith.select %87, %98, %101 : vector<1x8x128xi1>, vector<1x8x128xf32>
      %cst_49 = arith.constant dense<0.000000e+00> : vector<8x128xf32>
      %103 = vector.multi_reduction <add>, %102, %cst_49 [0] : vector<1x8x128xf32> to vector<8x128xf32>
      %104 = arith.addf %100, %103 : vector<8x128xf32>
      %c0_50 = arith.constant 0 : index
      %c40_51 = arith.constant 40 : index
      %c0_52 = arith.constant 0 : index
      %105 = vector.load %arg8[%c0_50, %c40_51, %c0_52] : memref<1x128x128xf32, #tpu.memory_space<vmem>>, vector<1x8x128xf32>
      %106 = vector.shape_cast %105 : vector<1x8x128xf32> to vector<8x128xf32>
      %107 = vector.shape_cast %104 : vector<8x128xf32> to vector<1x8x128xf32>
      tpu.vector_store %arg8[%c0_50, %c40_51, %c0_52], %107 {strides = array<i32>} : memref<1x128x128xf32, #tpu.memory_space<vmem>>, vector<1x8x128xf32>,
      %c0_53 = arith.constant 0 : index
      %c104 = arith.constant 104 : index
      %c0_54 = arith.constant 0 : index
      %108 = vector.load %arg8[%c0_53, %c104, %c0_54] : memref<1x128x128xf32, #tpu.memory_space<vmem>>, vector<1x8x128xf32>
      %109 = vector.shape_cast %108 : vector<1x8x128xf32> to vector<8x128xf32>
      %cst_55 = arith.constant 0.000000e+00 : f32
      %110 = vector.broadcast %cst_55 : f32 to vector<1x8x128xf32>
      %111 = arith.select %14, %98, %110 : vector<1x8x128xi1>, vector<1x8x128xf32>
      %cst_56 = arith.constant dense<0.000000e+00> : vector<8x128xf32>
      %112 = vector.multi_reduction <add>, %111, %cst_56 [0] : vector<1x8x128xf32> to vector<8x128xf32>
      %113 = arith.addf %109, %112 : vector<8x128xf32>
      %c0_57 = arith.constant 0 : index
      %c104_58 = arith.constant 104 : index
      %c0_59 = arith.constant 0 : index
      %114 = vector.load %arg8[%c0_57, %c104_58, %c0_59] : memref<1x128x128xf32, #tpu.memory_space<vmem>>, vector<1x8x128xf32>
      %115 = vector.shape_cast %114 : vector<1x8x128xf32> to vector<8x128xf32>
      %116 = vector.shape_cast %113 : vector<8x128xf32> to vector<1x8x128xf32>
      tpu.vector_store %arg8[%c0_57, %c104_58, %c0_59], %116 {strides = array<i32>} : memref<1x128x128xf32, #tpu.memory_space<vmem>>, vector<1x8x128xf32>,
    } else {
    }
    %47 = arith.index_cast %arg0 : i32 to index
    %c6 = arith.constant 6 : index
    %48 = memref.load %arg3[%47, %c6] : memref<2x8xi32, #tpu.memory_space<smem>>
    %c0_i32_35 = arith.constant 0 : i32
    %49 = arith.cmpi sgt, %48, %c0_i32_35 : i32
    %50 = arith.extui %49 : i1 to i32
    %c0_i32_36 = arith.constant 0 : i32
    %51 = arith.cmpi ne, %50, %c0_i32_36 : i32
    scf.if %51 {
      %57 = arith.index_cast %arg0 : i32 to index
      %c6_39 = arith.constant 6 : index
      %58 = memref.load %arg5[%57, %c6_39] : memref<2x8xf32, #tpu.memory_space<smem>>
      %59 = vector.broadcast %58 : f32 to vector<1x8x128xf32>
      %60 = arith.addf %21, %59 : vector<1x8x128xf32>
      %61 = arith.index_cast %arg0 : i32 to index
      %c6_40 = arith.constant 6 : index
      %62 = memref.load %arg4[%61, %c6_40] : memref<2x32xf32, #tpu.memory_space<smem>>
      %63 = vector.broadcast %62 : f32 to vector<1x8x128xf32>
      %64 = arith.mulf %6, %63 : vector<1x8x128xf32>
      %65 = arith.addf %60, %64 : vector<1x8x128xf32>
      %66 = arith.index_cast %arg0 : i32 to index
      %c14 = arith.constant 14 : index
      %67 = memref.load %arg4[%66, %c14] : memref<2x32xf32, #tpu.memory_space<smem>>
      %68 = vector.broadcast %67 : f32 to vector<1x8x128xf32>
      %69 = arith.mulf %8, %68 : vector<1x8x128xf32>
      %70 = arith.addf %65, %69 : vector<1x8x128xf32>
      %71 = arith.index_cast %arg0 : i32 to index
      %c22 = arith.constant 22 : index
      %72 = memref.load %arg4[%71, %c22] : memref<2x32xf32, #tpu.memory_space<smem>>
      %73 = vector.broadcast %72 : f32 to vector<1x8x128xf32>
      %74 = arith.mulf %10, %73 : vector<1x8x128xf32>
      %75 = arith.addf %70, %74 : vector<1x8x128xf32>
      %76 = arith.index_cast %arg0 : i32 to index
      %c30 = arith.constant 30 : index
      %77 = memref.load %arg4[%76, %c30] : memref<2x32xf32, #tpu.memory_space<smem>>
      %78 = vector.broadcast %77 : f32 to vector<1x8x128xf32>
      %79 = arith.mulf %12, %78 : vector<1x8x128xf32>
      %80 = arith.addf %75, %79 : vector<1x8x128xf32>
      %cst = arith.constant 0.000000e+00 : f32
      %81 = vector.broadcast %cst : f32 to vector<1x8x128xf32>
      %82 = arith.maximumf %80, %81 : vector<1x8x128xf32>
      %cst_41 = arith.constant 9.99999996E-13 : f32
      %83 = vector.broadcast %cst_41 : f32 to vector<1x8x128xf32>
      %84 = arith.addf %82, %83 : vector<1x8x128xf32>
      %85 = math.sqrt %84 : vector<1x8x128xf32>
      %c6_i32 = arith.constant 6 : i32
      %86 = vector.broadcast %c6_i32 : i32 to vector<1x8x128xi32>
      %87 = arith.cmpi eq, %4, %86 : vector<1x8x128xi32>
      %cst_42 = arith.constant 5.000000e-01 : f32
      %88 = vector.broadcast %cst_42 : f32 to vector<1x8x128xf32>
      %89 = arith.subf %85, %88 : vector<1x8x128xf32>
      %cst_43 = arith.constant 3.000000e+00 : f32
      %90 = vector.broadcast %cst_43 : f32 to vector<1x8x128xf32>
      %91 = arith.subf %90, %85 : vector<1x8x128xf32>
      %92 = arith.select %87, %89, %91 : vector<1x8x128xi1>, vector<1x8x128xf32>
      %cst_44 = arith.constant 0.000000e+00 : f32
      %93 = vector.broadcast %cst_44 : f32 to vector<1x8x128xf32>
      %94 = arith.maximumf %92, %93 : vector<1x8x128xf32>
      %95 = arith.mulf %94, %94 : vector<1x8x128xf32>
      %cst_45 = arith.constant 1.000000e+00 : f32
      %96 = vector.broadcast %cst_45 : f32 to vector<1x8x128xf32>
      %97 = arith.addf %95, %96 : vector<1x8x128xf32>
      %98 = math.log %97 : vector<1x8x128xf32>
      %c0_46 = arith.constant 0 : index
      %c48 = arith.constant 48 : index
      %c0_47 = arith.constant 0 : index
      %99 = vector.load %arg8[%c0_46, %c48, %c0_47] : memref<1x128x128xf32, #tpu.memory_space<vmem>>, vector<1x8x128xf32>
      %100 = vector.shape_cast %99 : vector<1x8x128xf32> to vector<8x128xf32>
      %cst_48 = arith.constant 0.000000e+00 : f32
      %101 = vector.broadcast %cst_48 : f32 to vector<1x8x128xf32>
      %102 = arith.select %87, %98, %101 : vector<1x8x128xi1>, vector<1x8x128xf32>
      %cst_49 = arith.constant dense<0.000000e+00> : vector<8x128xf32>
      %103 = vector.multi_reduction <add>, %102, %cst_49 [0] : vector<1x8x128xf32> to vector<8x128xf32>
      %104 = arith.addf %100, %103 : vector<8x128xf32>
      %c0_50 = arith.constant 0 : index
      %c48_51 = arith.constant 48 : index
      %c0_52 = arith.constant 0 : index
      %105 = vector.load %arg8[%c0_50, %c48_51, %c0_52] : memref<1x128x128xf32, #tpu.memory_space<vmem>>, vector<1x8x128xf32>
      %106 = vector.shape_cast %105 : vector<1x8x128xf32> to vector<8x128xf32>
      %107 = vector.shape_cast %104 : vector<8x128xf32> to vector<1x8x128xf32>
      tpu.vector_store %arg8[%c0_50, %c48_51, %c0_52], %107 {strides = array<i32>} : memref<1x128x128xf32, #tpu.memory_space<vmem>>, vector<1x8x128xf32>,
      %c0_53 = arith.constant 0 : index
      %c112 = arith.constant 112 : index
      %c0_54 = arith.constant 0 : index
      %108 = vector.load %arg8[%c0_53, %c112, %c0_54] : memref<1x128x128xf32, #tpu.memory_space<vmem>>, vector<1x8x128xf32>
      %109 = vector.shape_cast %108 : vector<1x8x128xf32> to vector<8x128xf32>
      %cst_55 = arith.constant 0.000000e+00 : f32
      %110 = vector.broadcast %cst_55 : f32 to vector<1x8x128xf32>
      %111 = arith.select %14, %98, %110 : vector<1x8x128xi1>, vector<1x8x128xf32>
      %cst_56 = arith.constant dense<0.000000e+00> : vector<8x128xf32>
      %112 = vector.multi_reduction <add>, %111, %cst_56 [0] : vector<1x8x128xf32> to vector<8x128xf32>
      %113 = arith.addf %109, %112 : vector<8x128xf32>
      %c0_57 = arith.constant 0 : index
      %c112_58 = arith.constant 112 : index
      %c0_59 = arith.constant 0 : index
      %114 = vector.load %arg8[%c0_57, %c112_58, %c0_59] : memref<1x128x128xf32, #tpu.memory_space<vmem>>, vector<1x8x128xf32>
      %115 = vector.shape_cast %114 : vector<1x8x128xf32> to vector<8x128xf32>
      %116 = vector.shape_cast %113 : vector<8x128xf32> to vector<1x8x128xf32>
      tpu.vector_store %arg8[%c0_57, %c112_58, %c0_59], %116 {strides = array<i32>} : memref<1x128x128xf32, #tpu.memory_space<vmem>>, vector<1x8x128xf32>,
    } else {
    }
    %52 = arith.index_cast %arg0 : i32 to index
    %c7 = arith.constant 7 : index
    %53 = memref.load %arg3[%52, %c7] : memref<2x8xi32, #tpu.memory_space<smem>>
    %c0_i32_37 = arith.constant 0 : i32
    %54 = arith.cmpi sgt, %53, %c0_i32_37 : i32
    %55 = arith.extui %54 : i1 to i32
    %c0_i32_38 = arith.constant 0 : i32
    %56 = arith.cmpi ne, %55, %c0_i32_38 : i32
    scf.if %56 {
      %57 = arith.index_cast %arg0 : i32 to index
      %c7_39 = arith.constant 7 : index
      %58 = memref.load %arg5[%57, %c7_39] : memref<2x8xf32, #tpu.memory_space<smem>>
      %59 = vector.broadcast %58 : f32 to vector<1x8x128xf32>
      %60 = arith.addf %21, %59 : vector<1x8x128xf32>
      %61 = arith.index_cast %arg0 : i32 to index
      %c7_40 = arith.constant 7 : index
      %62 = memref.load %arg4[%61, %c7_40] : memref<2x32xf32, #tpu.memory_space<smem>>
      %63 = vector.broadcast %62 : f32 to vector<1x8x128xf32>
      %64 = arith.mulf %6, %63 : vector<1x8x128xf32>
      %65 = arith.addf %60, %64 : vector<1x8x128xf32>
      %66 = arith.index_cast %arg0 : i32 to index
      %c15 = arith.constant 15 : index
      %67 = memref.load %arg4[%66, %c15] : memref<2x32xf32, #tpu.memory_space<smem>>
      %68 = vector.broadcast %67 : f32 to vector<1x8x128xf32>
      %69 = arith.mulf %8, %68 : vector<1x8x128xf32>
      %70 = arith.addf %65, %69 : vector<1x8x128xf32>
      %71 = arith.index_cast %arg0 : i32 to index
      %c23 = arith.constant 23 : index
      %72 = memref.load %arg4[%71, %c23] : memref<2x32xf32, #tpu.memory_space<smem>>
      %73 = vector.broadcast %72 : f32 to vector<1x8x128xf32>
      %74 = arith.mulf %10, %73 : vector<1x8x128xf32>
      %75 = arith.addf %70, %74 : vector<1x8x128xf32>
      %76 = arith.index_cast %arg0 : i32 to index
      %c31 = arith.constant 31 : index
      %77 = memref.load %arg4[%76, %c31] : memref<2x32xf32, #tpu.memory_space<smem>>
      %78 = vector.broadcast %77 : f32 to vector<1x8x128xf32>
      %79 = arith.mulf %12, %78 : vector<1x8x128xf32>
      %80 = arith.addf %75, %79 : vector<1x8x128xf32>
      %cst = arith.constant 0.000000e+00 : f32
      %81 = vector.broadcast %cst : f32 to vector<1x8x128xf32>
      %82 = arith.maximumf %80, %81 : vector<1x8x128xf32>
      %cst_41 = arith.constant 9.99999996E-13 : f32
      %83 = vector.broadcast %cst_41 : f32 to vector<1x8x128xf32>
      %84 = arith.addf %82, %83 : vector<1x8x128xf32>
      %85 = math.sqrt %84 : vector<1x8x128xf32>
      %c7_i32 = arith.constant 7 : i32
      %86 = vector.broadcast %c7_i32 : i32 to vector<1x8x128xi32>
      %87 = arith.cmpi eq, %4, %86 : vector<1x8x128xi32>
      %cst_42 = arith.constant 5.000000e-01 : f32
      %88 = vector.broadcast %cst_42 : f32 to vector<1x8x128xf32>
      %89 = arith.subf %85, %88 : vector<1x8x128xf32>
      %cst_43 = arith.constant 3.000000e+00 : f32
      %90 = vector.broadcast %cst_43 : f32 to vector<1x8x128xf32>
      %91 = arith.subf %90, %85 : vector<1x8x128xf32>
      %92 = arith.select %87, %89, %91 : vector<1x8x128xi1>, vector<1x8x128xf32>
      %cst_44 = arith.constant 0.000000e+00 : f32
      %93 = vector.broadcast %cst_44 : f32 to vector<1x8x128xf32>
      %94 = arith.maximumf %92, %93 : vector<1x8x128xf32>
      %95 = arith.mulf %94, %94 : vector<1x8x128xf32>
      %cst_45 = arith.constant 1.000000e+00 : f32
      %96 = vector.broadcast %cst_45 : f32 to vector<1x8x128xf32>
      %97 = arith.addf %95, %96 : vector<1x8x128xf32>
      %98 = math.log %97 : vector<1x8x128xf32>
      %c0_46 = arith.constant 0 : index
      %c56 = arith.constant 56 : index
      %c0_47 = arith.constant 0 : index
      %99 = vector.load %arg8[%c0_46, %c56, %c0_47] : memref<1x128x128xf32, #tpu.memory_space<vmem>>, vector<1x8x128xf32>
      %100 = vector.shape_cast %99 : vector<1x8x128xf32> to vector<8x128xf32>
      %cst_48 = arith.constant 0.000000e+00 : f32
      %101 = vector.broadcast %cst_48 : f32 to vector<1x8x128xf32>
      %102 = arith.select %87, %98, %101 : vector<1x8x128xi1>, vector<1x8x128xf32>
      %cst_49 = arith.constant dense<0.000000e+00> : vector<8x128xf32>
      %103 = vector.multi_reduction <add>, %102, %cst_49 [0] : vector<1x8x128xf32> to vector<8x128xf32>
      %104 = arith.addf %100, %103 : vector<8x128xf32>
      %c0_50 = arith.constant 0 : index
      %c56_51 = arith.constant 56 : index
      %c0_52 = arith.constant 0 : index
      %105 = vector.load %arg8[%c0_50, %c56_51, %c0_52] : memref<1x128x128xf32, #tpu.memory_space<vmem>>, vector<1x8x128xf32>
      %106 = vector.shape_cast %105 : vector<1x8x128xf32> to vector<8x128xf32>
      %107 = vector.shape_cast %104 : vector<8x128xf32> to vector<1x8x128xf32>
      tpu.vector_store %arg8[%c0_50, %c56_51, %c0_52], %107 {strides = array<i32>} : memref<1x128x128xf32, #tpu.memory_space<vmem>>, vector<1x8x128xf32>,
      %c0_53 = arith.constant 0 : index
      %c120 = arith.constant 120 : index
      %c0_54 = arith.constant 0 : index
      %108 = vector.load %arg8[%c0_53, %c120, %c0_54] : memref<1x128x128xf32, #tpu.memory_space<vmem>>, vector<1x8x128xf32>
      %109 = vector.shape_cast %108 : vector<1x8x128xf32> to vector<8x128xf32>
      %cst_55 = arith.constant 0.000000e+00 : f32
      %110 = vector.broadcast %cst_55 : f32 to vector<1x8x128xf32>
      %111 = arith.select %14, %98, %110 : vector<1x8x128xi1>, vector<1x8x128xf32>
      %cst_56 = arith.constant dense<0.000000e+00> : vector<8x128xf32>
      %112 = vector.multi_reduction <add>, %111, %cst_56 [0] : vector<1x8x128xf32> to vector<8x128xf32>
      %113 = arith.addf %109, %112 : vector<8x128xf32>
      %c0_57 = arith.constant 0 : index
      %c120_58 = arith.constant 120 : index
      %c0_59 = arith.constant 0 : index
      %114 = vector.load %arg8[%c0_57, %c120_58, %c0_59] : memref<1x128x128xf32, #tpu.memory_space<vmem>>, vector<1x8x128xf32>
      %115 = vector.shape_cast %114 : vector<1x8x128xf32> to vector<8x128xf32>
      %116 = vector.shape_cast %113 : vector<8x128xf32> to vector<1x8x128xf32>
      tpu.vector_store %arg8[%c0_57, %c120_58, %c0_59], %116 {strides = array<i32>} : memref<1x128x128xf32, #tpu.memory_space<vmem>>, vector<1x8x128xf32>,
    } else {
    }
    return
  }
  func.func @transform_0(%arg0: i32, %arg1: i32, %arg2: i32) -> (i32, i32) {
    %c0_i32 = arith.constant 0 : i32
    %c0_i32_0 = arith.constant 0 : i32
    %c0_i32_1 = arith.constant 0 : i32
    return %c0_i32, %c0_i32_0 : i32, i32
  }
  func.func @transform_1(%arg0: i32, %arg1: i32, %arg2: i32) -> (i32, i32) {
    %c0_i32 = arith.constant 0 : i32
    %c0_i32_0 = arith.constant 0 : i32
    %c0_i32_1 = arith.constant 0 : i32
    return %c0_i32, %c0_i32_0 : i32, i32
  }
  func.func @transform_2(%arg0: i32, %arg1: i32, %arg2: i32) -> (i32, i32) {
    %c0_i32 = arith.constant 0 : i32
    %c0_i32_0 = arith.constant 0 : i32
    %c0_i32_1 = arith.constant 0 : i32
    return %c0_i32, %c0_i32_0 : i32, i32
  }
  func.func @transform_3(%arg0: i32, %arg1: i32, %arg2: i32) -> (i32, i32, i32, i32, i32) {
    %c1_i32 = arith.constant 1 : i32
    %0 = arith.muli %arg1, %c1_i32 : i32
    %1 = arith.addi %0, %arg2 : i32
    %c0_i32 = arith.constant 0 : i32
    %c0_i32_0 = arith.constant 0 : i32
    %c0_i32_1 = arith.constant 0 : i32
    %c0_i32_2 = arith.constant 0 : i32
    return %arg0, %c0_i32, %1, %c0_i32_0, %c0_i32_1 : i32, i32, i32, i32, i32
  }
  func.func @transform_4(%arg0: i32, %arg1: i32, %arg2: i32) -> (i32, i32, i32, i32) {
    %c1_i32 = arith.constant 1 : i32
    %0 = arith.muli %arg1, %c1_i32 : i32
    %1 = arith.addi %0, %arg2 : i32
    %c0_i32 = arith.constant 0 : i32
    %c0_i32_0 = arith.constant 0 : i32
    %c0_i32_1 = arith.constant 0 : i32
    return %arg0, %1, %c0_i32, %c0_i32_0 : i32, i32, i32, i32
  }
  func.func @transform_5(%arg0: i32, %arg1: i32, %arg2: i32) -> (i32, i32, i32) {
    %c1_i32 = arith.constant 1 : i32
    %0 = arith.muli %arg0, %c1_i32 : i32
    %1 = arith.addi %0, %arg1 : i32
    %c0_i32 = arith.constant 0 : i32
    %c0_i32_0 = arith.constant 0 : i32
    %c0_i32_1 = arith.constant 0 : i32
    return %1, %c0_i32, %c0_i32_0 : i32, i32, i32
  }
}

</mosaic_0001>

<bundles_post_ra>
// kernel: emb_loss.2
= control target key start
LH: loop header
LB: loop body
LE: loop exit
PB: predicated region body
PF: predicated region fallthrough
CT: control target
= control target key end

     0   :  { %s773_s12 = smov 0   ;;  %s775_s13 = smov 0   ;;  %s968_s0 = inlined_call_operand.vmem [shape: f32[2,4,1,8,128], index: 0, kind: input, shape index: {}]   ;;  %s969_s1 = inlined_call_operand.vmem [shape: s32[2,1,8,128], index: 1, kind: input, shape index: {}]   ;;  %s970_s2 = inlined_call_operand.vmem [shape: s32[2,1,8,128], index: 2, kind: input, shape index: {}]   ;;  %s971_s3 = inlined_call_operand.vmem [shape: f32[2,384,128], index: 3, kind: output, shape index: {}]  }
   0x1   :  { %s777_s14 = smov 0  }
   0x2 LB: > { %s32_s15 = sadd.s32 1, %s746_s13  ;;  %p690_p0 = scmp.ge.s32.totalorder %s750_s14, 1  ;;  %s750_s14 = sphi %s777_s14, %s13_s14   ;;  %s746_s13 = sphi %s775_s13, %s973_s13   ;;  %s742_s12 = sphi %s773_s12, %s972_s12  }
   0x3   : > { %p34_p1 = scmp.ge.s32.totalorder %s32_s15, 2  ;;  %p203_p2 = scmp.lt.s32.totalorder %s750_s14, 3 }
   0x5   : > { %s975_s15 = smov (%p34_p1, %s32_s15), 0  ;;  %p204_p3 = pnand %p690_p0, %p203_p2 }
   0x6   : > { %p249_p4 = scmp.lt.s32.totalorder (!%p204_p3), %s742_s12, 1  ;;  %v752_v2 = vmov (!%p204_p3), 0.0  }
   0x7   : > { %207 = sbr.rel (%p204_p3) target bundleno = 43 (0x2b), region = 32 }
   0xe   : > { %s977_s12 = smov (!%p249_p4, %s742_s12), 1 }
   0xf   : > { %s702_s16 = smul.u32 384, %s977_s12  ;;  %s693_s17 = sshll.u32 %s977_s12, 3 }
  0x10   : > { %s265_s20 = scalar_lea.vmem %s969_s1, %s693_s17  ;;  %s274_s23 = scalar_lea.vmem %s970_s2, %s693_s17 }
  0x11   : > { %s800_s26 = scalar_lea.vmem %s971_s3, %s702_s16  ;;  %v802_v0 = vld [vmem:[%s265_s20] sm:$0xff]  ;;  %s701_s27 = sshll.u32 %s977_s12, 5 }
  0x12   : > { %v804_v1 = vld [vmem:[%s274_s23] sm:$0xff]  ;;  %287 = vst [vmem:[%s800_s26] sm:$0xff] %v752_v2  ;;  %288 = vst [vmem:[%s800_s26 + $0x8] sm:$0xff] %v752_v2  ;;  %vm344_vm0 = vcmp.eq.s32.totalorder %v802_v0, 0  ;;  %vm356_vm2 = vcmp.eq.s32.totalorder %v802_v0, 1  ;;  %s256_s30 = scalar_lea.vmem %s968_s0, %s701_s27  ;;  %vm388_vm4 = vcmp.eq.s32.totalorder %v802_v0, 2  ;;  %vm420_vm6 = vcmp.eq.s32.totalorder %v802_v0, 3 }
  0x13   : > { %289 = vst [vmem:[%s800_s26 + $0x10] sm:$0xff] %v752_v2  ;;  %290 = vst [vmem:[%s800_s26 + $0x18] sm:$0xff] %v752_v2  ;;  %vm345_vm1 = vcmp.eq.s32.totalorder %v804_v1, 0  ;;  %vm357_vm3 = vcmp.eq.s32.totalorder %v804_v1, 1  ;;  %v347_v3 = vsel %vm344_vm0, 1.0, %v752_v2  ;;  %v359_v5 = vsel %vm356_vm2, 1.0, %v752_v2 }
  0x14   : > { %v352_v4 = vsel %vm345_vm1, 1.0, %v752_v2  ;;  %v364_v6 = vsel %vm357_vm3, 1.0, %v752_v2  ;;  %v825_v7 = vld [vmem:[%s256_s30] sm:$0xff]  ;;  %v827_v8 = vld [vmem:[%s256_s30 + $0x8] sm:$0xff]  ;;  %v829_v9 = vld [vmem:[%s256_s30 + $0x10] sm:$0xff]  ;;  %350 = vst [vmem:[%s800_s26 + $0x100] sm:$0xff] %v347_v3 }
  0x15   : > { %v831_v10 = vld [vmem:[%s256_s30 + $0x18] sm:$0xff]  ;;  %v369_v11 = vsel %vm356_vm2, %v825_v7, 0.0  ;;  %v374_v12 = vsel %vm356_vm2, %v827_v8, 0.0  ;;  %v379_v13 = vsel %vm356_vm2, %v829_v9, 0.0  ;;  %355 = vst [vmem:[%s800_s26 + $0x140] sm:$0xff] %v352_v4  ;;  %362 = vst [vmem:[%s800_s26 + $0x108] sm:$0xff] %v359_v5 }
  0x16   : > { %v384_v14 = vsel %vm356_vm2, %v831_v10, 0.0  ;;  %367 = vst [vmem:[%s800_s26 + $0x148] sm:$0xff] %v364_v6  ;;  %vm389_vm5 = vcmp.eq.s32.totalorder %v804_v1, 2  ;;  %vm421_vm7 = vcmp.eq.s32.totalorder %v804_v1, 3  ;;  %372 = vst [vmem:[%s800_s26 + $0x20] sm:$0xff] %v369_v11  ;;  %v391_v15 = vsel %vm388_vm4, 1.0, %v752_v2 }
  0x17   : > { %377 = vst [vmem:[%s800_s26 + $0x28] sm:$0xff] %v374_v12  ;;  %382 = vst [vmem:[%s800_s26 + $0x30] sm:$0xff] %v379_v13  ;;  %v396_v16 = vsel %vm389_vm5, 1.0, %v752_v2  ;;  %v401_v17 = vsel %vm388_vm4, %v825_v7, 0.0  ;;  %v406_v18 = vsel %vm388_vm4, %v827_v8, 0.0  ;;  %v411_v19 = vsel %vm388_vm4, %v829_v9, 0.0 }
  0x18   : > { %387 = vst [vmem:[%s800_s26 + $0x38] sm:$0xff] %v384_v14  ;;  %v416_v20 = vsel %vm388_vm4, %v831_v10, 0.0  ;;  %v423_v21 = vsel %vm420_vm6, 1.0, %v752_v2  ;;  %v428_v22 = vsel %vm421_vm7, 1.0, %v752_v2  ;;  %394 = vst [vmem:[%s800_s26 + $0x110] sm:$0xff] %v391_v15  ;;  %v433_v23 = vsel %vm420_vm6, %v825_v7, 0.0 }
  0x19   : > { %399 = vst [vmem:[%s800_s26 + $0x150] sm:$0xff] %v396_v16  ;;  %404 = vst [vmem:[%s800_s26 + $0x40] sm:$0xff] %v401_v17  ;;  %v438_v24 = vsel %vm420_vm6, %v827_v8, 0.0  ;;  %v443_v25 = vsel %vm420_vm6, %v829_v9, 0.0  ;;  %v448_v26 = vsel %vm420_vm6, %v831_v10, 0.0  ;;  %vm452_vm8 = vcmp.eq.s32.totalorder %v802_v0, 4 }
  0x1a   : > { %409 = vst [vmem:[%s800_s26 + $0x48] sm:$0xff] %v406_v18  ;;  %414 = vst [vmem:[%s800_s26 + $0x50] sm:$0xff] %v411_v19  ;;  %vm453_vm9 = vcmp.eq.s32.totalorder %v804_v1, 4  ;;  %vm484_vm10 = vcmp.eq.s32.totalorder %v802_v0, 5  ;;  %vm485_vm11 = vcmp.eq.s32.totalorder %v804_v1, 5  ;;  %v455_v27 = vsel %vm452_vm8, 1.0, %v752_v2 }
  0x1b   : > { %419 = vst [vmem:[%s800_s26 + $0x58] sm:$0xff] %v416_v20  ;;  %426 = vst [vmem:[%s800_s26 + $0x118] sm:$0xff] %v423_v21  ;;  %v460_v28 = vsel %vm453_vm9, 1.0, %v752_v2  ;;  %v465_v29 = vsel %vm452_vm8, %v825_v7, 0.0  ;;  %v470_v30 = vsel %vm452_vm8, %v827_v8, 0.0  ;;  %v475_v31 = vsel %vm452_vm8, %v829_v9, 0.0 }
  0x1c   : > { %431 = vst [vmem:[%s800_s26 + $0x158] sm:$0xff] %v428_v22  ;;  %436 = vst [vmem:[%s800_s26 + $0x60] sm:$0xff] %v433_v23  ;;  %v480_v32 = vsel %vm452_vm8, %v831_v10, 0.0  ;;  %v487_v33 = vsel %vm484_vm10, 1.0, %v752_v2  ;;  %v492_v34 = vsel %vm485_vm11, 1.0, %v752_v2  ;;  %v497_v35 = vsel %vm484_vm10, %v825_v7, 0.0 }
  0x1d   : > { %441 = vst [vmem:[%s800_s26 + $0x68] sm:$0xff] %v438_v24  ;;  %446 = vst [vmem:[%s800_s26 + $0x70] sm:$0xff] %v443_v25  ;;  %v502_v36 = vsel %vm484_vm10, %v827_v8, 0.0  ;;  %v507_v37 = vsel %vm484_vm10, %v829_v9, 0.0  ;;  %v512_v38 = vsel %vm484_vm10, %v831_v10, 0.0  ;;  %vm516_vm12 = vcmp.eq.s32.totalorder %v802_v0, 6 }
  0x1e   : > { %451 = vst [vmem:[%s800_s26 + $0x78] sm:$0xff] %v448_v26  ;;  %458 = vst [vmem:[%s800_s26 + $0x120] sm:$0xff] %v455_v27  ;;  %vm517_vm13 = vcmp.eq.s32.totalorder %v804_v1, 6  ;;  %vm548_vm14 = vcmp.eq.s32.totalorder %v802_v0, 7  ;;  %vm549_vm15 = vcmp.eq.s32.totalorder %v804_v1, 7  ;;  %v519_v39 = vsel %vm516_vm12, 1.0, %v752_v2 }
  0x1f   : > { %463 = vst [vmem:[%s800_s26 + $0x160] sm:$0xff] %v460_v28  ;;  %468 = vst [vmem:[%s800_s26 + $0x80] sm:$0xff] %v465_v29  ;;  %v524_v40 = vsel %vm517_vm13, 1.0, %v752_v2  ;;  %v529_v41 = vsel %vm516_vm12, %v825_v7, 0.0  ;;  %v534_v42 = vsel %vm516_vm12, %v827_v8, 0.0  ;;  %v539_v43 = vsel %vm516_vm12, %v829_v9, 0.0 }
  0x20   : > { %473 = vst [vmem:[%s800_s26 + $0x88] sm:$0xff] %v470_v30  ;;  %478 = vst [vmem:[%s800_s26 + $0x90] sm:$0xff] %v475_v31  ;;  %v544_v44 = vsel %vm516_vm12, %v831_v10, 0.0  ;;  %v551_v45 = vsel %vm548_vm14, 1.0, %v752_v2  ;;  %v556_v46 = vsel %vm549_vm15, 1.0, %v752_v2  ;;  %v561_v47 = vsel %vm548_vm14, %v825_v7, 0.0 }
  0x21   : > { %483 = vst [vmem:[%s800_s26 + $0x98] sm:$0xff] %v480_v32  ;;  %490 = vst [vmem:[%s800_s26 + $0x128] sm:$0xff] %v487_v33  ;;  %v566_v48 = vsel %vm548_vm14, %v827_v8, 0.0  ;;  %v571_v49 = vsel %vm548_vm14, %v829_v9, 0.0  ;;  %v576_v50 = vsel %vm548_vm14, %v831_v10, 0.0 }
  0x22   : > { %495 = vst [vmem:[%s800_s26 + $0x168] sm:$0xff] %v492_v34  ;;  %500 = vst [vmem:[%s800_s26 + $0xa0] sm:$0xff] %v497_v35 }
  0x23   : > { %505 = vst [vmem:[%s800_s26 + $0xa8] sm:$0xff] %v502_v36  ;;  %510 = vst [vmem:[%s800_s26 + $0xb0] sm:$0xff] %v507_v37 }
  0x24   : > { %515 = vst [vmem:[%s800_s26 + $0xb8] sm:$0xff] %v512_v38  ;;  %522 = vst [vmem:[%s800_s26 + $0x130] sm:$0xff] %v519_v39 }
  0x25   : > { %527 = vst [vmem:[%s800_s26 + $0x170] sm:$0xff] %v524_v40  ;;  %532 = vst [vmem:[%s800_s26 + $0xc0] sm:$0xff] %v529_v41 }
  0x26   : > { %537 = vst [vmem:[%s800_s26 + $0xc8] sm:$0xff] %v534_v42  ;;  %542 = vst [vmem:[%s800_s26 + $0xd0] sm:$0xff] %v539_v43 }
  0x27   : > { %547 = vst [vmem:[%s800_s26 + $0xd8] sm:$0xff] %v544_v44  ;;  %554 = vst [vmem:[%s800_s26 + $0x138] sm:$0xff] %v551_v45 }
  0x28   : > { %559 = vst [vmem:[%s800_s26 + $0x178] sm:$0xff] %v556_v46  ;;  %564 = vst [vmem:[%s800_s26 + $0xe0] sm:$0xff] %v561_v47 }
  0x29   : > { %569 = vst [vmem:[%s800_s26 + $0xe8] sm:$0xff] %v566_v48  ;;  %574 = vst [vmem:[%s800_s26 + $0xf0] sm:$0xff] %v571_v49 }
  0x2a   : > { %579 = vst [vmem:[%s800_s26 + $0xf8] sm:$0xff] %v576_v50 }
  0x2b PF: > { %s13_s14 = sadd.s32 1, %s750_s14   ;;  %s972_s12 = smov %s746_s13 }
  0x2c   : > { %p10_p5 = scmp.ge.s32.totalorder %s13_s14, 4   ;;  %s973_s13 = smov %s975_s15 }
  0x2e   :  { %12 = sbr.rel (!%p10_p5) target bundleno = 2 (0x2), region = 75 }

// kernel: emb_loss.3
= control target key start
LH: loop header
LB: loop body
LE: loop exit
PB: predicated region body
PF: predicated region fallthrough
CT: control target
= control target key end

     0   :  { %10 = vsyncpa [#allocation3], 0  ;;  %s1386_s0 = inlined_call_operand.vmem [shape: s32[2,8], index: 0, kind: input, shape index: {}]   ;;  %s1387_s1 = inlined_call_operand.vmem [shape: f32[2,32], index: 1, kind: input, shape index: {}]   ;;  %s1388_s2 = inlined_call_operand.vmem [shape: f32[2,8], index: 2, kind: input, shape index: {}]   ;;  %s1389_s3 = inlined_call_operand.vmem [shape: f32[2,4,1,8,128], index: 3, kind: input, shape index: {}]   ;;  %s1390_s4 = inlined_call_operand.vmem [shape: s32[2,1,8,128], index: 4, kind: input, shape index: {}]   ;;  %s1391_s5 = inlined_call_operand.vmem [shape: f32[2,128,128], index: 5, kind: output, shape index: {}]  }
   0x1   :  { %11 = vsyncpa [#allocation5], 0  ;;  %s1125_s18 = smov 0   ;;  %s1127_s19 = smov 0  }
   0x2   :  { %s1129_s20 = smov 0  }
   0x3 LB: > { %s216_s23 = sshll.u32 %s1387_s1, 4  ;;  %s892_s24 = sadd.s32 4294967295, %s1089_s20   ;;  %s1089_s20 = sphi %s1129_s20, %s17_s20   ;;  %s1085_s19 = sphi %s1127_s19, %s1402_s19   ;;  %s1081_s18 = sphi %s1125_s18, %s1401_s18   ;;  %s217_s23 = int_to_ptr.vmem [resolvable:$true] %s216_s23 }
   0x4   : > { %p894_p0 = scmp.ge.s32.totalorder %s1089_s20, 1  ;;  %p192_p1 = scmp.lt.s32.totalorder %s1089_s20, 3 }
   0x5   : > { %p1146_p2 = scmp.eq.s32.totalorder %s892_s24, 0  ;;  %s36_s27 = sadd.s32 1, %s1085_s19 }
   0x6   : > { %p1150_p3 = pnand %p894_p0, %p192_p1  ;;  %s205_s30 = sshll.u32 %s1386_s0, 4  ;;  %s206_s30 = int_to_ptr.vmem [resolvable:$true] %s205_s30 }
   0x7   : > { %s1395_s25 = scalar_select %p1146_p2, 1, 0 }
   0x8   : > { %s1396_s26 = scalar_select %p1150_p3, 1, 0 }
   0x9   : > { %p942_p4 = pneg %p1150_p3  ;;  %p1166_p6 = scmp.ge.s32.totalorder %s36_s27, 2 }
   0xa   : > { %s227_s10 = sshll.u32 %s1388_s2, 4  ;;  %s1014_s11 = scalar_lea.vmem %s217_s23, 32  ;;  %s228_s10 = int_to_ptr.vmem [resolvable:$true] %s227_s10 }
   0xb   : > { %p1162_p5 = pnand %p1146_p2, %p942_p4  ;;  %p1015_p7 = scmp.ne.s32.totalorder %s217_s23, %s1014_s11 }
   0xc   : > { %p1022_p11 = scmp.lt.s32.totalorder %s217_s23, %s217_s23  ;;  %p1023_p12 = scmp.lt.s32.totalorder %s1014_s11, %s1014_s11 }
   0xd   : > { %p1016_p8 = pneg %p1162_p5 }
   0xe   : > { %p1024_p13 = por %p1023_p12, %p1022_p11 }
   0xf   : > { %p1017_p9 = pnand %p1016_p8, %p1015_p7 }
  0x11   : > { %p1018_p10 = pneg %p1017_p9 }
  0x13   : > { %p1025_p0 = pnand %p1024_p13, %p1018_p10 }
  0x15   : > { %1028 = shalt.err (!%p1025_p0)
}
  0x16   : > { %s1091_s12 = smov [#allocation4]   ;;  %s1404_s27 = smov (%p1166_p6, %s36_s27), 0 }
  0x17   : > { %948 = dma.vmem_to_smem (!%p1162_p5), %s217_s23, 32, %s1091_s12, [#allocation5]  }
  0x18   : > { %s1029_s13 = scalar_lea.vmem %s206_s30, 32  ;;  %p1037_p9 = scmp.lt.s32.totalorder %s206_s30, %s206_s30 }
  0x19   : > { %p1030_p1 = scmp.ne.s32.totalorder %s206_s30, %s1029_s13  ;;  %p1038_p2 = scmp.lt.s32.totalorder %s1029_s13, %s1029_s13 }
  0x1b   : > { %p1032_p4 = pnand %p1030_p1, %p1016_p8  ;;  %p1039_p11 = por %p1038_p2, %p1037_p9 }
  0x1d   : > { %p1033_p7 = pneg %p1032_p4 }
  0x1f   : > { %p1040_p10 = pnand %p1039_p11, %p1033_p7 }
  0x21   : > { %1043 = shalt.err (!%p1040_p10)
}
  0x22   : > { %s1092_s14 = smov [#allocation2]   ;;  %s1044_s15 = scalar_lea.vmem %s228_s10, 32 }
  0x23   : > { %945 = dma.vmem_to_smem (!%p1162_p5), %s206_s30, 32, %s1092_s14, [#allocation3]  }
  0x24   : > { %p1045_p6 = scmp.ne.s32.totalorder %s228_s10, %s1044_s15  ;;  %p1052_p0 = scmp.lt.s32.totalorder %s228_s10, %s228_s10 }
  0x25   : > { %p1053_p1 = scmp.lt.s32.totalorder %s1044_s15, %s1044_s15 }
  0x26   : > { %p1047_p12 = pnand %p1045_p6, %p1016_p8 }
  0x27   : > { %p1054_p4 = por %p1053_p1, %p1052_p0 }
  0x28   : > { %p1048_p13 = pneg %p1047_p12 }
  0x2a   : > { %p1055_p3 = pnand %p1054_p4, %p1048_p13 }
  0x2c   : > { %1058 = shalt.err (!%p1055_p3)
}
  0x2d   : > { %s1093_s16 = smov [#allocation6]   ;;  %p1399_p2 = scmp.ne.s32.totalorder %s1396_s26, 0 }
  0x2e   : > { %951 = dma.vmem_to_smem (!%p1162_p5), %s228_s10, 32, %s1093_s16, [#allocation5]  }
  0x2f   : > { %265 = sbr.rel (%p1399_p2) target bundleno = 557 (0x22d), region = 40  ;;  %p1400_p7 = scmp.ne.s32.totalorder (!%p1399_p2), %s1395_s25, 0 }
  0x36   : > { %1072 = dma.done.wait (%p1400_p7), [#allocation3], 32  }
  0x37   : > { %1074 = vsyncadd (%p1400_p7), [#allocation3], 4294967264 }
  0x38   : > { %1076 = dma.done.wait (%p1400_p7), [#allocation5], 64  }
  0x39   : > { %1078 = vsyncadd (%p1400_p7), [#allocation5], 4294967232 }
  0x3a   : > { %279 = sfence }
  0x3b   : > { %p316_p3 = scmp.lt.s32.totalorder %s1081_s18, 1  ;;  %s1206_s17 = sshll.u32 %s1081_s18, 7  ;;  %v1094_v7 = vmov 0.0  }
  0x3c   : > { %s1209_s21 = sadd.s32 1, %s1206_s17 }
  0x3d   : > { %s1406_s18 = smov (!%p316_p3, %s1081_s18), 1  ;;  %s1213_s22 = sld [smem:[#allocation2 + %s1209_s21]] }
  0x3e   : > { %s928_s23 = sshll.u32 %s1406_s18, 5  ;;  %s905_s24 = sshll.u32 %s1406_s18, 3 }
  0x3f   : > { %s323_s25 = scalar_lea.vmem %s1389_s3, %s928_s23  ;;  %s332_s6 = scalar_lea.vmem %s1390_s4, %s905_s24 }
  0x40   : > { %s929_s7 = sshll.u32 %s1406_s18, 7  ;;  %v1221_v0 = vld [vmem:[%s332_s6] sm:$0xff]  ;;  %v1225_v2 = vld [vmem:[%s323_s25 + $0x8] sm:$0xff]  ;;  %v1232_v3 = vld [vmem:[%s323_s25 + $0x10] sm:$0xff] }
  0x41   : > { %v1223_v1 = vld [vmem:[%s323_s25] sm:$0xff]  ;;  %s1230_s10 = scalar_lea.vmem %s1391_s5, %s929_s7  ;;  %v1234_v4 = vld [vmem:[%s323_s25 + $0x18] sm:$0xff]  ;;  %vm369_vm0 = vcmp.eq.s32.totalorder %v1221_v0, 0  ;;  %v371_v6 = vmul.f32 %v1225_v2, %v1225_v2  ;;  %v373_v8 = vmul.f32 %v1232_v3, %v1232_v3 }
  0x42   : > { %v370_v5 = vmul.f32 %v1223_v1, %v1223_v1  ;;  %345 = vst [vmem:[%s1230_s10] sm:$0xff] %v1094_v7  ;;  %346 = vst [vmem:[%s1230_s10 + $0x8] sm:$0xff] %v1094_v7  ;;  %v375_v10 = vmul.f32 %v1234_v4, %v1234_v4 }
  0x43   : > { %347 = vst [vmem:[%s1230_s10 + $0x10] sm:$0xff] %v1094_v7  ;;  %348 = vst [vmem:[%s1230_s10 + $0x18] sm:$0xff] %v1094_v7  ;;  %p912_p5 = scmp.le.s32.totalorder %s1213_s22, 0 }
  0x44   : > { %349 = vst [vmem:[%s1230_s10 + $0x20] sm:$0xff] %v1094_v7  ;;  %350 = vst [vmem:[%s1230_s10 + $0x28] sm:$0xff] %v1094_v7  ;;  %v372_v9 = vadd.f32 %v371_v6, %v370_v5  ;;  %s384_s18 = sld [smem:[#allocation6 + %s1209_s21]] (!%p912_p5)  ;;  %s391_s12 = sadd.s32 (!%p912_p5), 9, %s1206_s17  ;;  %vm415_vm3 = vcmp.eq.s32.totalorder (!%p912_p5), %v1221_v0, 1 }
  0x45   : > { %351 = vst [vmem:[%s1230_s10 + $0x30] sm:$0xff] %v1094_v7  ;;  %352 = vst [vmem:[%s1230_s10 + $0x38] sm:$0xff] %v1094_v7  ;;  %383 = sbr.rel (%p912_p5) target bundleno = 131 (0x83), region = 60  ;;  %s387_s11 = sld [smem:[#allocation4 + %s1209_s21]] (!%p912_p5) }
  0x46   : > { %353 = vst [vmem:[%s1230_s10 + $0x40] sm:$0xff] %v1094_v7  ;;  %354 = vst [vmem:[%s1230_s10 + $0x48] sm:$0xff] %v1094_v7  ;;  %v374_v11 = vadd.f32 %v373_v8, %v372_v9  ;;  %s396_s13 = sadd.s32 (!%p912_p5), 17, %s1206_s17  ;;  %s392_s14 = sld [smem:[#allocation4 + %s391_s12]] (!%p912_p5) }
  0x47   : > { %355 = vst [vmem:[%s1230_s10 + $0x50] sm:$0xff] %v1094_v7  ;;  %356 = vst [vmem:[%s1230_s10 + $0x58] sm:$0xff] %v1094_v7  ;;  %s397_s15 = sld [smem:[#allocation4 + %s396_s13]] (!%p912_p5)  ;;  %s401_s16 = sadd.s32 (!%p912_p5), 25, %s1206_s17 }
  0x48   : > { %357 = vst [vmem:[%s1230_s10 + $0x60] sm:$0xff] %v1094_v7  ;;  %358 = vst [vmem:[%s1230_s10 + $0x68] sm:$0xff] %v1094_v7  ;;  %v1261_v12 = vadd.f32 %v375_v10, %v374_v11  ;;  %s402_s23 = sld [smem:[#allocation4 + %s401_s16]] (!%p912_p5) }
  0x49   : > { %359 = vst [vmem:[%s1230_s10 + $0x70] sm:$0xff] %v1094_v7  ;;  %360 = vst [vmem:[%s1230_s10 + $0x78] sm:$0xff] %v1094_v7  ;;  %v424_v42 = vld [vmem:[%s1230_s10 + $0x8] sm:$0xff] (!%p912_p5) }
  0x4a   : > { %v385_v13 = vstv (!%p912_p5), %s384_s18 }
  0x4b   : > { %v388_v14 = vstv (!%p912_p5), %s387_s11  ;;  %v386_v15 = vadd.f32 (!%p912_p5), %v385_v13, %v1261_v12 }
  0x4c   : > { %v389_v16 = vmul.f32 %v388_v14, %v1223_v1  ;;  %v393_v17 = vstv %s392_s14 }
  0x4d   : > { %v398_v18 = vstv %s397_s15  ;;  %v394_v20 = vmul.f32 %v1225_v2, %v393_v17  ;;  %v429_v43 = vld [vmem:[%s1230_s10 + $0x48] sm:$0xff] }
  0x4e   : > { %v390_v19 = vadd.f32 %v389_v16, %v386_v15  ;;  %v399_v21 = vmul.f32 %v1232_v3, %v398_v18  ;;  %v403_v22 = vstv %s402_s23 }
  0x4f   : > { %v404_v24 = vmul.f32 %v1234_v4, %v403_v22 }
  0x50   : > { %v395_v23 = vadd.f32 %v394_v20, %v390_v19 }
  0x52   : > { %v400_v25 = vadd.f32 %v399_v21, %v395_v23 }
  0x54   : > { %v405_v26 = vadd.f32 %v404_v24, %v400_v25 }
  0x56   : > { %v406_v27 = vmax.f32 %v405_v26, 0.0 }
  0x58   : > { %v407_v28 = vadd.f32 1e-12, %v406_v27 }
  0x5a   : > { %986 = vrsqrt.f32 %v407_v28  ;;  %vm410_vm1 = vcmp.eq.f32.partialorder %v407_v28, inf  ;;  %v413_v30 = vand.u32 2147483648, %v407_v28  ;;  %vm412_vm2 = vcmp.eq.f32.partialorder %v407_v28, 0.0 }
  0x64   : > { %v987_v29 = vpop.eup %986 }
  0x65   : > { %v409_v31 = vmul.f32 %v987_v29, %v407_v28 }
  0x67   : > { %v411_v32 = vsel %vm410_vm1, %v407_v28, %v409_v31 }
  0x68   : > { %v414_v33 = vsel %vm412_vm2, %v413_v30, %v411_v32 }
  0x69   : > { %v913_v34 = vadd.f32 -0.5, %v414_v33  ;;  %v417_v35 = vsub.f32 3.0, %v414_v33 }
  0x6b   : > { %v418_v36 = vsel %vm415_vm3, %v913_v34, %v417_v35 }
  0x6c   : > { %v419_v37 = vmax.f32 %v418_v36, 0.0 }
  0x6e   : > { %v420_v38 = vmul.f32 %v419_v37, %v419_v37 }
  0x70   : > { %v421_v39 = vadd.f32 1.0, %v420_v38 }
  0x72   : > { %988 = vlog2.f32 %v421_v39 }
  0x7c   : > { %v989_v40 = vpop.eup %988 }
  0x7d   : > { %v423_v41 = vmul.f32 0.6931472, %v989_v40 }
  0x7f   : > { %v425_v44 = vsel %vm415_vm3, %v423_v41, 0.0  ;;  %v430_v45 = vsel %vm369_vm0, %v423_v41, 0.0 }
  0x80   : > { %v427_v46 = vadd.f32 %v425_v44, %v424_v42  ;;  %v432_v47 = vadd.f32 %v430_v45, %v429_v43 }
  0x82   : > { %428 = vst [vmem:[%s1230_s10 + $0x8] sm:$0xff] %v427_v46  ;;  %433 = vst [vmem:[%s1230_s10 + $0x48] sm:$0xff] %v432_v47 }
  0x83 PF: > { %s434_s21 = sadd.s32 2, %s1206_s17 }
  0x84   : > { %s435_s22 = sld [smem:[#allocation2 + %s434_s21]] }
  0x8a   : > { %p914_p8 = scmp.le.s32.totalorder %s435_s22, 0 }
  0x8b   : > { %s440_s24 = sld [smem:[#allocation6 + %s434_s21]] (!%p914_p8)  ;;  %s447_s28 = sadd.s32 (!%p914_p8), 10, %s1206_s17  ;;  %vm471_vm6 = vcmp.eq.s32.totalorder (!%p914_p8), %v1221_v0, 2  ;;  %v480_v19 = vld [vmem:[%s1230_s10 + $0x10] sm:$0xff] (!%p914_p8) }
  0x8c   : > { %439 = sbr.rel (%p914_p8) target bundleno = 202 (0xca), region = 64  ;;  %s443_s26 = sld [smem:[#allocation4 + %s434_s21]] (!%p914_p8)  ;;  %v485_v20 = vld [vmem:[%s1230_s10 + $0x50] sm:$0xff] (!%p914_p8) }
  0x8d   : > { %s452_s25 = sadd.s32 (!%p914_p8), 18, %s1206_s17  ;;  %s448_s29 = sld [smem:[#allocation4 + %s447_s28]] (!%p914_p8) }
  0x8e   : > { %s453_s30 = sld [smem:[#allocation4 + %s452_s25]] (!%p914_p8)  ;;  %s457_s6 = sadd.s32 (!%p914_p8), 26, %s1206_s17 }
  0x8f   : > { %s458_s7 = sld [smem:[#allocation4 + %s457_s6]] (!%p914_p8) }
  0x91   : > { %v441_v48 = vstv (!%p914_p8), %s440_s24 }
  0x92   : > { %v444_v49 = vstv (!%p914_p8), %s443_s26  ;;  %v442_v50 = vadd.f32 (!%p914_p8), %v441_v48, %v1261_v12 }
  0x93   : > { %v445_v51 = vmul.f32 %v444_v49, %v1223_v1  ;;  %v449_v52 = vstv %s448_s29 }
  0x94   : > { %v454_v53 = vstv %s453_s30  ;;  %v450_v55 = vmul.f32 %v1225_v2, %v449_v52 }
  0x95   : > { %v446_v54 = vadd.f32 %v445_v51, %v442_v50  ;;  %v455_v56 = vmul.f32 %v1232_v3, %v454_v53  ;;  %v459_v57 = vstv %s458_s7 }
  0x96   : > { %v460_v59 = vmul.f32 %v1234_v4, %v459_v57 }
  0x97   : > { %v451_v58 = vadd.f32 %v450_v55, %v446_v54 }
  0x99   : > { %v456_v60 = vadd.f32 %v455_v56, %v451_v58 }
  0x9b   : > { %v461_v61 = vadd.f32 %v460_v59, %v456_v60 }
  0x9d   : > { %v462_v62 = vmax.f32 %v461_v61, 0.0 }
  0x9f   : > { %v463_v63 = vadd.f32 1e-12, %v462_v62 }
  0xa1   : > { %990 = vrsqrt.f32 %v463_v63  ;;  %vm466_vm4 = vcmp.eq.f32.partialorder %v463_v63, inf  ;;  %v469_v6 = vand.u32 2147483648, %v463_v63  ;;  %vm468_vm5 = vcmp.eq.f32.partialorder %v463_v63, 0.0 }
  0xab   : > { %v991_v5 = vpop.eup %990 }
  0xac   : > { %v465_v7 = vmul.f32 %v991_v5, %v463_v63 }
  0xae   : > { %v467_v8 = vsel %vm466_vm4, %v463_v63, %v465_v7 }
  0xaf   : > { %v470_v9 = vsel %vm468_vm5, %v469_v6, %v467_v8 }
  0xb0   : > { %v915_v10 = vadd.f32 -0.5, %v470_v9  ;;  %v473_v11 = vsub.f32 3.0, %v470_v9 }
  0xb2   : > { %v474_v13 = vsel %vm471_vm6, %v915_v10, %v473_v11 }
  0xb3   : > { %v475_v14 = vmax.f32 %v474_v13, 0.0 }
  0xb5   : > { %v476_v15 = vmul.f32 %v475_v14, %v475_v14 }
  0xb7   : > { %v477_v16 = vadd.f32 1.0, %v476_v15 }
  0xb9   : > { %992 = vlog2.f32 %v477_v16 }
  0xc3   : > { %v993_v17 = vpop.eup %992 }
  0xc4   : > { %v479_v18 = vmul.f32 0.6931472, %v993_v17 }
  0xc6   : > { %v481_v21 = vsel %vm471_vm6, %v479_v18, 0.0  ;;  %v486_v22 = vsel %vm369_vm0, %v479_v18, 0.0 }
  0xc7   : > { %v483_v23 = vadd.f32 %v481_v21, %v480_v19  ;;  %v488_v24 = vadd.f32 %v486_v22, %v485_v20 }
  0xc9   : > { %484 = vst [vmem:[%s1230_s10 + $0x10] sm:$0xff] %v483_v23  ;;  %489 = vst [vmem:[%s1230_s10 + $0x50] sm:$0xff] %v488_v24 }
  0xca PF: > { %s490_s8 = sadd.s32 3, %s1206_s17 }
  0xcb   : > { %s491_s9 = sld [smem:[#allocation2 + %s490_s8]] }
  0xd1   : > { %p916_p9 = scmp.le.s32.totalorder %s491_s9, 0 }
  0xd2   : > { %s496_s18 = sld [smem:[#allocation6 + %s490_s8]] (!%p916_p9)  ;;  %s503_s12 = sadd.s32 (!%p916_p9), 11, %s1206_s17  ;;  %vm527_vm9 = vcmp.eq.s32.totalorder (!%p916_p9), %v1221_v0, 3  ;;  %v536_v54 = vld [vmem:[%s1230_s10 + $0x18] sm:$0xff] (!%p916_p9) }
  0xd3   : > { %495 = sbr.rel (%p916_p9) target bundleno = 273 (0x111), region = 68  ;;  %s499_s11 = sld [smem:[#allocation4 + %s490_s8]] (!%p916_p9)  ;;  %v541_v55 = vld [vmem:[%s1230_s10 + $0x58] sm:$0xff] (!%p916_p9) }
  0xd4   : > { %s508_s13 = sadd.s32 (!%p916_p9), 19, %s1206_s17  ;;  %s504_s14 = sld [smem:[#allocation4 + %s503_s12]] (!%p916_p9) }
  0xd5   : > { %s509_s15 = sld [smem:[#allocation4 + %s508_s13]] (!%p916_p9)  ;;  %s513_s16 = sadd.s32 (!%p916_p9), 27, %s1206_s17 }
  0xd6   : > { %s514_s23 = sld [smem:[#allocation4 + %s513_s16]] (!%p916_p9) }
  0xd8   : > { %v497_v25 = vstv (!%p916_p9), %s496_s18 }
  0xd9   : > { %v500_v26 = vstv (!%p916_p9), %s499_s11  ;;  %v498_v27 = vadd.f32 (!%p916_p9), %v497_v25, %v1261_v12 }
  0xda   : > { %v501_v28 = vmul.f32 %v500_v26, %v1223_v1  ;;  %v505_v29 = vstv %s504_s14 }
  0xdb   : > { %v510_v30 = vstv %s509_s15  ;;  %v506_v32 = vmul.f32 %v1225_v2, %v505_v29 }
  0xdc   : > { %v502_v31 = vadd.f32 %v501_v28, %v498_v27  ;;  %v511_v33 = vmul.f32 %v1232_v3, %v510_v30  ;;  %v515_v34 = vstv %s514_s23 }
  0xdd   : > { %v516_v36 = vmul.f32 %v1234_v4, %v515_v34 }
  0xde   : > { %v507_v35 = vadd.f32 %v506_v32, %v502_v31 }
  0xe0   : > { %v512_v37 = vadd.f32 %v511_v33, %v507_v35 }
  0xe2   : > { %v517_v38 = vadd.f32 %v516_v36, %v512_v37 }
  0xe4   : > { %v518_v39 = vmax.f32 %v517_v38, 0.0 }
  0xe6   : > { %v519_v40 = vadd.f32 1e-12, %v518_v39 }
  0xe8   : > { %994 = vrsqrt.f32 %v519_v40  ;;  %vm522_vm7 = vcmp.eq.f32.partialorder %v519_v40, inf  ;;  %v525_v42 = vand.u32 2147483648, %v519_v40  ;;  %vm524_vm8 = vcmp.eq.f32.partialorder %v519_v40, 0.0 }
  0xf2   : > { %v995_v41 = vpop.eup %994 }
  0xf3   : > { %v521_v43 = vmul.f32 %v995_v41, %v519_v40 }
  0xf5   : > { %v523_v44 = vsel %vm522_vm7, %v519_v40, %v521_v43 }
  0xf6   : > { %v526_v45 = vsel %vm524_vm8, %v525_v42, %v523_v44 }
  0xf7   : > { %v917_v46 = vadd.f32 -0.5, %v526_v45  ;;  %v529_v47 = vsub.f32 3.0, %v526_v45 }
  0xf9   : > { %v530_v48 = vsel %vm527_vm9, %v917_v46, %v529_v47 }
  0xfa   : > { %v531_v49 = vmax.f32 %v530_v48, 0.0 }
  0xfc   : > { %v532_v50 = vmul.f32 %v531_v49, %v531_v49 }
  0xfe   : > { %v533_v51 = vadd.f32 1.0, %v532_v50 }
 0x100   : > { %996 = vlog2.f32 %v533_v51 }
 0x10a   : > { %v997_v52 = vpop.eup %996 }
 0x10b   : > { %v535_v53 = vmul.f32 0.6931472, %v997_v52 }
 0x10d   : > { %v537_v56 = vsel %vm527_vm9, %v535_v53, 0.0  ;;  %v542_v57 = vsel %vm369_vm0, %v535_v53, 0.0 }
 0x10e   : > { %v539_v58 = vadd.f32 %v537_v56, %v536_v54  ;;  %v544_v59 = vadd.f32 %v542_v57, %v541_v55 }
 0x110   : > { %540 = vst [vmem:[%s1230_s10 + $0x18] sm:$0xff] %v539_v58  ;;  %545 = vst [vmem:[%s1230_s10 + $0x58] sm:$0xff] %v544_v59 }
 0x111 PF: > { %s546_s21 = sadd.s32 4, %s1206_s17 }
 0x112   : > { %s547_s22 = sld [smem:[#allocation2 + %s546_s21]] }
 0x118   : > { %p918_p11 = scmp.le.s32.totalorder %s547_s22, 0 }
 0x119   : > { %s552_s24 = sld [smem:[#allocation6 + %s546_s21]] (!%p918_p11)  ;;  %s559_s28 = sadd.s32 (!%p918_p11), 12, %s1206_s17  ;;  %vm583_vm12 = vcmp.eq.s32.totalorder (!%p918_p11), %v1221_v0, 4  ;;  %v592_v31 = vld [vmem:[%s1230_s10 + $0x20] sm:$0xff] (!%p918_p11) }
 0x11a   : > { %551 = sbr.rel (%p918_p11) target bundleno = 344 (0x158), region = 72  ;;  %s555_s26 = sld [smem:[#allocation4 + %s546_s21]] (!%p918_p11)  ;;  %v597_v32 = vld [vmem:[%s1230_s10 + $0x60] sm:$0xff] (!%p918_p11) }
 0x11b   : > { %s564_s25 = sadd.s32 (!%p918_p11), 20, %s1206_s17  ;;  %s560_s29 = sld [smem:[#allocation4 + %s559_s28]] (!%p918_p11) }
 0x11c   : > { %s565_s30 = sld [smem:[#allocation4 + %s564_s25]] (!%p918_p11)  ;;  %s569_s6 = sadd.s32 (!%p918_p11), 28, %s1206_s17 }
 0x11d   : > { %s570_s7 = sld [smem:[#allocation4 + %s569_s6]] (!%p918_p11) }
 0x11f   : > { %v553_v60 = vstv (!%p918_p11), %s552_s24 }
 0x120   : > { %v556_v61 = vstv (!%p918_p11), %s555_s26  ;;  %v554_v62 = vadd.f32 (!%p918_p11), %v553_v60, %v1261_v12 }
 0x121   : > { %v557_v63 = vmul.f32 %v556_v61, %v1223_v1  ;;  %v561_v5 = vstv %s560_s29 }
 0x122   : > { %v566_v6 = vstv %s565_s30  ;;  %v562_v8 = vmul.f32 %v1225_v2, %v561_v5 }
 0x123   : > { %v558_v7 = vadd.f32 %v557_v63, %v554_v62  ;;  %v567_v9 = vmul.f32 %v1232_v3, %v566_v6  ;;  %v571_v10 = vstv %s570_s7 }
 0x124   : > { %v572_v13 = vmul.f32 %v1234_v4, %v571_v10 }
 0x125   : > { %v563_v11 = vadd.f32 %v562_v8, %v558_v7 }
 0x127   : > { %v568_v14 = vadd.f32 %v567_v9, %v563_v11 }
 0x129   : > { %v573_v15 = vadd.f32 %v572_v13, %v568_v14 }
 0x12b   : > { %v574_v16 = vmax.f32 %v573_v15, 0.0 }
 0x12d   : > { %v575_v17 = vadd.f32 1e-12, %v574_v16 }
 0x12f   : > { %998 = vrsqrt.f32 %v575_v17  ;;  %vm578_vm10 = vcmp.eq.f32.partialorder %v575_v17, inf  ;;  %v581_v19 = vand.u32 2147483648, %v575_v17  ;;  %vm580_vm11 = vcmp.eq.f32.partialorder %v575_v17, 0.0 }
 0x139   : > { %v999_v18 = vpop.eup %998 }
 0x13a   : > { %v577_v20 = vmul.f32 %v999_v18, %v575_v17 }
 0x13c   : > { %v579_v21 = vsel %vm578_vm10, %v575_v17, %v577_v20 }
 0x13d   : > { %v582_v22 = vsel %vm580_vm11, %v581_v19, %v579_v21 }
 0x13e   : > { %v919_v23 = vadd.f32 -0.5, %v582_v22  ;;  %v585_v24 = vsub.f32 3.0, %v582_v22 }
 0x140   : > { %v586_v25 = vsel %vm583_vm12, %v919_v23, %v585_v24 }
 0x141   : > { %v587_v26 = vmax.f32 %v586_v25, 0.0 }
 0x143   : > { %v588_v27 = vmul.f32 %v587_v26, %v587_v26 }
 0x145   : > { %v589_v28 = vadd.f32 1.0, %v588_v27 }
 0x147   : > { %1000 = vlog2.f32 %v589_v28 }
 0x151   : > { %v1001_v29 = vpop.eup %1000 }
 0x152   : > { %v591_v30 = vmul.f32 0.6931472, %v1001_v29 }
 0x154   : > { %v593_v33 = vsel %vm583_vm12, %v591_v30, 0.0  ;;  %v598_v34 = vsel %vm369_vm0, %v591_v30, 0.0 }
 0x155   : > { %v595_v35 = vadd.f32 %v593_v33, %v592_v31  ;;  %v600_v36 = vadd.f32 %v598_v34, %v597_v32 }
 0x157   : > { %596 = vst [vmem:[%s1230_s10 + $0x20] sm:$0xff] %v595_v35  ;;  %601 = vst [vmem:[%s1230_s10 + $0x60] sm:$0xff] %v600_v36 }
 0x158 PF: > { %s602_s8 = sadd.s32 5, %s1206_s17 }
 0x159   : > { %s603_s9 = sld [smem:[#allocation2 + %s602_s8]] }
 0x15f   : > { %p920_p10 = scmp.le.s32.totalorder %s603_s9, 0 }
 0x160   : > { %s608_s18 = sld [smem:[#allocation6 + %s602_s8]] (!%p920_p10)  ;;  %s615_s12 = sadd.s32 (!%p920_p10), 13, %s1206_s17  ;;  %vm639_vm15 = vcmp.eq.s32.totalorder (!%p920_p10), %v1221_v0, 5  ;;  %v648_v7 = vld [vmem:[%s1230_s10 + $0x28] sm:$0xff] (!%p920_p10) }
 0x161   : > { %607 = sbr.rel (%p920_p10) target bundleno = 415 (0x19f), region = 76  ;;  %s611_s11 = sld [smem:[#allocation4 + %s602_s8]] (!%p920_p10)  ;;  %v653_v8 = vld [vmem:[%s1230_s10 + $0x68] sm:$0xff] (!%p920_p10) }
 0x162   : > { %s620_s13 = sadd.s32 (!%p920_p10), 21, %s1206_s17  ;;  %s616_s14 = sld [smem:[#allocation4 + %s615_s12]] (!%p920_p10) }
 0x163   : > { %s621_s15 = sld [smem:[#allocation4 + %s620_s13]] (!%p920_p10)  ;;  %s625_s16 = sadd.s32 (!%p920_p10), 29, %s1206_s17 }
 0x164   : > { %s626_s23 = sld [smem:[#allocation4 + %s625_s16]] (!%p920_p10) }
 0x166   : > { %v609_v37 = vstv (!%p920_p10), %s608_s18 }
 0x167   : > { %v612_v38 = vstv (!%p920_p10), %s611_s11  ;;  %v610_v39 = vadd.f32 (!%p920_p10), %v609_v37, %v1261_v12 }
 0x168   : > { %v613_v40 = vmul.f32 %v612_v38, %v1223_v1  ;;  %v617_v41 = vstv %s616_s14 }
 0x169   : > { %v622_v42 = vstv %s621_s15  ;;  %v618_v44 = vmul.f32 %v1225_v2, %v617_v41 }
 0x16a   : > { %v614_v43 = vadd.f32 %v613_v40, %v610_v39  ;;  %v623_v45 = vmul.f32 %v1232_v3, %v622_v42  ;;  %v627_v46 = vstv %s626_s23 }
 0x16b   : > { %v628_v48 = vmul.f32 %v1234_v4, %v627_v46 }
 0x16c   : > { %v619_v47 = vadd.f32 %v618_v44, %v614_v43 }
 0x16e   : > { %v624_v49 = vadd.f32 %v623_v45, %v619_v47 }
 0x170   : > { %v629_v50 = vadd.f32 %v628_v48, %v624_v49 }
 0x172   : > { %v630_v51 = vmax.f32 %v629_v50, 0.0 }
 0x174   : > { %v631_v52 = vadd.f32 1e-12, %v630_v51 }
 0x176   : > { %1002 = vrsqrt.f32 %v631_v52  ;;  %vm634_vm13 = vcmp.eq.f32.partialorder %v631_v52, inf  ;;  %v637_v54 = vand.u32 2147483648, %v631_v52  ;;  %vm636_vm14 = vcmp.eq.f32.partialorder %v631_v52, 0.0 }
 0x180   : > { %v1003_v53 = vpop.eup %1002 }
 0x181   : > { %v633_v55 = vmul.f32 %v1003_v53, %v631_v52 }
 0x183   : > { %v635_v56 = vsel %vm634_vm13, %v631_v52, %v633_v55 }
 0x184   : > { %v638_v57 = vsel %vm636_vm14, %v637_v54, %v635_v56 }
 0x185   : > { %v921_v58 = vadd.f32 -0.5, %v638_v57  ;;  %v641_v59 = vsub.f32 3.0, %v638_v57 }
 0x187   : > { %v642_v60 = vsel %vm639_vm15, %v921_v58, %v641_v59 }
 0x188   : > { %v643_v61 = vmax.f32 %v642_v60, 0.0 }
 0x18a   : > { %v644_v62 = vmul.f32 %v643_v61, %v643_v61 }
 0x18c   : > { %v645_v63 = vadd.f32 1.0, %v644_v62 }
 0x18e   : > { %1004 = vlog2.f32 %v645_v63 }
 0x198   : > { %v1005_v5 = vpop.eup %1004 }
 0x199   : > { %v647_v6 = vmul.f32 0.6931472, %v1005_v5 }
 0x19b   : > { %v649_v9 = vsel %vm639_vm15, %v647_v6, 0.0  ;;  %v654_v10 = vsel %vm369_vm0, %v647_v6, 0.0 }
 0x19c   : > { %v651_v11 = vadd.f32 %v649_v9, %v648_v7  ;;  %v656_v13 = vadd.f32 %v654_v10, %v653_v8 }
 0x19e   : > { %652 = vst [vmem:[%s1230_s10 + $0x28] sm:$0xff] %v651_v11  ;;  %657 = vst [vmem:[%s1230_s10 + $0x68] sm:$0xff] %v656_v13 }
 0x19f PF: > { %s658_s21 = sadd.s32 6, %s1206_s17 }
 0x1a0   : > { %s659_s22 = sld [smem:[#allocation2 + %s658_s21]] }
 0x1a6   : > { %p922_p6 = scmp.le.s32.totalorder %s659_s22, 0 }
 0x1a7   : > { %s664_s24 = sld [smem:[#allocation6 + %s658_s21]] (!%p922_p6)  ;;  %s671_s28 = sadd.s32 (!%p922_p6), 14, %s1206_s17  ;;  %vm695_vm3 = vcmp.eq.s32.totalorder (!%p922_p6), %v1221_v0, 6  ;;  %v704_v43 = vld [vmem:[%s1230_s10 + $0x30] sm:$0xff] (!%p922_p6) }
 0x1a8   : > { %663 = sbr.rel (%p922_p6) target bundleno = 486 (0x1e6), region = 80  ;;  %s667_s26 = sld [smem:[#allocation4 + %s658_s21]] (!%p922_p6)  ;;  %v709_v44 = vld [vmem:[%s1230_s10 + $0x70] sm:$0xff] (!%p922_p6) }
 0x1a9   : > { %s676_s25 = sadd.s32 (!%p922_p6), 22, %s1206_s17  ;;  %s672_s29 = sld [smem:[#allocation4 + %s671_s28]] (!%p922_p6) }
 0x1aa   : > { %s677_s30 = sld [smem:[#allocation4 + %s676_s25]] (!%p922_p6)  ;;  %s681_s6 = sadd.s32 (!%p922_p6), 30, %s1206_s17 }
 0x1ab   : > { %s682_s7 = sld [smem:[#allocation4 + %s681_s6]] (!%p922_p6) }
 0x1ad   : > { %v665_v14 = vstv (!%p922_p6), %s664_s24 }
 0x1ae   : > { %v668_v15 = vstv (!%p922_p6), %s667_s26  ;;  %v666_v16 = vadd.f32 (!%p922_p6), %v665_v14, %v1261_v12 }
 0x1af   : > { %v669_v17 = vmul.f32 %v668_v15, %v1223_v1  ;;  %v673_v18 = vstv %s672_s29 }
 0x1b0   : > { %v678_v19 = vstv %s677_s30  ;;  %v674_v21 = vmul.f32 %v1225_v2, %v673_v18 }
 0x1b1   : > { %v670_v20 = vadd.f32 %v669_v17, %v666_v16  ;;  %v679_v22 = vmul.f32 %v1232_v3, %v678_v19  ;;  %v683_v23 = vstv %s682_s7 }
 0x1b2   : > { %v684_v25 = vmul.f32 %v1234_v4, %v683_v23 }
 0x1b3   : > { %v675_v24 = vadd.f32 %v674_v21, %v670_v20 }
 0x1b5   : > { %v680_v26 = vadd.f32 %v679_v22, %v675_v24 }
 0x1b7   : > { %v685_v27 = vadd.f32 %v684_v25, %v680_v26 }
 0x1b9   : > { %v686_v28 = vmax.f32 %v685_v27, 0.0 }
 0x1bb   : > { %v687_v29 = vadd.f32 1e-12, %v686_v28 }
 0x1bd   : > { %1006 = vrsqrt.f32 %v687_v29  ;;  %vm690_vm1 = vcmp.eq.f32.partialorder %v687_v29, inf  ;;  %v693_v31 = vand.u32 2147483648, %v687_v29  ;;  %vm692_vm2 = vcmp.eq.f32.partialorder %v687_v29, 0.0 }
 0x1c7   : > { %v1007_v30 = vpop.eup %1006 }
 0x1c8   : > { %v689_v32 = vmul.f32 %v1007_v30, %v687_v29 }
 0x1ca   : > { %v691_v33 = vsel %vm690_vm1, %v687_v29, %v689_v32 }
 0x1cb   : > { %v694_v34 = vsel %vm692_vm2, %v693_v31, %v691_v33 }
 0x1cc   : > { %v923_v35 = vadd.f32 -0.5, %v694_v34  ;;  %v697_v36 = vsub.f32 3.0, %v694_v34 }
 0x1ce   : > { %v698_v37 = vsel %vm695_vm3, %v923_v35, %v697_v36 }
 0x1cf   : > { %v699_v38 = vmax.f32 %v698_v37, 0.0 }
 0x1d1   : > { %v700_v39 = vmul.f32 %v699_v38, %v699_v38 }
 0x1d3   : > { %v701_v40 = vadd.f32 1.0, %v700_v39 }
 0x1d5   : > { %1008 = vlog2.f32 %v701_v40 }
 0x1df   : > { %v1009_v41 = vpop.eup %1008 }
 0x1e0   : > { %v703_v42 = vmul.f32 0.6931472, %v1009_v41 }
 0x1e2   : > { %v705_v45 = vsel %vm695_vm3, %v703_v42, 0.0  ;;  %v710_v46 = vsel %vm369_vm0, %v703_v42, 0.0 }
 0x1e3   : > { %v707_v47 = vadd.f32 %v705_v45, %v704_v43  ;;  %v712_v48 = vadd.f32 %v710_v46, %v709_v44 }
 0x1e5   : > { %708 = vst [vmem:[%s1230_s10 + $0x30] sm:$0xff] %v707_v47  ;;  %713 = vst [vmem:[%s1230_s10 + $0x70] sm:$0xff] %v712_v48 }
 0x1e6 PF: > { %s714_s8 = sadd.s32 7, %s1206_s17 }
 0x1e7   : > { %s715_s9 = sld [smem:[#allocation2 + %s714_s8]] }
 0x1ed   : > { %p924_p12 = scmp.le.s32.totalorder %s715_s9, 0 }
 0x1ee   : > { %s720_s18 = sld [smem:[#allocation6 + %s714_s8]] (!%p924_p12)  ;;  %s727_s12 = sadd.s32 (!%p924_p12), 15, %s1206_s17  ;;  %vm751_vm6 = vcmp.eq.s32.totalorder (!%p924_p12), %v1221_v0, 7  ;;  %v760_v15 = vld [vmem:[%s1230_s10 + $0x38] sm:$0xff] (!%p924_p12) }
 0x1ef   : > { %719 = sbr.rel (%p924_p12) target bundleno = 557 (0x22d), region = 84  ;;  %s723_s11 = sld [smem:[#allocation4 + %s714_s8]] (!%p924_p12)  ;;  %v765_v16 = vld [vmem:[%s1230_s10 + $0x78] sm:$0xff] (!%p924_p12) }
 0x1f0   : > { %s732_s13 = sadd.s32 (!%p924_p12), 23, %s1206_s17  ;;  %s728_s14 = sld [smem:[#allocation4 + %s727_s12]] (!%p924_p12) }
 0x1f1   : > { %s733_s15 = sld [smem:[#allocation4 + %s732_s13]] (!%p924_p12)  ;;  %s737_s16 = sadd.s32 (!%p924_p12), 31, %s1206_s17 }
 0x1f2   : > { %s738_s23 = sld [smem:[#allocation4 + %s737_s16]] (!%p924_p12) }
 0x1f4   : > { %v721_v49 = vstv (!%p924_p12), %s720_s18 }
 0x1f5   : > { %v724_v50 = vstv (!%p924_p12), %s723_s11  ;;  %v722_v51 = vadd.f32 (!%p924_p12), %v721_v49, %v1261_v12 }
 0x1f6   : > { %v725_v52 = vmul.f32 %v724_v50, %v1223_v1  ;;  %v729_v53 = vstv %s728_s14 }
 0x1f7   : > { %v734_v54 = vstv %s733_s15  ;;  %v730_v56 = vmul.f32 %v1225_v2, %v729_v53 }
 0x1f8   : > { %v726_v55 = vadd.f32 %v725_v52, %v722_v51  ;;  %v735_v57 = vmul.f32 %v1232_v3, %v734_v54  ;;  %v739_v58 = vstv %s738_s23 }
 0x1f9   : > { %v740_v60 = vmul.f32 %v1234_v4, %v739_v58 }
 0x1fa   : > { %v731_v59 = vadd.f32 %v730_v56, %v726_v55 }
 0x1fc   : > { %v736_v61 = vadd.f32 %v735_v57, %v731_v59 }
 0x1fe   : > { %v741_v62 = vadd.f32 %v740_v60, %v736_v61 }
 0x200   : > { %v742_v63 = vmax.f32 %v741_v62, 0.0 }
 0x202   : > { %v743_v5 = vadd.f32 1e-12, %v742_v63 }
 0x204   : > { %1010 = vrsqrt.f32 %v743_v5  ;;  %vm746_vm4 = vcmp.eq.f32.partialorder %v743_v5, inf  ;;  %v749_v1 = vand.u32 2147483648, %v743_v5  ;;  %vm748_vm5 = vcmp.eq.f32.partialorder %v743_v5, 0.0 }
 0x20e   : > { %v1011_v6 = vpop.eup %1010 }
 0x20f   : > { %v745_v12 = vmul.f32 %v1011_v6, %v743_v5 }
 0x211   : > { %v747_v7 = vsel %vm746_vm4, %v743_v5, %v745_v12 }
 0x212   : > { %v750_v2 = vsel %vm748_vm5, %v749_v1, %v747_v7 }
 0x213   : > { %v925_v3 = vadd.f32 -0.5, %v750_v2  ;;  %v753_v4 = vsub.f32 3.0, %v750_v2 }
 0x215   : > { %v754_v8 = vsel %vm751_vm6, %v925_v3, %v753_v4 }
 0x216   : > { %v755_v9 = vmax.f32 %v754_v8, 0.0 }
 0x218   : > { %v756_v10 = vmul.f32 %v755_v9, %v755_v9 }
 0x21a   : > { %v757_v11 = vadd.f32 1.0, %v756_v10 }
 0x21c   : > { %1012 = vlog2.f32 %v757_v11 }
 0x226   : > { %v1013_v13 = vpop.eup %1012 }
 0x227   : > { %v759_v14 = vmul.f32 0.6931472, %v1013_v13 }
 0x229   : > { %v761_v17 = vsel %vm751_vm6, %v759_v14, 0.0  ;;  %v766_v18 = vsel %vm369_vm0, %v759_v14, 0.0 }
 0x22a   : > { %v763_v19 = vadd.f32 %v761_v17, %v760_v15  ;;  %v768_v20 = vadd.f32 %v766_v18, %v765_v16 }
 0x22c   : > { %764 = vst [vmem:[%s1230_s10 + $0x38] sm:$0xff] %v763_v19  ;;  %769 = vst [vmem:[%s1230_s10 + $0x78] sm:$0xff] %v768_v20 }
 0x22d PF: > { %s17_s20 = sadd.s32 1, %s1089_s20   ;;  %s1401_s18 = smov %s1085_s19 }
 0x22e   : > { %p14_p13 = scmp.ge.s32.totalorder %s17_s20, 4   ;;  %s1402_s19 = smov %s1404_s27 }
 0x230   :  { %16 = sbr.rel (!%p14_p13) target bundleno = 3 (0x3), region = 121 }
 0x237   :  { %794 = vsyncpa [#allocation3], 1 }
 0x238   :  { %796 = vsyncpa [#allocation3 + $0x1], 1 }
 0x239   :  { %797 = vsyncpa [#allocation5], 1 }

</bundles_post_ra>
